<compile_context>
chip_gen: v7x
topology: tpu7x:2x2x1
jax: 0.10.0
libtpu: 0.0.40
codegen_flags: <defaults>
</compile_context>

<pallas_src>
import jax
import jax.numpy as jnp
from jax import lax
from jax.experimental import pallas as pl
from jax.experimental.pallas import tpu as pltpu


# ----------------------------------------------------------------------------
# VMEM budgeting ((8,128) padding, f32 accumulator and double buffers included)
# ----------------------------------------------------------------------------
def _vmem_capacity_bytes():
    try:
        cap = getattr(pltpu.get_tpu_info(), "vmem_capacity_bytes", None)
        if cap:
            return int(cap)
    except Exception:
        pass
    return 64 * 1024 * 1024  # conservative default: v7x has 64 MiB physical VMEM


_VMEM_CAP = _vmem_capacity_bytes()
# scoped limit: ~48 MiB on v7x (64 MiB physical), up to 96 MiB on v5e/v6e (128 MiB)
VMEM_LIMIT = min((_VMEM_CAP * 3) // 4, 96 * 1024 * 1024)
_TILE_BUDGET = (VMEM_LIMIT * 3) // 4  # headroom for weights / stats / compiler scratch


def _cparams(*dim_sem):
    return pltpu.CompilerParams(dimension_semantics=dim_sem,
                                vmem_limit_bytes=VMEM_LIMIT)


def _pad_up(v, m):
    return ((v + m - 1) // m) * m


def _block_vmem_bytes(shape, dtype):
    """(8,128)-padded VMEM bytes of one block."""
    itemsize = jnp.dtype(dtype).itemsize
    if len(shape) < 2:
        return _pad_up(int(shape[0]) if shape else 1, 128) * itemsize
    lead = 1
    for d in shape[:-2]:
        lead *= int(d)
    return lead * _pad_up(int(shape[-2]), 8) * _pad_up(int(shape[-1]), 128) * itemsize


def _conv_step_bytes(tf, H, W, Cin, Cout, dtype):
    n = tf * H * W
    return (2 * _block_vmem_bytes((tf, H, W, Cin), dtype)         # input block  (x2 buffers)
            + 2 * _block_vmem_bytes((1, n, Cout), dtype)          # output block (x2 buffers)
            + _block_vmem_bytes((tf, H + 2, W + 2, Cin), dtype)   # padded VMEM scratch
            + _block_vmem_bytes((n, Cout), jnp.float32)           # f32 accumulator scratch
            + 2 * _block_vmem_bytes((n, Cin), dtype))             # live tap values (approx)


def _rows_step_bytes(tn, C, Cin, dtype):
    return (4 * _block_vmem_bytes((1, tn, C), dtype)              # h in + out (x2 buffers each)
            + 2 * _block_vmem_bytes((1, tn, Cin), dtype)          # residual x (x2 buffers)
            + 2 * _block_vmem_bytes((tn, C), jnp.float32))        # f32 temporaries


def _pick_frames_tile(Fr, H, W, Cin, Cout, dtype, budget=_TILE_BUDGET):
    cands = [d for d in range(1, Fr + 1)
             if Fr % d == 0 and ((d * H * W) % 8 == 0 or d == Fr)]
    good = [d for d in cands if _conv_step_bytes(d, H, W, Cin, Cout, dtype) <= budget]
    return max(good) if good else min(cands)


def _pick_rows_tile(N, C, Cin, dtype, budget=_TILE_BUDGET):
    cands = [d for d in range(1, N + 1) if N % d == 0 and (d % 8 == 0 or d == N)]
    good = [d for d in cands if _rows_step_bytes(d, C, Cin, dtype) <= budget]
    return max(good) if good else min(cands)


# ----------------------------------------------------------------------------
# Kernels
# ----------------------------------------------------------------------------
def _conv3x3_tail(x, w_ref, bias_ref, o_ref, sum_ref, sq_ref, xpad_ref, acc_ref):
    """Shared 3x3 'same' spatial conv + fused GroupNorm partial statistics.

    x        : (Tf, H, W, C) value to convolve (spatial halo is zero)
    w_ref    : (3, 3, C, Cout)
    bias_ref : (1, Cout)
    o_ref    : (1, Tf*H*W, Cout)   conv output, channels-last, flattened
    sum_ref  : (1, 1, 1, Cout)     per-(batch, frame-tile) sum of conv output
    sq_ref   : (1, 1, 1, Cout)     per-(batch, frame-tile) sum of squares
    xpad_ref : (Tf, H+2, W+2, C)   VMEM scratch holding the zero-halo tile
    acc_ref  : (Tf*H*W, Cout) f32  VMEM accumulator scratch
    """
    Tf, H, W, C = x.shape
    Cout = o_ref.shape[-1]

    # Build the zero-padded tile in VMEM (no HBM pad materialization).
    xpad_ref[...] = jnp.zeros_like(xpad_ref)
    xpad_ref[:, 1:H + 1, 1:W + 1, :] = x
    xp = xpad_ref[...]

    # 9 shifted taps accumulated into the f32 scratch (MRB-friendly on v7x).
    acc_ref[...] = jnp.zeros_like(acc_ref)
    for kh in range(3):
        for kw in range(3):
            patch = xp[:, kh:kh + H, kw:kw + W, :].reshape(Tf * H * W, C)
            acc_ref[...] += jnp.dot(patch, w_ref[kh, kw],
                                    preferred_element_type=jnp.float32)
    acc = acc_ref[...] + bias_ref[...].astype(jnp.float32)
    o_ref[0] = acc.astype(o_ref.dtype)

    # fused GroupNorm pass-1 statistics (per frame-tile, reduced in the wrapper)
    sum_ref[...] = jnp.sum(acc, axis=0, keepdims=True).reshape(1, 1, 1, Cout)
    sq_ref[...] = jnp.sum(acc * acc, axis=0, keepdims=True).reshape(1, 1, 1, Cout)


def conv3x3_stats_kernel(x_ref, w_ref, bias_ref, o_ref, sum_ref, sq_ref,
                         xpad_ref, acc_ref):
    _conv3x3_tail(x_ref[...], w_ref, bias_ref, o_ref, sum_ref, sq_ref,
                  xpad_ref, acc_ref)


def gn_silu_conv3x3_stats_kernel(h_ref, a_ref, b_ref, w_ref, bias_ref,
                                 o_ref, sum_ref, sq_ref, xpad_ref, acc_ref):
    """Block-1 GroupNorm (+FiLM scale/shift) + SiLU fused as block-2's conv prologue."""
    h = h_ref[...].astype(jnp.float32)                 # (Tf, H, W, C)
    a = a_ref[...].reshape(1, 1, 1, -1)                # pre-folded affine A
    b = b_ref[...].reshape(1, 1, 1, -1)                # pre-folded affine B
    y = h * a + b
    y = y * jax.nn.sigmoid(y)                          # SiLU
    _conv3x3_tail(y.astype(xpad_ref.dtype), w_ref, bias_ref, o_ref,
                  sum_ref, sq_ref, xpad_ref, acc_ref)


def gn_silu_res_add_kernel(h_ref, a_ref, b_ref, x_ref, wr_ref, br_ref, o_ref):
    """out = SiLU(h*A + B) + (x @ Wr + br)  — GN2 affine pre-folded, fused res add."""
    h = h_ref[0].astype(jnp.float32)                   # (TN, C)
    y = h * a_ref[0] + b_ref[0]
    y = y * jax.nn.sigmoid(y)
    res = jnp.dot(x_ref[0], wr_ref[...], preferred_element_type=jnp.float32)
    res = res + br_ref[...].astype(jnp.float32)
    o_ref[0] = (y + res).astype(o_ref.dtype)


# ----------------------------------------------------------------------------
# Wrappers
# ----------------------------------------------------------------------------
def conv3x3_with_stats(x5, w, b, prologue=None):
    """x5: (B, Fr, H, W, C) channels-last.
    prologue=(A, Bc) [each (B,1,C) f32] applies y = SiLU(x*A + Bc) to the input
    tile in VMEM before the conv (fuses block-1's GN / scale-shift / SiLU).
    Returns (h, ssum, ssq): h (B, Fr*H*W, Cout); ssum/ssq (B, ft, 1, Cout) f32."""
    B, Fr, H, W, Cin = x5.shape
    Cout = w.shape[-1]
    dt = x5.dtype
    tf = _pick_frames_tile(Fr, H, W, Cin, Cout, dt)
    ft = Fr // tf
    x_flat = x5.reshape(B * Fr, H, W, Cin)

    x_spec = pl.BlockSpec((tf, H, W, Cin), lambda bi, fi: (bi * ft + fi, 0, 0, 0))
    w_spec = pl.BlockSpec((3, 3, Cin, Cout), lambda bi, fi: (0, 0, 0, 0))
    b_spec = pl.BlockSpec((1, Cout), lambda bi, fi: (0, 0))
    out_shape = (jax.ShapeDtypeStruct((B, Fr * H * W, Cout), dt),
                 jax.ShapeDtypeStruct((B, ft, 1, Cout), jnp.float32),
                 jax.ShapeDtypeStruct((B, ft, 1, Cout), jnp.float32))
    out_specs = (pl.BlockSpec((1, tf * H * W, Cout), lambda bi, fi: (bi, fi, 0)),
                 pl.BlockSpec((1, 1, 1, Cout), lambda bi, fi: (bi, fi, 0, 0)),
                 pl.BlockSpec((1, 1, 1, Cout), lambda bi, fi: (bi, fi, 0, 0)))
    scratch = [pltpu.VMEM((tf, H + 2, W + 2, Cin), dt),
               pltpu.VMEM((tf * H * W, Cout), jnp.float32)]

    if prologue is None:
        kernel = conv3x3_stats_kernel
        in_specs = [x_spec, w_spec, b_spec]
        args = (x_flat, w, b.reshape(1, Cout))
    else:
        A, Bc = prologue
        aff_spec = pl.BlockSpec((1, 1, Cin), lambda bi, fi: (bi, 0, 0))
        kernel = gn_silu_conv3x3_stats_kernel
        in_specs = [x_spec, aff_spec, aff_spec, w_spec, b_spec]
        args = (x_flat, A, Bc, w, b.reshape(1, Cout))

    return pl.pallas_call(
        kernel, out_shape=out_shape, grid=(B, ft),
        in_specs=in_specs, out_specs=out_specs, scratch_shapes=scratch,
        compiler_params=_cparams("parallel", "parallel"),
    )(*args)


def _fold_gn_affine(ssum, ssq, count, groups, gamma, beta,
                    scale=None, shift=None, eps=1e-5):
    """Fold GroupNorm (+ optional FiLM scale/shift) into per-(batch, channel)
    A, B so the kernel epilogue/prologue is one fma:  y = x*A + B."""
    s = ssum.sum(axis=(1, 2))                          # (B, C)
    q = ssq.sum(axis=(1, 2))                           # (B, C)
    B, C = s.shape
    Cg = C // groups
    gs = s.reshape(B, groups, Cg).sum(-1)              # (B, G)
    gq = q.reshape(B, groups, Cg).sum(-1)              # (B, G)
    n = float(count * Cg)
    mean = gs / n
    var = jnp.maximum(gq / n - mean * mean, 0.0)       # guard E[x^2]-m^2 cancellation
    rstd = lax.rsqrt(var + eps)
    mean = jnp.repeat(mean, Cg, axis=-1)               # (B, C)
    rstd = jnp.repeat(rstd, Cg, axis=-1)
    A = rstd * gamma[None, :]
    Bc = beta[None, :] - mean * A
    if scale is not None:
        A = A * (scale + 1.0)
        Bc = Bc * (scale + 1.0) + shift
    return (A.astype(jnp.float32).reshape(B, 1, C),
            Bc.astype(jnp.float32).reshape(B, 1, C))


def gn_silu_res_add(h, A, Bc, x_flat, wr, br):
    """h: (B,N,C); A/Bc: (B,1,C) f32; x_flat: (B,N,Cin); wr: (Cin,C); br: (C,)."""
    B, N, C = h.shape
    Cin = x_flat.shape[-1]
    tn = _pick_rows_tile(N, C, Cin, h.dtype)
    return pl.pallas_call(
        gn_silu_res_add_kernel,
        out_shape=jax.ShapeDtypeStruct((B, N, C), h.dtype),
        grid=(B, N // tn),
        in_specs=[
            pl.BlockSpec((1, tn, C), lambda b, n: (b, n, 0)),
            pl.BlockSpec((1, 1, C), lambda b, n: (b, 0, 0)),
            pl.BlockSpec((1, 1, C), lambda b, n: (b, 0, 0)),
            pl.BlockSpec((1, tn, Cin), lambda b, n: (b, n, 0)),
            pl.BlockSpec((Cin, C), lambda b, n: (0, 0)),
            pl.BlockSpec((1, C), lambda b, n: (0, 0)),
        ],
        out_specs=pl.BlockSpec((1, tn, C), lambda b, n: (b, n, 0)),
        compiler_params=_cparams("parallel", "parallel"),
    )(h, A, Bc, x_flat, wr, br.reshape(1, C))


# ----------------------------------------------------------------------------
# Full forward:  out = block2(block1(x, scale_shift)) + res_conv(x)
# ----------------------------------------------------------------------------
def resnet_block_forward(x_ncdhw, time_emb, params, groups):
    B, Cin, Fr, H, W = x_ncdhw.shape
    Cout = params["w1"].shape[-1]
    N = Fr * H * W

    # NCDHW -> channels-last (B, F, H, W, C)
    x_cl = jnp.transpose(x_ncdhw, (0, 2, 3, 4, 1))

    # time MLP (tiny matmul -> plain JAX; chunk(2, dim=1): scale, shift)
    te = jax.nn.silu(time_emb) @ params["wm"] + params["bm"]   # (B, 2*Cout)
    scale, shift = te[:, :Cout], te[:, Cout:]

    # block1: conv3x3 with fused partial GroupNorm statistics
    h1, s1, q1 = conv3x3_with_stats(x_cl, params["w1"], params["b1"])
    A1, B1 = _fold_gn_affine(s1, q1, N, groups, params["g1"], params["be1"],
                             scale, shift)

    # block2: conv3x3 with block-1's GN/scale-shift/SiLU fused into its prologue
    h2, s2, q2 = conv3x3_with_stats(h1.reshape(B, Fr, H, W, Cout),
                                    params["w2"], params["b2"],
                                    prologue=(A1, B1))
    A2, B2 = _fold_gn_affine(s2, q2, N, groups, params["g2"], params["be2"])

    # GN2 apply + SiLU fused with the residual 1x1x1 conv + skip add
    out = gn_silu_res_add(h2, A2, B2, x_cl.reshape(B, N, Cin),
                          params["wr"], params["br"])
    return jnp.transpose(out.reshape(B, Fr, H, W, Cout), (0, 4, 1, 2, 3))


# ----------------------------------------------------------------------------
# Pure-JAX reference (correctness check)
# ----------------------------------------------------------------------------
def reference_forward(x_ncdhw, time_emb, params, groups):
    B, Cin, Fr, H, W = x_ncdhw.shape
    Cout = params["w1"].shape[-1]
    x_cl = jnp.transpose(x_ncdhw, (0, 2, 3, 4, 1))

    te = jax.nn.silu(time_emb) @ params["wm"] + params["bm"]
    scale, shift = te[:, :Cout], te[:, Cout:]

    def conv(x, w, b):
        y = lax.conv_general_dilated(x, w, (1, 1), ((1, 1), (1, 1)),
                                     dimension_numbers=("NHWC", "HWIO", "NHWC"))
        return y + b

    def gn(x5, gamma, beta):
        C = x5.shape[-1]
        Cg = C // groups
        xr = x5.reshape(B, Fr * H * W, groups, Cg)
        mean = xr.mean(axis=(1, 3), keepdims=True)
        var = ((xr - mean) ** 2).mean(axis=(1, 3), keepdims=True)
        xn = (xr - mean) * lax.rsqrt(var + 1e-5)
        return xn.reshape(x5.shape) * gamma + beta

    h = conv(x_cl.reshape(B * Fr, H, W, Cin), params["w1"], params["b1"])
    h = gn(h.reshape(B, Fr, H, W, Cout), params["g1"], params["be1"])
    h = h * (scale[:, None, None, None, :] + 1.0) + shift[:, None, None, None, :]
    h = jax.nn.silu(h)

    h = conv(h.reshape(B * Fr, H, W, Cout), params["w2"], params["b2"])
    h = gn(h.reshape(B, Fr, H, W, Cout), params["g2"], params["be2"])
    h = jax.nn.silu(h)

    res = x_cl @ params["wr"] + params["br"]
    out_cl = h + res
    return jnp.transpose(out_cl, (0, 4, 1, 2, 3))


# ----------------------------------------------------------------------------
if __name__ == "__main__":
    B, Cin, Cout, Fr, H, W = 2, 4, 8, 4, 8, 8
    T = 16          # time_emb_dim
    groups = 4

    key = jax.random.PRNGKey(0)
    ks = jax.random.split(key, 12)
    params = {
        # Block1: Conv3d(dim, dim_out, (1,3,3)) -> spatial (3,3,Cin,Cout)
        "w1": jax.random.normal(ks[0], (3, 3, Cin, Cout), jnp.float32) * 0.1,
        "b1": jax.random.normal(ks[1], (Cout,), jnp.float32) * 0.1,
        "g1": jnp.ones((Cout,), jnp.float32),
        "be1": jnp.zeros((Cout,), jnp.float32),
        # Block2
        "w2": jax.random.normal(ks[2], (3, 3, Cout, Cout), jnp.float32) * 0.1,
        "b2": jax.random.normal(ks[3], (Cout,), jnp.float32) * 0.1,
        "g2": jnp.ones((Cout,), jnp.float32),
        "be2": jnp.zeros((Cout,), jnp.float32),
        # time MLP: Linear(time_emb_dim, 2*dim_out)
        "wm": jax.random.normal(ks[4], (T, 2 * Cout), jnp.float32) * 0.1,
        "bm": jax.random.normal(ks[5], (2 * Cout,), jnp.float32) * 0.1,
        # res_conv: Conv3d(dim, dim_out, 1)
        "wr": jax.random.normal(ks[6], (Cin, Cout), jnp.float32) * 0.1,
        "br": jax.random.normal(ks[7], (Cout,), jnp.float32) * 0.1,
    }

    x = jax.random.normal(ks[8], (B, Cin, Fr, H, W), jnp.float32)       # NCDHW
    time_emb = jax.random.normal(ks[9], (B, T), jnp.float32)

    out = resnet_block_forward(x, time_emb, params, groups)
    out = jax.block_until_ready(out)

    ref = reference_forward(x, time_emb, params, groups)
    assert out.shape == (B, Cout, Fr, H, W), out.shape
    err = float(jnp.max(jnp.abs(out - ref)))
    assert jnp.allclose(out, ref, atol=1e-3, rtol=1e-3), err

    print("KERNEL_OK")
</pallas_src>

<mosaic_0001>
module attributes {stable_mosaic.version = 11 : i64} {
  func.func @conv3x3_stats_kernel(%arg0: i32, %arg1: i32, %arg2: memref<4x8x8x4xf32, #tpu.memory_space<vmem>>, %arg3: memref<3x3x4x8xf32, #tpu.memory_space<vmem>>, %arg4: memref<1x8xf32, #tpu.memory_space<vmem>>, %arg5: memref<1x256x8xf32, #tpu.memory_space<vmem>>, %arg6: memref<1x1x1x8xf32, #tpu.memory_space<vmem>>, %arg7: memref<1x1x1x8xf32, #tpu.memory_space<vmem>>, %arg8: memref<4x10x10x4xf32, #tpu.memory_space<vmem>>, %arg9: memref<256x8xf32, #tpu.memory_space<vmem>>) attributes {dimension_semantics = [#tpu.dimension_semantics<parallel>, #tpu.dimension_semantics<parallel>], iteration_bounds = array<i64: 2, 1>, scalar_prefetch = 0 : i64, scratch_operands = 2 : i64, tpu.core_type = #tpu.core_type<tc>, window_params = [{transform_indices = @transform_0, window_bounds = array<i64: 4, 8, 8, 4>}, {pipeline_mode = #tpu.pipeline_mode<synchronous>, transform_indices = @transform_1, window_bounds = array<i64: 3, 3, 4, 8>}, {pipeline_mode = #tpu.pipeline_mode<synchronous>, transform_indices = @transform_2, window_bounds = array<i64: 1, 8>}, {transform_indices = @transform_3, window_bounds = array<i64: 1, 256, 8>}, {transform_indices = @transform_4, window_bounds = array<i64: 1, 1, 1, 8>}, {transform_indices = @transform_5, window_bounds = array<i64: 1, 1, 1, 8>}]} {
    %c0 = arith.constant 0 : index
    %c0_0 = arith.constant 0 : index
    %c0_1 = arith.constant 0 : index
    %c0_2 = arith.constant 0 : index
    %0 = vector.load %arg2[%c0, %c0_0, %c0_1, %c0_2] : memref<4x8x8x4xf32, #tpu.memory_space<vmem>>, vector<4x8x8x4xf32>
    %cst = arith.constant 0.000000e+00 : f32
    %1 = vector.broadcast %cst : f32 to vector<4x10x10x4xf32>
    %c0_3 = arith.constant 0 : index
    %c0_4 = arith.constant 0 : index
    %c0_5 = arith.constant 0 : index
    %c0_6 = arith.constant 0 : index
    %2 = vector.load %arg8[%c0_3, %c0_4, %c0_5, %c0_6] : memref<4x10x10x4xf32, #tpu.memory_space<vmem>>, vector<4x10x10x4xf32>
    tpu.vector_store %arg8[%c0_3, %c0_4, %c0_5, %c0_6], %1 {strides = array<i32>} : memref<4x10x10x4xf32, #tpu.memory_space<vmem>>, vector<4x10x10x4xf32>,
    %c0_7 = arith.constant 0 : index
    %c1 = arith.constant 1 : index
    %c1_8 = arith.constant 1 : index
    %c0_9 = arith.constant 0 : index
    %3 = vector.load %arg8[%c0_7, %c1, %c1_8, %c0_9] : memref<4x10x10x4xf32, #tpu.memory_space<vmem>>, vector<4x8x8x4xf32>
    tpu.vector_store %arg8[%c0_7, %c1, %c1_8, %c0_9], %0 {strides = array<i32>} : memref<4x10x10x4xf32, #tpu.memory_space<vmem>>, vector<4x8x8x4xf32>,
    %c0_10 = arith.constant 0 : index
    %c0_11 = arith.constant 0 : index
    %c0_12 = arith.constant 0 : index
    %c0_13 = arith.constant 0 : index
    %4 = vector.load %arg8[%c0_10, %c0_11, %c0_12, %c0_13] : memref<4x10x10x4xf32, #tpu.memory_space<vmem>>, vector<4x10x10x4xf32>
    %cst_14 = arith.constant 0.000000e+00 : f32
    %5 = vector.broadcast %cst_14 : f32 to vector<256x8xf32>
    %c0_15 = arith.constant 0 : index
    %c0_16 = arith.constant 0 : index
    %6 = vector.load %arg9[%c0_15, %c0_16] : memref<256x8xf32, #tpu.memory_space<vmem>>, vector<256x8xf32>
    tpu.vector_store %arg9[%c0_15, %c0_16], %5 {strides = array<i32>} : memref<256x8xf32, #tpu.memory_space<vmem>>, vector<256x8xf32>,
    %7 = vector.extract_strided_slice %4 {offsets = [0, 0, 0, 0], sizes = [4, 8, 8, 4], strides = [1, 1, 1, 1]} : vector<4x10x10x4xf32> to vector<4x8x8x4xf32>
    %8 = vector.shape_cast %7 : vector<4x8x8x4xf32> to vector<256x4xf32>
    %c0_17 = arith.constant 0 : index
    %c0_18 = arith.constant 0 : index
    %9 = vector.load %arg9[%c0_17, %c0_18] : memref<256x8xf32, #tpu.memory_space<vmem>>, vector<256x8xf32>
    %c0_19 = arith.constant 0 : index
    %c0_20 = arith.constant 0 : index
    %c0_21 = arith.constant 0 : index
    %c0_22 = arith.constant 0 : index
    %10 = vector.load %arg3[%c0_19, %c0_20, %c0_21, %c0_22] : memref<3x3x4x8xf32, #tpu.memory_space<vmem>>, vector<1x1x4x8xf32>
    %11 = vector.shape_cast %10 : vector<1x1x4x8xf32> to vector<4x8xf32>
    %cst_23 = arith.constant dense<0.000000e+00> : vector<256x8xf32>
    %12 = tpu.matmul %8, %11, %cst_23 {dimension_numbers = #tpu.dot_dimension_numbers<[1], [0], [0], [1], [0, 0, 1, 1], [], []>} : vector<256x4xf32>, vector<4x8xf32>, vector<256x8xf32> -> vector<256x8xf32>
    %13 = arith.addf %9, %12 : vector<256x8xf32>
    %c0_24 = arith.constant 0 : index
    %c0_25 = arith.constant 0 : index
    %14 = vector.load %arg9[%c0_24, %c0_25] : memref<256x8xf32, #tpu.memory_space<vmem>>, vector<256x8xf32>
    tpu.vector_store %arg9[%c0_24, %c0_25], %13 {strides = array<i32>} : memref<256x8xf32, #tpu.memory_space<vmem>>, vector<256x8xf32>,
    %15 = vector.extract_strided_slice %4 {offsets = [0, 0, 1, 0], sizes = [4, 8, 8, 4], strides = [1, 1, 1, 1]} : vector<4x10x10x4xf32> to vector<4x8x8x4xf32>
    %16 = vector.shape_cast %15 : vector<4x8x8x4xf32> to vector<256x4xf32>
    %c0_26 = arith.constant 0 : index
    %c0_27 = arith.constant 0 : index
    %17 = vector.load %arg9[%c0_26, %c0_27] : memref<256x8xf32, #tpu.memory_space<vmem>>, vector<256x8xf32>
    %c0_28 = arith.constant 0 : index
    %c1_29 = arith.constant 1 : index
    %c0_30 = arith.constant 0 : index
    %c0_31 = arith.constant 0 : index
    %18 = vector.load %arg3[%c0_28, %c1_29, %c0_30, %c0_31] : memref<3x3x4x8xf32, #tpu.memory_space<vmem>>, vector<1x1x4x8xf32>
    %19 = vector.shape_cast %18 : vector<1x1x4x8xf32> to vector<4x8xf32>
    %cst_32 = arith.constant dense<0.000000e+00> : vector<256x8xf32>
    %20 = tpu.matmul %16, %19, %cst_32 {dimension_numbers = #tpu.dot_dimension_numbers<[1], [0], [0], [1], [0, 0, 1, 1], [], []>} : vector<256x4xf32>, vector<4x8xf32>, vector<256x8xf32> -> vector<256x8xf32>
    %21 = arith.addf %17, %20 : vector<256x8xf32>
    %c0_33 = arith.constant 0 : index
    %c0_34 = arith.constant 0 : index
    %22 = vector.load %arg9[%c0_33, %c0_34] : memref<256x8xf32, #tpu.memory_space<vmem>>, vector<256x8xf32>
    tpu.vector_store %arg9[%c0_33, %c0_34], %21 {strides = array<i32>} : memref<256x8xf32, #tpu.memory_space<vmem>>, vector<256x8xf32>,
    %23 = vector.extract_strided_slice %4 {offsets = [0, 0, 2, 0], sizes = [4, 8, 8, 4], strides = [1, 1, 1, 1]} : vector<4x10x10x4xf32> to vector<4x8x8x4xf32>
    %24 = vector.shape_cast %23 : vector<4x8x8x4xf32> to vector<256x4xf32>
    %c0_35 = arith.constant 0 : index
    %c0_36 = arith.constant 0 : index
    %25 = vector.load %arg9[%c0_35, %c0_36] : memref<256x8xf32, #tpu.memory_space<vmem>>, vector<256x8xf32>
    %c0_37 = arith.constant 0 : index
    %c2 = arith.constant 2 : index
    %c0_38 = arith.constant 0 : index
    %c0_39 = arith.constant 0 : index
    %26 = vector.load %arg3[%c0_37, %c2, %c0_38, %c0_39] : memref<3x3x4x8xf32, #tpu.memory_space<vmem>>, vector<1x1x4x8xf32>
    %27 = vector.shape_cast %26 : vector<1x1x4x8xf32> to vector<4x8xf32>
    %cst_40 = arith.constant dense<0.000000e+00> : vector<256x8xf32>
    %28 = tpu.matmul %24, %27, %cst_40 {dimension_numbers = #tpu.dot_dimension_numbers<[1], [0], [0], [1], [0, 0, 1, 1], [], []>} : vector<256x4xf32>, vector<4x8xf32>, vector<256x8xf32> -> vector<256x8xf32>
    %29 = arith.addf %25, %28 : vector<256x8xf32>
    %c0_41 = arith.constant 0 : index
    %c0_42 = arith.constant 0 : index
    %30 = vector.load %arg9[%c0_41, %c0_42] : memref<256x8xf32, #tpu.memory_space<vmem>>, vector<256x8xf32>
    tpu.vector_store %arg9[%c0_41, %c0_42], %29 {strides = array<i32>} : memref<256x8xf32, #tpu.memory_space<vmem>>, vector<256x8xf32>,
    %31 = vector.extract_strided_slice %4 {offsets = [0, 1, 0, 0], sizes = [4, 8, 8, 4], strides = [1, 1, 1, 1]} : vector<4x10x10x4xf32> to vector<4x8x8x4xf32>
    %32 = vector.shape_cast %31 : vector<4x8x8x4xf32> to vector<256x4xf32>
    %c0_43 = arith.constant 0 : index
    %c0_44 = arith.constant 0 : index
    %33 = vector.load %arg9[%c0_43, %c0_44] : memref<256x8xf32, #tpu.memory_space<vmem>>, vector<256x8xf32>
    %c1_45 = arith.constant 1 : index
    %c0_46 = arith.constant 0 : index
    %c0_47 = arith.constant 0 : index
    %c0_48 = arith.constant 0 : index
    %34 = vector.load %arg3[%c1_45, %c0_46, %c0_47, %c0_48] : memref<3x3x4x8xf32, #tpu.memory_space<vmem>>, vector<1x1x4x8xf32>
    %35 = vector.shape_cast %34 : vector<1x1x4x8xf32> to vector<4x8xf32>
    %cst_49 = arith.constant dense<0.000000e+00> : vector<256x8xf32>
    %36 = tpu.matmul %32, %35, %cst_49 {dimension_numbers = #tpu.dot_dimension_numbers<[1], [0], [0], [1], [0, 0, 1, 1], [], []>} : vector<256x4xf32>, vector<4x8xf32>, vector<256x8xf32> -> vector<256x8xf32>
    %37 = arith.addf %33, %36 : vector<256x8xf32>
    %c0_50 = arith.constant 0 : index
    %c0_51 = arith.constant 0 : index
    %38 = vector.load %arg9[%c0_50, %c0_51] : memref<256x8xf32, #tpu.memory_space<vmem>>, vector<256x8xf32>
    tpu.vector_store %arg9[%c0_50, %c0_51], %37 {strides = array<i32>} : memref<256x8xf32, #tpu.memory_space<vmem>>, vector<256x8xf32>,
    %39 = vector.extract_strided_slice %4 {offsets = [0, 1, 1, 0], sizes = [4, 8, 8, 4], strides = [1, 1, 1, 1]} : vector<4x10x10x4xf32> to vector<4x8x8x4xf32>
    %40 = vector.shape_cast %39 : vector<4x8x8x4xf32> to vector<256x4xf32>
    %c0_52 = arith.constant 0 : index
    %c0_53 = arith.constant 0 : index
    %41 = vector.load %arg9[%c0_52, %c0_53] : memref<256x8xf32, #tpu.memory_space<vmem>>, vector<256x8xf32>
    %c1_54 = arith.constant 1 : index
    %c1_55 = arith.constant 1 : index
    %c0_56 = arith.constant 0 : index
    %c0_57 = arith.constant 0 : index
    %42 = vector.load %arg3[%c1_54, %c1_55, %c0_56, %c0_57] : memref<3x3x4x8xf32, #tpu.memory_space<vmem>>, vector<1x1x4x8xf32>
    %43 = vector.shape_cast %42 : vector<1x1x4x8xf32> to vector<4x8xf32>
    %cst_58 = arith.constant dense<0.000000e+00> : vector<256x8xf32>
    %44 = tpu.matmul %40, %43, %cst_58 {dimension_numbers = #tpu.dot_dimension_numbers<[1], [0], [0], [1], [0, 0, 1, 1], [], []>} : vector<256x4xf32>, vector<4x8xf32>, vector<256x8xf32> -> vector<256x8xf32>
    %45 = arith.addf %41, %44 : vector<256x8xf32>
    %c0_59 = arith.constant 0 : index
    %c0_60 = arith.constant 0 : index
    %46 = vector.load %arg9[%c0_59, %c0_60] : memref<256x8xf32, #tpu.memory_space<vmem>>, vector<256x8xf32>
    tpu.vector_store %arg9[%c0_59, %c0_60], %45 {strides = array<i32>} : memref<256x8xf32, #tpu.memory_space<vmem>>, vector<256x8xf32>,
    %47 = vector.extract_strided_slice %4 {offsets = [0, 1, 2, 0], sizes = [4, 8, 8, 4], strides = [1, 1, 1, 1]} : vector<4x10x10x4xf32> to vector<4x8x8x4xf32>
    %48 = vector.shape_cast %47 : vector<4x8x8x4xf32> to vector<256x4xf32>
    %c0_61 = arith.constant 0 : index
    %c0_62 = arith.constant 0 : index
    %49 = vector.load %arg9[%c0_61, %c0_62] : memref<256x8xf32, #tpu.memory_space<vmem>>, vector<256x8xf32>
    %c1_63 = arith.constant 1 : index
    %c2_64 = arith.constant 2 : index
    %c0_65 = arith.constant 0 : index
    %c0_66 = arith.constant 0 : index
    %50 = vector.load %arg3[%c1_63, %c2_64, %c0_65, %c0_66] : memref<3x3x4x8xf32, #tpu.memory_space<vmem>>, vector<1x1x4x8xf32>
    %51 = vector.shape_cast %50 : vector<1x1x4x8xf32> to vector<4x8xf32>
    %cst_67 = arith.constant dense<0.000000e+00> : vector<256x8xf32>
    %52 = tpu.matmul %48, %51, %cst_67 {dimension_numbers = #tpu.dot_dimension_numbers<[1], [0], [0], [1], [0, 0, 1, 1], [], []>} : vector<256x4xf32>, vector<4x8xf32>, vector<256x8xf32> -> vector<256x8xf32>
    %53 = arith.addf %49, %52 : vector<256x8xf32>
    %c0_68 = arith.constant 0 : index
    %c0_69 = arith.constant 0 : index
    %54 = vector.load %arg9[%c0_68, %c0_69] : memref<256x8xf32, #tpu.memory_space<vmem>>, vector<256x8xf32>
    tpu.vector_store %arg9[%c0_68, %c0_69], %53 {strides = array<i32>} : memref<256x8xf32, #tpu.memory_space<vmem>>, vector<256x8xf32>,
    %55 = vector.extract_strided_slice %4 {offsets = [0, 2, 0, 0], sizes = [4, 8, 8, 4], strides = [1, 1, 1, 1]} : vector<4x10x10x4xf32> to vector<4x8x8x4xf32>
    %56 = vector.shape_cast %55 : vector<4x8x8x4xf32> to vector<256x4xf32>
    %c0_70 = arith.constant 0 : index
    %c0_71 = arith.constant 0 : index
    %57 = vector.load %arg9[%c0_70, %c0_71] : memref<256x8xf32, #tpu.memory_space<vmem>>, vector<256x8xf32>
    %c2_72 = arith.constant 2 : index
    %c0_73 = arith.constant 0 : index
    %c0_74 = arith.constant 0 : index
    %c0_75 = arith.constant 0 : index
    %58 = vector.load %arg3[%c2_72, %c0_73, %c0_74, %c0_75] : memref<3x3x4x8xf32, #tpu.memory_space<vmem>>, vector<1x1x4x8xf32>
    %59 = vector.shape_cast %58 : vector<1x1x4x8xf32> to vector<4x8xf32>
    %cst_76 = arith.constant dense<0.000000e+00> : vector<256x8xf32>
    %60 = tpu.matmul %56, %59, %cst_76 {dimension_numbers = #tpu.dot_dimension_numbers<[1], [0], [0], [1], [0, 0, 1, 1], [], []>} : vector<256x4xf32>, vector<4x8xf32>, vector<256x8xf32> -> vector<256x8xf32>
    %61 = arith.addf %57, %60 : vector<256x8xf32>
    %c0_77 = arith.constant 0 : index
    %c0_78 = arith.constant 0 : index
    %62 = vector.load %arg9[%c0_77, %c0_78] : memref<256x8xf32, #tpu.memory_space<vmem>>, vector<256x8xf32>
    tpu.vector_store %arg9[%c0_77, %c0_78], %61 {strides = array<i32>} : memref<256x8xf32, #tpu.memory_space<vmem>>, vector<256x8xf32>,
    %63 = vector.extract_strided_slice %4 {offsets = [0, 2, 1, 0], sizes = [4, 8, 8, 4], strides = [1, 1, 1, 1]} : vector<4x10x10x4xf32> to vector<4x8x8x4xf32>
    %64 = vector.shape_cast %63 : vector<4x8x8x4xf32> to vector<256x4xf32>
    %c0_79 = arith.constant 0 : index
    %c0_80 = arith.constant 0 : index
    %65 = vector.load %arg9[%c0_79, %c0_80] : memref<256x8xf32, #tpu.memory_space<vmem>>, vector<256x8xf32>
    %c2_81 = arith.constant 2 : index
    %c1_82 = arith.constant 1 : index
    %c0_83 = arith.constant 0 : index
    %c0_84 = arith.constant 0 : index
    %66 = vector.load %arg3[%c2_81, %c1_82, %c0_83, %c0_84] : memref<3x3x4x8xf32, #tpu.memory_space<vmem>>, vector<1x1x4x8xf32>
    %67 = vector.shape_cast %66 : vector<1x1x4x8xf32> to vector<4x8xf32>
    %cst_85 = arith.constant dense<0.000000e+00> : vector<256x8xf32>
    %68 = tpu.matmul %64, %67, %cst_85 {dimension_numbers = #tpu.dot_dimension_numbers<[1], [0], [0], [1], [0, 0, 1, 1], [], []>} : vector<256x4xf32>, vector<4x8xf32>, vector<256x8xf32> -> vector<256x8xf32>
    %69 = arith.addf %65, %68 : vector<256x8xf32>
    %c0_86 = arith.constant 0 : index
    %c0_87 = arith.constant 0 : index
    %70 = vector.load %arg9[%c0_86, %c0_87] : memref<256x8xf32, #tpu.memory_space<vmem>>, vector<256x8xf32>
    tpu.vector_store %arg9[%c0_86, %c0_87], %69 {strides = array<i32>} : memref<256x8xf32, #tpu.memory_space<vmem>>, vector<256x8xf32>,
    %71 = vector.extract_strided_slice %4 {offsets = [0, 2, 2, 0], sizes = [4, 8, 8, 4], strides = [1, 1, 1, 1]} : vector<4x10x10x4xf32> to vector<4x8x8x4xf32>
    %72 = vector.shape_cast %71 : vector<4x8x8x4xf32> to vector<256x4xf32>
    %c0_88 = arith.constant 0 : index
    %c0_89 = arith.constant 0 : index
    %73 = vector.load %arg9[%c0_88, %c0_89] : memref<256x8xf32, #tpu.memory_space<vmem>>, vector<256x8xf32>
    %c2_90 = arith.constant 2 : index
    %c2_91 = arith.constant 2 : index
    %c0_92 = arith.constant 0 : index
    %c0_93 = arith.constant 0 : index
    %74 = vector.load %arg3[%c2_90, %c2_91, %c0_92, %c0_93] : memref<3x3x4x8xf32, #tpu.memory_space<vmem>>, vector<1x1x4x8xf32>
    %75 = vector.shape_cast %74 : vector<1x1x4x8xf32> to vector<4x8xf32>
    %cst_94 = arith.constant dense<0.000000e+00> : vector<256x8xf32>
    %76 = tpu.matmul %72, %75, %cst_94 {dimension_numbers = #tpu.dot_dimension_numbers<[1], [0], [0], [1], [0, 0, 1, 1], [], []>} : vector<256x4xf32>, vector<4x8xf32>, vector<256x8xf32> -> vector<256x8xf32>
    %77 = arith.addf %73, %76 : vector<256x8xf32>
    %c0_95 = arith.constant 0 : index
    %c0_96 = arith.constant 0 : index
    %78 = vector.load %arg9[%c0_95, %c0_96] : memref<256x8xf32, #tpu.memory_space<vmem>>, vector<256x8xf32>
    tpu.vector_store %arg9[%c0_95, %c0_96], %77 {strides = array<i32>} : memref<256x8xf32, #tpu.memory_space<vmem>>, vector<256x8xf32>,
    %c0_97 = arith.constant 0 : index
    %c0_98 = arith.constant 0 : index
    %79 = vector.load %arg9[%c0_97, %c0_98] : memref<256x8xf32, #tpu.memory_space<vmem>>, vector<256x8xf32>
    %c0_99 = arith.constant 0 : index
    %c0_100 = arith.constant 0 : index
    %80 = vector.load %arg4[%c0_99, %c0_100] : memref<1x8xf32, #tpu.memory_space<vmem>>, vector<1x8xf32>
    %81 = vector.broadcast %80 : vector<1x8xf32> to vector<256x8xf32>
    %82 = arith.addf %79, %81 : vector<256x8xf32>
    %c0_101 = arith.constant 0 : index
    %c0_102 = arith.constant 0 : index
    %c0_103 = arith.constant 0 : index
    %83 = vector.load %arg5[%c0_101, %c0_102, %c0_103] : memref<1x256x8xf32, #tpu.memory_space<vmem>>, vector<1x256x8xf32>
    %84 = vector.shape_cast %83 : vector<1x256x8xf32> to vector<256x8xf32>
    %85 = vector.shape_cast %82 : vector<256x8xf32> to vector<1x256x8xf32>
    tpu.vector_store %arg5[%c0_101, %c0_102, %c0_103], %85 {strides = array<i32>} : memref<1x256x8xf32, #tpu.memory_space<vmem>>, vector<1x256x8xf32>,
    %cst_104 = arith.constant dense<0.000000e+00> : vector<8xf32>
    %86 = vector.multi_reduction <add>, %82, %cst_104 [0] : vector<256x8xf32> to vector<8xf32>
    %87 = vector.shape_cast %86 : vector<8xf32> to vector<1x8xf32>
    %88 = vector.shape_cast %87 : vector<1x8xf32> to vector<1x1x1x8xf32>
    %c0_105 = arith.constant 0 : index
    %c0_106 = arith.constant 0 : index
    %c0_107 = arith.constant 0 : index
    %c0_108 = arith.constant 0 : index
    %89 = vector.load %arg6[%c0_105, %c0_106, %c0_107, %c0_108] : memref<1x1x1x8xf32, #tpu.memory_space<vmem>>, vector<1x1x1x8xf32>
    tpu.vector_store %arg6[%c0_105, %c0_106, %c0_107, %c0_108], %88 {strides = array<i32>} : memref<1x1x1x8xf32, #tpu.memory_space<vmem>>, vector<1x1x1x8xf32>,
    %90 = arith.mulf %82, %82 : vector<256x8xf32>
    %cst_109 = arith.constant dense<0.000000e+00> : vector<8xf32>
    %91 = vector.multi_reduction <add>, %90, %cst_109 [0] : vector<256x8xf32> to vector<8xf32>
    %92 = vector.shape_cast %91 : vector<8xf32> to vector<1x8xf32>
    %93 = vector.shape_cast %92 : vector<1x8xf32> to vector<1x1x1x8xf32>
    %c0_110 = arith.constant 0 : index
    %c0_111 = arith.constant 0 : index
    %c0_112 = arith.constant 0 : index
    %c0_113 = arith.constant 0 : index
    %94 = vector.load %arg7[%c0_110, %c0_111, %c0_112, %c0_113] : memref<1x1x1x8xf32, #tpu.memory_space<vmem>>, vector<1x1x1x8xf32>
    tpu.vector_store %arg7[%c0_110, %c0_111, %c0_112, %c0_113], %93 {strides = array<i32>} : memref<1x1x1x8xf32, #tpu.memory_space<vmem>>, vector<1x1x1x8xf32>,
    return
  }
  func.func @transform_0(%arg0: i32, %arg1: i32) -> (i32, i32, i32, i32) {
    %c1_i32 = arith.constant 1 : i32
    %0 = arith.muli %arg0, %c1_i32 : i32
    %1 = arith.addi %0, %arg1 : i32
    %c0_i32 = arith.constant 0 : i32
    %c0_i32_0 = arith.constant 0 : i32
    %c0_i32_1 = arith.constant 0 : i32
    %c0_i32_2 = arith.constant 0 : i32
    return %1, %c0_i32, %c0_i32_0, %c0_i32_1 : i32, i32, i32, i32
  }
  func.func @transform_1(%arg0: i32, %arg1: i32) -> (i32, i32, i32, i32) {
    %c0_i32 = arith.constant 0 : i32
    %c0_i32_0 = arith.constant 0 : i32
    %c0_i32_1 = arith.constant 0 : i32
    %c0_i32_2 = arith.constant 0 : i32
    %c0_i32_3 = arith.constant 0 : i32
    return %c0_i32, %c0_i32_0, %c0_i32_1, %c0_i32_2 : i32, i32, i32, i32
  }
  func.func @transform_2(%arg0: i32, %arg1: i32) -> (i32, i32) {
    %c0_i32 = arith.constant 0 : i32
    %c0_i32_0 = arith.constant 0 : i32
    %c0_i32_1 = arith.constant 0 : i32
    return %c0_i32, %c0_i32_0 : i32, i32
  }
  func.func @transform_3(%arg0: i32, %arg1: i32) -> (i32, i32, i32) {
    %c0_i32 = arith.constant 0 : i32
    %c0_i32_0 = arith.constant 0 : i32
    return %arg0, %arg1, %c0_i32 : i32, i32, i32
  }
  func.func @transform_4(%arg0: i32, %arg1: i32) -> (i32, i32, i32, i32) {
    %c0_i32 = arith.constant 0 : i32
    %c0_i32_0 = arith.constant 0 : i32
    %c0_i32_1 = arith.constant 0 : i32
    return %arg0, %arg1, %c0_i32, %c0_i32_0 : i32, i32, i32, i32
  }
  func.func @transform_5(%arg0: i32, %arg1: i32) -> (i32, i32, i32, i32) {
    %c0_i32 = arith.constant 0 : i32
    %c0_i32_0 = arith.constant 0 : i32
    %c0_i32_1 = arith.constant 0 : i32
    return %arg0, %arg1, %c0_i32, %c0_i32_0 : i32, i32, i32, i32
  }
}

</mosaic_0001>

<bundles_post_ra>
// kernel: tpu_custom_call.1
= control target key start
LH: loop header
LB: loop body
LE: loop exit
PB: predicated region body
PF: predicated region fallthrough
CT: control target
= control target key end

     0   :  { %11 = vsyncpa [#allocation5], 0  ;;  %s7783_s0 = inlined_call_operand.vmem [shape: f32[8,8,8,4], index: 0, kind: input, shape index: {}]   ;;  %s7784_s1 = inlined_call_operand.vmem [shape: f32[3,3,4,8], index: 1, kind: input, shape index: {}]   ;;  %s7785_s2 = inlined_call_operand.vmem [shape: f32[1,8], index: 2, kind: input, shape index: {}]   ;;  %s7786_s3 = inlined_call_operand.vmem [shape: f32[2,256,8], index: 3, kind: output, shape index: {0}]   ;;  %s7787_s4 = inlined_call_operand.hbm [shape: f32[2,1,1,8], index: 4, kind: output, shape index: {1}]   ;;  %s7788_s5 = inlined_call_operand.hbm [shape: f32[2,1,1,8], index: 5, kind: output, shape index: {2}]  }
   0x1   :  { %13 = vsyncpa [#allocation5 + $0x1], 0 }
   0x2   :  { %14 = vsyncpa [#allocation7], 0 }
   0x3   :  { %16 = vsyncpa [#allocation7 + $0x1], 0  ;;  %s5779_s18 = smov 0   ;;  %s5781_s19 = smov 0  }
   0x4   :  { %s5783_s20 = smov 0   ;;  %s5785_s21 = smov 0  }
   0x5   :  { %s5787_s22 = smov 0   ;;  %s5789_s23 = smov 0  }
   0x6 LB: > { %s4490_s24 = sadd.s32 4294967295, %s5744_s23   ;;  %s4491_s25 = sadd.s32 4294967294, %s5744_s23   ;;  %s5744_s23 = sphi %s5789_s23, %s22_s23   ;;  %s5740_s22 = sphi %s5787_s22, %s7955_s22   ;;  %s5736_s21 = sphi %s5785_s21, %s7954_s21   ;;  %s5732_s20 = sphi %s5783_s20, %s7953_s20   ;;  %s5728_s19 = sphi %s5781_s19, %s7952_s19   ;;  %s5724_s18 = sphi %s5779_s18, %s7951_s18  }
   0x7   : > { %s34_s26 = sadd.s32 1, %s5740_s22  ;;  %s141_s27 = sadd.s32 1, %s5732_s20 }
   0x8   : > { %p36_p0 = scmp.ge.s32.totalorder %s34_s26, 2  ;;  %p151_p1 = scmp.ne.s32.totalorder %s5732_s20, %s5728_s19 }
   0x9   : > { %p152_p2 = scmp.eq.s32.totalorder %s4490_s24, 1  ;;  %p157_p3 = scmp.ne.s32.totalorder %s5728_s19, %s5724_s18 }
   0xa   : > { %s7957_s26 = smov (%p36_p0, %s34_s26), 0  ;;  %p158_p5 = scmp.eq.s32.totalorder %s4491_s25, 1 }
   0xb   : > { %p5819_p4 = por %p152_p2, %p151_p1  ;;  %s136_s29 = ssub.s32 %s5740_s22, %s7957_s26 }
   0xc   : > { %p4494_p6 = scmp.ge.s32.totalorder %s5744_s23, 1  ;;  %p139_p7 = scmp.eq.s32.totalorder %s136_s29, 0 }
   0xd   : > { %p5826_p8 = por %p158_p5, %p157_p3  ;;  %p222_p9 = scmp.lt.s32.totalorder %s5744_s23, 3 }
   0xe   : > { %s5832_s6 = scalar_select %p139_p7, %s5732_s20, %s141_s27  }
   0xf   : > { %p223_p10 = pnand %p4494_p6, %p222_p9 }
  0x11   : > { %226 = sbr.rel (%p223_p10) target bundleno = 650 (0x28a), region = 32 }
  0x18   : > { %v5837_v0 = vld [vmem:[%s7784_s1] sm:$0xf]  ;;  %vm672_vm0 = vcmask 1043456   ;;  %vm315_vm1 = vcmask 31744   ;;  %s4495_s9 = sshll.u32 %s5736_s21, 2  ;;  %v7789_v1 = vmov 0.0  }
  0x19   : > { %5559 = vmatprep.subr.msk.mxu1 %vm672_vm0, %v5837_v0  ;;  %357 = vst.msk [vmem:[#allocation2 + $0x140] sm:$0xff] %vm315_vm1, %v7789_v1  ;;  %316 = vst.msk [vmem:[#allocation2] sm:$0xff] %vm315_vm1, %v7789_v1  ;;  %v5925_v2 = vld [vmem:[%s7784_s1 + $0x4] sm:$0xf]  ;;  %p5929_p11 = scmp.lt.s32.totalorder %s4495_s9, 7  ;;  %vm317_vm2 = vcmask 25600   ;;  %5109 = vmatprep.subr.msk.mxu0 %vm672_vm0, %v5837_v0 }
  0x1a   : > { %319 = vst.msk [vmem:[#allocation2 + $0x10] sm:$0xff] %vm315_vm1, %v7789_v1  ;;  %321 = vst.msk [vmem:[#allocation2 + $0x20] sm:$0xff] %vm315_vm1, %v7789_v1  ;;  %v5938_v3 = vld [vmem:[%s7784_s1 + $0x8] sm:$0xf]  ;;  %5560 = vmatpush3.msk.msra.mxu1 %vm672_vm0, %v5837_v0  ;;  %5110 = vmatpush3.msk.msra.mxu0 %vm672_vm0, %v5837_v0  ;;  %v6090_v27 = vld [vmem:[%s7784_s1 + $0xc] sm:$0xf] }
  0x1b   : > { %323 = vst.msk [vmem:[#allocation2 + $0x30] sm:$0xff] %vm315_vm1, %v7789_v1  ;;  %325 = vst.msk [vmem:[#allocation2 + $0x40] sm:$0xff] %vm315_vm1, %v7789_v1  ;;  %5159 = vmatprep.subr.msk.mxu1 %vm672_vm0, %v5925_v2  ;;  %s7959_s9 = smov (!%p5929_p11, %s4495_s9), 7  ;;  %5209 = vmatprep.subr.msk.mxu0 %vm672_vm0, %v5938_v3  ;;  %v6099_v30 = vld [vmem:[%s7784_s1 + $0x10] sm:$0xf]  ;;  %vm997_vm3 = vcmask 1046528  }
  0x1c   : > { %327 = vst.msk [vmem:[#allocation2 + $0x50] sm:$0xff] %vm315_vm1, %v7789_v1  ;;  %329 = vst.msk [vmem:[#allocation2 + $0x60] sm:$0xff] %vm315_vm1, %v7789_v1  ;;  %s4810_s15 = sshll.u32 %s7959_s9, 6  ;;  %vm1484_vm4 = vcmask 1045504   ;;  %vm510_vm5 = vcmask 64512   ;;  %p274_p12 = scmp.lt.s32.totalorder %s5736_s21, 1 }
  0x1d   : > { %331 = vst.msk [vmem:[#allocation2 + $0x70] sm:$0xff] %vm315_vm1, %v7789_v1  ;;  %333 = vst.msk [vmem:[#allocation2 + $0x80] sm:$0xff] %vm315_vm1, %v7789_v1  ;;  %s6035_s24 = scalar_lea.vmem %s7783_s0, %s4810_s15  ;;  %s7689_s8 = sand.u32 1, %s5728_s19   ;;  %vm4211_vm6 = vcmask 57344  }
  0x1e   : > { %335 = vst.msk [vmem:[#allocation2 + $0x90] sm:$0xff] %vm315_vm1, %v7789_v1  ;;  %337 = vst.msk [vmem:[#allocation2 + $0xa0] sm:$0xff] %vm315_vm1, %v7789_v1  ;;  %v299_v4 = vld [vmem:[%s6035_s24 + $0x80] sm:$0xff]  ;;  %v300_v5 = vld [vmem:[%s6035_s24 + $0x88] sm:$0xff]  ;;  %s7403_s16 = scalar_select %p274_p12, %s5736_s21, 1 }
  0x1f   : > { %339 = vst.msk [vmem:[#allocation2 + $0xb0] sm:$0xff] %vm315_vm1, %v7789_v1  ;;  %341 = vst.msk [vmem:[#allocation2 + $0xc0] sm:$0xff] %vm315_vm1, %v7789_v1  ;;  %v301_v6 = vld [vmem:[%s6035_s24 + $0x90] sm:$0xff]  ;;  %v302_v8 = vld [vmem:[%s6035_s24 + $0x98] sm:$0xff]  ;;  %s4806_s9 = sshll.u32 %s5736_s21, 4  ;;  %s257_s10 = scalar_lea.vmem [#allocation4], %s7689_s8 }
  0x20   : > { %343 = vst.msk [vmem:[#allocation2 + $0xd0] sm:$0xff] %vm315_vm1, %v7789_v1  ;;  %345 = vst.msk [vmem:[#allocation2 + $0xe0] sm:$0xff] %vm315_vm1, %v7789_v1  ;;  %v6040_v7 = vld [vmem:[#allocation2 + $0x140] sm:$0xff]  ;;  %v304_v12 = vld [vmem:[%s6035_s24 + $0xa8] sm:$0xff]  ;;  %s4811_s17 = sshll.u32 %s7403_s16, 8  ;;  %s4346_s11 = sshll.u32 %s257_s10, 4  ;;  %s7703_s11 = int_to_ptr.vmem [resolvable:$true] %s4346_s11 }
  0x21   : > { %347 = vst.msk [vmem:[#allocation2 + $0xf0] sm:$0xff] %vm315_vm1, %v7789_v1  ;;  %349 = vst.msk [vmem:[#allocation2 + $0x100] sm:$0xff] %vm315_vm1, %v7789_v1  ;;  %v6046_v9 = vld [vmem:[#allocation2] sm:$0xff]  ;;  %5135 = vmatprep.mubr.msk.f32.mxu1 %vm315_vm1, %v6040_v7  ;;  %v284_v13 = vld [vmem:[%s6035_s24 + $0x8] sm:$0xff]  ;;  %s7421_s7 = scalar_lea.vmem %s7786_s3, %s4811_s17  ;;  %s7701_s14 = scalar_lea.hbm %s7787_s4, %s4806_s9 }
  0x22   : > { %351 = vst.msk [vmem:[#allocation2 + $0x110] sm:$0xff] %vm315_vm1, %v7789_v1  ;;  %353 = vst.msk [vmem:[#allocation2 + $0x120] sm:$0xff] %vm315_vm1, %v7789_v1  ;;  %5111 = vmatprep.mubr.msk.f32.mxu0 %vm315_vm1, %v6046_v9  ;;  %v303_v10 = vld [vmem:[%s6035_s24 + $0xa0] sm:$0xff]  ;;  %v305_v14 = vld [vmem:[%s6035_s24 + $0xb0] sm:$0xff]  ;;  %s4325_s15 = scalar_lea.sflag [#allocation5], %s7689_s8  ;;  %s5634_s16 = scalar_lea.vmem %s7703_s11, 16 }
  0x23   : > { %355 = vst.msk [vmem:[#allocation2 + $0x130] sm:$0xff] %vm315_vm1, %v7789_v1  ;;  %359 = vst.msk [vmem:[#allocation2 + $0x150] sm:$0xff] %vm315_vm1, %v7789_v1  ;;  %v283_v11 = vld [vmem:[%s6035_s24] sm:$0xff]  ;;  %v285_v15 = vld [vmem:[%s6035_s24 + $0x10] sm:$0xff]  ;;  %p5635_p13 = scmp.ne.s32.totalorder %s7703_s11, %s5634_s16  ;;  %s5747_s17 = smov [#allocation4]  }
  0x24   : > { %361 = vst.msk [vmem:[#allocation2 + $0x160] sm:$0xff] %vm315_vm1, %v7789_v1  ;;  %363 = vst.msk [vmem:[#allocation2 + $0x170] sm:$0xff] %vm315_vm1, %v7789_v1  ;;  %v286_v16 = vld [vmem:[%s6035_s24 + $0x18] sm:$0xff]  ;;  %v307_v17 = vld [vmem:[%s6035_s24 + $0xc0] sm:$0xff] }
  0x25   : > { %365 = vst.msk [vmem:[#allocation2 + $0x180] sm:$0xff] %vm315_vm1, %v7789_v1  ;;  %367 = vst.msk [vmem:[#allocation2 + $0x190] sm:$0xff] %vm315_vm1, %v7789_v1  ;;  %v287_v18 = vld [vmem:[%s6035_s24 + $0x20] sm:$0xff]  ;;  %v308_v19 = vld [vmem:[%s6035_s24 + $0xc8] sm:$0xff]  ;;  %p5636_p0 = pnand %p5635_p13, %p5819_p4 }
  0x26   : > { %369 = vst.msk [vmem:[#allocation2 + $0x1a0] sm:$0xff] %vm315_vm1, %v7789_v1  ;;  %371 = vst.msk [vmem:[#allocation2 + $0x1b0] sm:$0xff] %vm315_vm1, %v7789_v1  ;;  %v288_v20 = vld [vmem:[%s6035_s24 + $0x28] sm:$0xff]  ;;  %v309_v21 = vld [vmem:[%s6035_s24 + $0xd0] sm:$0xff] }
  0x27   : > { %373 = vst.msk [vmem:[#allocation2 + $0x1c0] sm:$0xff] %vm315_vm1, %v7789_v1  ;;  %375 = vst.msk [vmem:[#allocation2 + $0x1d0] sm:$0xff] %vm315_vm1, %v7789_v1  ;;  %v289_v22 = vld [vmem:[%s6035_s24 + $0x30] sm:$0xff]  ;;  %v310_v23 = vld [vmem:[%s6035_s24 + $0xd8] sm:$0xff]  ;;  %p5637_p1 = pneg %p5636_p0 }
  0x28   : > { %377 = vst.msk [vmem:[#allocation2 + $0x1e0] sm:$0xff] %vm315_vm1, %v7789_v1  ;;  %379 = vst.msk [vmem:[#allocation2 + $0x1f0] sm:$0xff] %vm315_vm1, %v7789_v1  ;;  %v311_v24 = vld [vmem:[%s6035_s24 + $0xe0] sm:$0xff]  ;;  %v312_v29 = vld [vmem:[%s6035_s24 + $0xe8] sm:$0xff] }
  0x29   : > { %381 = vst.msk [vmem:[#allocation2 + $0x200] sm:$0xff] %vm315_vm1, %v7789_v1  ;;  %383 = vst.msk [vmem:[#allocation2 + $0x210] sm:$0xff] %vm315_vm1, %v7789_v1  ;;  %v291_v28 = vld [vmem:[%s6035_s24 + $0x40] sm:$0xff]  ;;  %v292_v33 = vld [vmem:[%s6035_s24 + $0x48] sm:$0xff] }
  0x2a   : > { %385 = vst.msk [vmem:[#allocation2 + $0x220] sm:$0xff] %vm315_vm1, %v7789_v1  ;;  %387 = vst.msk [vmem:[#allocation2 + $0x230] sm:$0xff] %vm315_vm1, %v7789_v1  ;;  %v313_v37 = vld [vmem:[%s6035_s24 + $0xf0] sm:$0xff]  ;;  %v294_v43 = vld [vmem:[%s6035_s24 + $0x58] sm:$0xff] }
  0x2b   : > { %389 = vst.msk [vmem:[#allocation2 + $0x240] sm:$0xff] %vm315_vm1, %v7789_v1  ;;  %391 = vst.msk [vmem:[#allocation2 + $0x250] sm:$0xff] %vm315_vm1, %v7789_v1  ;;  %v293_v41 = vld [vmem:[%s6035_s24 + $0x50] sm:$0xff]  ;;  %v295_v45 = vld [vmem:[%s6035_s24 + $0x60] sm:$0xff] }
  0x2c   : > { %393 = vst.msk [vmem:[#allocation2 + $0x260] sm:$0xff] %vm315_vm1, %v7789_v1  ;;  %395 = vst.msk [vmem:[#allocation2 + $0x270] sm:$0xff] %vm315_vm1, %v7789_v1  ;;  %v296_v47 = vld [vmem:[%s6035_s24 + $0x68] sm:$0xff]  ;;  %v297_v49 = vld [vmem:[%s6035_s24 + $0x70] sm:$0xff] }
  0x2d   : > { %360 = vst.msk [vmem:[#allocation2 + $0x158] sm:$0x3] %vm317_vm2, %v7789_v1  ;;  %318 = vst.msk [vmem:[#allocation2 + $0x8] sm:$0x3] %vm317_vm2, %v7789_v1  ;;  %v6175_v51 = vld [vmem:[#allocation2 + $0xa0] sm:$0xff]  ;;  %v290_v53 = vld [vmem:[%s6035_s24 + $0x38] sm:$0xff] }
  0x2e   : > { %320 = vst.msk [vmem:[#allocation2 + $0x18] sm:$0x3] %vm317_vm2, %v7789_v1  ;;  %322 = vst.msk [vmem:[#allocation2 + $0x28] sm:$0x3] %vm317_vm2, %v7789_v1  ;;  %v298_v55 = vld [vmem:[%s6035_s24 + $0x78] sm:$0xff] }
  0x2f   : > { %324 = vst.msk [vmem:[#allocation2 + $0x38] sm:$0x3] %vm317_vm2, %v7789_v1  ;;  %326 = vst.msk [vmem:[#allocation2 + $0x48] sm:$0x3] %vm317_vm2, %v7789_v1  ;;  %v6162_v48 = vld [vmem:[#allocation2 + $0x1e0] sm:$0xff]  ;;  %v306_v58 = vld [vmem:[%s6035_s24 + $0xb8] sm:$0xff] }
  0x30   : > { %328 = vst.msk [vmem:[#allocation2 + $0x58] sm:$0x3] %vm317_vm2, %v7789_v1  ;;  %330 = vst.msk [vmem:[#allocation2 + $0x68] sm:$0x3] %vm317_vm2, %v7789_v1  ;;  %v314_v63 = vld [vmem:[%s6035_s24 + $0xf8] sm:$0xff]  ;;  %s5638_s24 = sshll.u32 %s5747_s17, 4  ;;  %s5639_s24 = int_to_ptr.vmem [resolvable:$false] %s5638_s24 }
  0x31   : > { %332 = vst.msk [vmem:[#allocation2 + $0x78] sm:$0x3] %vm317_vm2, %v7789_v1  ;;  %334 = vst.msk [vmem:[#allocation2 + $0x88] sm:$0x3] %vm317_vm2, %v7789_v1  ;;  %s5640_s25 = scalar_lea.vmem %s5639_s24, 32  ;;  %p5641_p2 = scmp.lt.s32.totalorder %s7703_s11, %s5639_s24 }
  0x32   : > { %336 = vst.msk [vmem:[#allocation2 + $0x98] sm:$0x3] %vm317_vm2, %v7789_v1  ;;  %338 = vst.msk [vmem:[#allocation2 + $0xa8] sm:$0x3] %vm317_vm2, %v7789_v1  ;;  %p5642_p3 = scmp.lt.s32.totalorder %s5640_s25, %s5634_s16 }
  0x33   : > { %340 = vst.msk [vmem:[#allocation2 + $0xb8] sm:$0x3] %vm317_vm2, %v7789_v1  ;;  %342 = vst.msk [vmem:[#allocation2 + $0xc8] sm:$0x3] %vm317_vm2, %v7789_v1 }
  0x34   : > { %344 = vst.msk [vmem:[#allocation2 + $0xd8] sm:$0x3] %vm317_vm2, %v7789_v1  ;;  %346 = vst.msk [vmem:[#allocation2 + $0xe8] sm:$0x3] %vm317_vm2, %v7789_v1  ;;  %v431_v62 = vld [vmem:[#allocation2 + $0x8] sm:$0x3]  ;;  %p5643_p5 = por %p5642_p3, %p5641_p2 }
  0x35   : > { %348 = vst.msk [vmem:[#allocation2 + $0xf8] sm:$0x3] %vm317_vm2, %v7789_v1  ;;  %350 = vst.msk [vmem:[#allocation2 + $0x108] sm:$0x3] %vm317_vm2, %v7789_v1 }
  0x36   : > { %352 = vst.msk [vmem:[#allocation2 + $0x118] sm:$0x3] %vm317_vm2, %v7789_v1  ;;  %354 = vst.msk [vmem:[#allocation2 + $0x128] sm:$0x3] %vm317_vm2, %v7789_v1  ;;  %p5644_p6 = pnand %p5643_p5, %p5637_p1 }
  0x37   : > { %356 = vst.msk [vmem:[#allocation2 + $0x138] sm:$0x3] %vm317_vm2, %v7789_v1  ;;  %358 = vst.msk [vmem:[#allocation2 + $0x148] sm:$0x3] %vm317_vm2, %v7789_v1 }
  0x38   : > { %362 = vst.msk [vmem:[#allocation2 + $0x168] sm:$0x3] %vm317_vm2, %v7789_v1  ;;  %364 = vst.msk [vmem:[#allocation2 + $0x178] sm:$0x3] %vm317_vm2, %v7789_v1 }
  0x39   : > { %366 = vst.msk [vmem:[#allocation2 + $0x188] sm:$0x3] %vm317_vm2, %v7789_v1  ;;  %368 = vst.msk [vmem:[#allocation2 + $0x198] sm:$0x3] %vm317_vm2, %v7789_v1 }
  0x3a   : > { %370 = vst.msk [vmem:[#allocation2 + $0x1a8] sm:$0x3] %vm317_vm2, %v7789_v1  ;;  %372 = vst.msk [vmem:[#allocation2 + $0x1b8] sm:$0x3] %vm317_vm2, %v7789_v1 }
  0x3b   : > { %374 = vst.msk [vmem:[#allocation2 + $0x1c8] sm:$0x3] %vm317_vm2, %v7789_v1  ;;  %376 = vst.msk [vmem:[#allocation2 + $0x1d8] sm:$0x3] %vm317_vm2, %v7789_v1 }
  0x3c   : > { %378 = vst.msk [vmem:[#allocation2 + $0x1e8] sm:$0x3] %vm317_vm2, %v7789_v1  ;;  %380 = vst.msk [vmem:[#allocation2 + $0x1f8] sm:$0x3] %vm317_vm2, %v7789_v1 }
  0x3d   : > { %382 = vst.msk [vmem:[#allocation2 + $0x208] sm:$0x3] %vm317_vm2, %v7789_v1  ;;  %384 = vst.msk [vmem:[#allocation2 + $0x218] sm:$0x3] %vm317_vm2, %v7789_v1 }
  0x3e   : > { %386 = vst.msk [vmem:[#allocation2 + $0x228] sm:$0x3] %vm317_vm2, %v7789_v1  ;;  %388 = vst.msk [vmem:[#allocation2 + $0x238] sm:$0x3] %vm317_vm2, %v7789_v1 }
  0x3f   : > { %390 = vst.msk [vmem:[#allocation2 + $0x248] sm:$0x3] %vm317_vm2, %v7789_v1  ;;  %392 = vst.msk [vmem:[#allocation2 + $0x258] sm:$0x3] %vm317_vm2, %v7789_v1 }
  0x40   : > { %394 = vst.msk [vmem:[#allocation2 + $0x268] sm:$0x3] %vm317_vm2, %v7789_v1  ;;  %396 = vst.msk [vmem:[#allocation2 + $0x278] sm:$0x3] %vm317_vm2, %v7789_v1 }
  0x41   : > { %414 = vst.msk [vmem:[#allocation2 + $0x151] sm:$0xff] %vm315_vm1, %v299_v4  ;;  %415 = vst.msk [vmem:[#allocation2 + $0x161] sm:$0xff] %vm315_vm1, %v300_v5  ;;  %v999_v5 = vrot.slane %v431_v62, 1 }
  0x42   : > { %416 = vst.msk [vmem:[#allocation2 + $0x171] sm:$0xff] %vm315_vm1, %v301_v6  ;;  %417 = vst.msk [vmem:[#allocation2 + $0x181] sm:$0xff] %vm315_vm1, %v302_v8 }
  0x43   : > { %418 = vst.msk [vmem:[#allocation2 + $0x191] sm:$0xff] %vm315_vm1, %v303_v10  ;;  %398 = vst.msk [vmem:[#allocation2 + $0x11] sm:$0xff] %vm315_vm1, %v283_v11  ;;  %v1485_v11 = vrot.slane %v6046_v9, 2 }
  0x44   : > { %419 = vst.msk [vmem:[#allocation2 + $0x1a1] sm:$0xff] %vm315_vm1, %v304_v12  ;;  %399 = vst.msk [vmem:[#allocation2 + $0x21] sm:$0xff] %vm315_vm1, %v284_v13  ;;  %v1486_v13 = vrot.slane %v431_v62, 2 }
  0x45   : > { %420 = vst.msk [vmem:[#allocation2 + $0x1b1] sm:$0xff] %vm315_vm1, %v305_v14  ;;  %400 = vst.msk [vmem:[#allocation2 + $0x31] sm:$0xff] %vm315_vm1, %v285_v15 }
  0x46   : > { %401 = vst.msk [vmem:[#allocation2 + $0x41] sm:$0xff] %vm315_vm1, %v286_v16  ;;  %422 = vst.msk [vmem:[#allocation2 + $0x1f1] sm:$0xff] %vm315_vm1, %v307_v17 }
  0x47   : > { %402 = vst.msk [vmem:[#allocation2 + $0x51] sm:$0xff] %vm315_vm1, %v287_v18  ;;  %423 = vst.msk [vmem:[#allocation2 + $0x201] sm:$0xff] %vm315_vm1, %v308_v19 }
  0x48   : > { %403 = vst.msk [vmem:[#allocation2 + $0x61] sm:$0xff] %vm315_vm1, %v288_v20  ;;  %424 = vst.msk [vmem:[#allocation2 + $0x211] sm:$0xff] %vm315_vm1, %v309_v21  ;;  %v6081_v25 = vld [vmem:[#allocation2 + $0x150] sm:$0xff]  ;;  %v6083_v26 = vld [vmem:[#allocation2 + $0x160] sm:$0xff] }
  0x49   : > { %404 = vst.msk [vmem:[#allocation2 + $0x71] sm:$0xff] %vm315_vm1, %v289_v22  ;;  %7860 = vst [vmem:[#allocation10_spill] sm:$0xff] %v6081_v25  ;;  %5136 = vmatmul.mubr.msk.f32.vlgmr.msra.gmra.mrb[0].mxu1 %vm315_vm1, %v6081_v25  ;;  %v6105_v31 = vld [vmem:[#allocation2 + $0x170] sm:$0xff]  ;;  %v6112_v34 = vld [vmem:[#allocation2 + $0x180] sm:$0xff] }
  0x4a   : > { %425 = vst.msk [vmem:[#allocation2 + $0x221] sm:$0xff] %vm315_vm1, %v310_v23  ;;  %426 = vst.msk [vmem:[#allocation2 + $0x231] sm:$0xff] %vm315_vm1, %v311_v24  ;;  %5160 = vmatpush3.msk.msra.mxu1 %vm672_vm0, %v5925_v2  ;;  %5138 = vmatprep.mubr.msk.f32.mxu1 %vm315_vm1, %v6083_v26  ;;  %v6107_v32 = vld [vmem:[#allocation2 + $0x10] sm:$0xff]  ;;  %v433_v6 = vld [vmem:[#allocation2 + $0x18] sm:$0x3]  ;;  %v1487_v24 = vsel %vm1484_vm4, %v1485_v11, %v1486_v13 }
  0x4b   : > { %406 = vst.msk [vmem:[#allocation2 + $0xb1] sm:$0xff] %vm315_vm1, %v291_v28  ;;  %427 = vst.msk [vmem:[#allocation2 + $0x241] sm:$0xff] %vm315_vm1, %v312_v29  ;;  %5112 = vmatmul.mubr.msk.f32.vlgmr.msra.gmra.mrb[0].mxu0 %vm315_vm1, %v6107_v32  ;;  %v6116_v35 = vld [vmem:[#allocation2 + $0x20] sm:$0xff]  ;;  %5259 = vmatprep.subr.msk.mxu1 %vm672_vm0, %v6090_v27  ;;  %v6137_v39 = vld [vmem:[#allocation2 + $0x190] sm:$0xff]  ;;  %v1001_v14 = vrot.slane %v6107_v32, 1  ;;  %v1002_v16 = vrot.slane %v433_v6, 1 }
  0x4c   : > { %7861 = vst [vmem:[#allocation11_spill] sm:$0xff] %v6112_v34  ;;  %407 = vst.msk [vmem:[#allocation2 + $0xc1] sm:$0xff] %vm315_vm1, %v292_v33  ;;  %5210 = vmatpush3.msk.msra.mxu0 %vm672_vm0, %v5938_v3  ;;  %5114 = vmatprep.mubr.msk.f32.mxu0 %vm315_vm1, %v6116_v35  ;;  %v6125_v36 = vld [vmem:[#allocation2 + $0x30] sm:$0xff]  ;;  %v6139_v40 = vld [vmem:[#allocation2 + $0x1a0] sm:$0xff]  ;;  %v998_v3 = vrot.slane %v6046_v9, 1  ;;  %v1004_v9 = vrot.slane %v6116_v35, 1 }
  0x4d   : > { %5139 = vmatmul.mubr.msk.f32.gmra.mrb[2].mxu1 %vm315_vm1, %v6105_v31  ;;  %v6130_v38 = vld [vmem:[#allocation2 + $0x40] sm:$0xff]  ;;  %428 = vst.msk [vmem:[#allocation2 + $0x251] sm:$0xff] %vm315_vm1, %v313_v37  ;;  %5309 = vmatprep.subr.msk.mxu0 %vm672_vm0, %v6099_v30  ;;  %7862 = vst [vmem:[#allocation12_spill] sm:$0xff] %v6137_v39  ;;  %v6158_v46 = vld [vmem:[#allocation2 + $0x1b0] sm:$0xff]  ;;  %v1488_v20 = vrot.slane %v6107_v32, 2  ;;  %v1489_v23 = vrot.slane %v433_v6, 2  ;;  %v6255_v33 = vsel %vm997_vm3, %v1001_v14, %v1002_v16 }
  0x4e   : > { %5141 = vmatprep.mubr.msk.f32.mxu1 %vm315_vm1, %v6112_v34  ;;  %7863 = vst [vmem:[#allocation13_spill] sm:$0xff] %v6139_v40  ;;  %v6146_v42 = vld [vmem:[#allocation2 + $0x50] sm:$0xff]  ;;  %408 = vst.msk [vmem:[#allocation2 + $0xd1] sm:$0xff] %vm315_vm1, %v293_v41  ;;  %v6182_v54 = vld [vmem:[#allocation2 + $0x200] sm:$0xff]  ;;  %v1000_v17 = vsel %vm997_vm3, %v998_v3, %v999_v5  ;;  %v1491_v28 = vrot.slane %v6116_v35, 2  ;;  %v1007_v37 = vrot.slane %v6125_v36, 1 }
  0x4f   : > { %5115 = vmatmul.mubr.msk.f32.gmra.mrb[2].mxu0 %vm315_vm1, %v6125_v36  ;;  %v6152_v44 = vld [vmem:[#allocation2 + $0x60] sm:$0xff]  ;;  %409 = vst.msk [vmem:[#allocation2 + $0xe1] sm:$0xff] %vm315_vm1, %v294_v43  ;;  %410 = vst.msk [vmem:[#allocation2 + $0xf1] sm:$0xff] %vm315_vm1, %v295_v45  ;;  %v6179_v52 = vld [vmem:[#allocation2 + $0x1f0] sm:$0xff]  ;;  %v1010_v45 = vrot.slane %v6130_v38, 1  ;;  %v1497_v5 = vrot.slane %v6130_v38, 2 }
  0x50   : > { %5117 = vmatprep.mubr.msk.f32.mxu0 %vm315_vm1, %v6130_v38  ;;  %411 = vst.msk [vmem:[#allocation2 + $0x101] sm:$0xff] %vm315_vm1, %v296_v47  ;;  %v6170_v50 = vld [vmem:[#allocation2 + $0x70] sm:$0xff]  ;;  %412 = vst.msk [vmem:[#allocation2 + $0x111] sm:$0xff] %vm315_vm1, %v297_v49  ;;  %v435_v10 = vld [vmem:[#allocation2 + $0x28] sm:$0x3]  ;;  %v1013_v11 = vrot.slane %v6146_v42, 1 }
  0x51   : > { %5142 = vmatmul.mubr.msk.f32.gmra.mrb[4].mxu1 %vm315_vm1, %v6137_v39  ;;  %7864 = vst [vmem:[#allocation14_spill] sm:$0xff] %v6179_v52  ;;  %405 = vst.msk [vmem:[#allocation2 + $0x81] sm:$0xff] %vm315_vm1, %v290_v53  ;;  %v6200_v59 = vld [vmem:[#allocation2 + $0x210] sm:$0xff]  ;;  %v6203_v60 = vld [vmem:[#allocation2 + $0x220] sm:$0xff]  ;;  %v1005_v18 = vrot.slane %v435_v10, 1  ;;  %v1492_v29 = vrot.slane %v435_v10, 2  ;;  %v6266_v53 = vsel %vm1484_vm4, %v1488_v20, %v1489_v23 }
  0x52   : > { %5144 = vmatprep.mubr.msk.f32.mxu1 %vm315_vm1, %v6139_v40  ;;  %v6190_v56 = vld [vmem:[#allocation2 + $0xb0] sm:$0xff]  ;;  %413 = vst.msk [vmem:[#allocation2 + $0x121] sm:$0xff] %vm315_vm1, %v298_v55  ;;  %421 = vst.msk [vmem:[#allocation2 + $0x1c1] sm:$0xff] %vm315_vm1, %v306_v58  ;;  %v6222_v4 = vld [vmem:[#allocation2 + $0x240] sm:$0xff]  ;;  %v1494_v58 = vrot.slane %v6125_v36, 2  ;;  %v1500_v20 = vrot.slane %v6146_v42, 2 }
  0x53   : > { %5118 = vmatmul.mubr.msk.f32.gmra.mrb[4].mxu0 %vm315_vm1, %v6146_v42  ;;  %v6195_v57 = vld [vmem:[#allocation2 + $0xc0] sm:$0xff]  ;;  %7865 = vst [vmem:[#allocation15_spill] sm:$0xff] %v6203_v60  ;;  %429 = vst.msk [vmem:[#allocation2 + $0x261] sm:$0xff] %vm315_vm1, %v314_v63  ;;  %v6219_v2 = vld [vmem:[#allocation2 + $0x230] sm:$0xff]  ;;  %v6259_v43 = vsel %vm997_vm3, %v1004_v9, %v1005_v18  ;;  %v6277_v3 = vsel %vm1484_vm4, %v1491_v28, %v1492_v29  ;;  %v1019_v29 = vrot.slane %v6170_v50, 1 }
  0x54   : > { %5120 = vmatprep.mubr.msk.f32.mxu0 %vm315_vm1, %v6152_v44  ;;  %v6238_v15 = vld [vmem:[#allocation2 + $0x250] sm:$0xff]  ;;  %v437_v19 = vld [vmem:[#allocation2 + $0x38] sm:$0x3]  ;;  %v439_v22 = vld [vmem:[#allocation2 + $0x48] sm:$0x3]  ;;  %7867 = vst [vmem:[#allocation17_spill] sm:$0xff] %v6266_v53 }
  0x55   : > { %5145 = vmatmul.mubr.msk.f32.gmra.mrb[6].mxu1 %vm315_vm1, %v6158_v46  ;;  %v6209_v61 = vld [vmem:[#allocation2 + $0xd0] sm:$0xff]  ;;  %v1008_v41 = vrot.slane %v437_v19, 1  ;;  %v1011_v47 = vrot.slane %v439_v22, 1  ;;  %v441_v49 = vld [vmem:[#allocation2 + $0x58] sm:$0x3]  ;;  %v1495_v62 = vrot.slane %v437_v19, 2 }
  0x56   : > { %5147 = vmatprep.mubr.msk.f32.mxu1 %vm315_vm1, %v6162_v48  ;;  %v6214_v0 = vld [vmem:[#allocation2 + $0xe0] sm:$0xff]  ;;  %v6228_v8 = vld [vmem:[#allocation2 + $0xf0] sm:$0xff]  ;;  %v443_v55 = vld [vmem:[#allocation2 + $0x68] sm:$0x3]  ;;  %7868 = vst [vmem:[#allocation18_spill] sm:$0xff] %v6277_v3  ;;  %v1498_v6 = vrot.slane %v439_v22, 2 }
  0x57   : > { %5121 = vmatmul.mubr.msk.f32.gmra.mrb[6].mxu0 %vm315_vm1, %v6170_v50  ;;  %v6233_v12 = vld [vmem:[#allocation2 + $0x100] sm:$0xff]  ;;  %v6247_v21 = vld [vmem:[#allocation2 + $0x110] sm:$0xff]  ;;  %v6285_v10 = vsel %vm997_vm3, %v1007_v37, %v1008_v41  ;;  %v1014_v13 = vrot.slane %v441_v49, 1  ;;  %v6291_v14 = vld [vmem:[%s7784_s1 + $0x18] sm:$0xf]  ;;  %v6294_v16 = vsel %vm997_vm3, %v1010_v45, %v1011_v47  ;;  %v6306_v18 = vsel %vm1484_vm4, %v1494_v58, %v1495_v62 }
  0x58   : > { %5123 = vmatprep.mubr.msk.f32.mxu0 %vm315_vm1, %v6175_v51  ;;  %7866 = vst [vmem:[#allocation16_spill] sm:$0xff] %v6233_v12  ;;  %v6272_v63 = vld [vmem:[%s7784_s1 + $0x14] sm:$0xf]  ;;  %v445_v9 = vld [vmem:[#allocation2 + $0x78] sm:$0x3]  ;;  %7869 = vst [vmem:[#allocation19_spill] sm:$0xff] %v6306_v18  ;;  %v6312_v23 = vsel %vm1484_vm4, %v1497_v5, %v1498_v6 }
  0x59   : > { %5148 = vmatmul.mubr.msk.f32.gmra.mrb[8].mxu1 %vm315_vm1, %v6179_v52  ;;  %v451_v19 = vld [vmem:[#allocation2 + $0xa8] sm:$0x3]  ;;  %v1501_v22 = vrot.slane %v441_v49, 2  ;;  %7870 = vst [vmem:[#allocation20_spill] sm:$0xff] %v6312_v23  ;;  %v1504_v28 = vrot.slane %v443_v55, 2  ;;  %v1020_v37 = vrot.slane %v445_v9, 1 }
  0x5a   : > { %5150 = vmatprep.mubr.msk.f32.mxu1 %vm315_vm1, %v6182_v54  ;;  %v1022_v41 = vrot.slane %v6175_v51, 1  ;;  %v1023_v47 = vrot.slane %v451_v19, 1  ;;  %v453_v49 = vld [vmem:[#allocation2 + $0xb8] sm:$0x3]  ;;  %v455_v58 = vld [vmem:[#allocation2 + $0xc8] sm:$0x3] }
  0x5b   : > { %5124 = vmatmul.mubr.msk.f32.gmra.mrb[8].mxu0 %vm315_vm1, %v6190_v56  ;;  %v1506_v62 = vrot.slane %v6170_v50, 2  ;;  %v1507_v5 = vrot.slane %v445_v9, 2  ;;  %v1509_v6 = vrot.slane %v6175_v51, 2  ;;  %v1028_v51 = vrot.slane %v6195_v57, 1 }
  0x5c   : > { %5126 = vmatprep.mubr.msk.f32.mxu0 %vm315_vm1, %v6195_v57  ;;  %v1024_v9 = vsel %vm997_vm3, %v1022_v41, %v1023_v47  ;;  %v1515_v47 = vrot.slane %v6195_v57, 2  ;;  %v1516_v1 = vrot.slane %v455_v58, 2 }
  0x5d   : > { %5151 = vmatmul.mubr.msk.f32.gmra.mrb[10].mxu1 %vm315_vm1, %v6200_v59 }
  0x5e   : > { %5153 = vmatprep.mubr.msk.f32.mxu1 %vm315_vm1, %v6203_v60 }
  0x5f   : > { %5127 = vmatmul.mubr.msk.f32.gmra.mrb[10].mxu0 %vm315_vm1, %v6209_v61 }
  0x60   : > { %5129 = vmatprep.mubr.msk.f32.mxu0 %vm315_vm1, %v6214_v0 }
  0x61   : > { %5154 = vmatmul.mubr.msk.f32.gmra.mrb[12].mxu1 %vm315_vm1, %v6219_v2 }
  0x62   : > { %5156 = vmatprep.mubr.msk.f32.mxu1 %vm315_vm1, %v6222_v4 }
  0x63   : > { %5130 = vmatmul.mubr.msk.f32.gmra.mrb[12].mxu0 %vm315_vm1, %v6228_v8 }
  0x64   : > { %5132 = vmatprep.mubr.msk.f32.mxu0 %vm315_vm1, %v6233_v12 }
  0x65   : > { %5157 = vmatmul.mubr.msk.f32.gmra.mrb[14].mxu1 %vm315_vm1, %v6238_v15 }
  0x66   : > { %5161 = vmatprep.mubr.msk.f32.mxu1 %vm315_vm1, %v1000_v17  ;;  %v1017_v17 = vrot.slane %v443_v55, 1  ;;  %v6332_v55 = vsel %vm1484_vm4, %v1500_v20, %v1501_v22  ;;  %v1026_v20 = vrot.slane %v453_v49, 1  ;;  %v1029_v22 = vrot.slane %v455_v58, 1 }
  0x67   : > { %5133 = vmatmul.mubr.msk.f32.gmra.mrb[14].mxu0 %vm315_vm1, %v6247_v21  ;;  %7871 = vst [vmem:[#allocation21_spill] sm:$0xff] %v6332_v55 }
  0x68   : > { %5211 = vmatprep.mubr.msk.f32.mxu0 %vm315_vm1, %v1487_v24  ;;  %v1503_v24 = vrot.slane %v6152_v44, 2 }
  0x69   : > { %5162 = vmatmul.mubr.msk.f32.vlgmr.msra.gmra.mrb[16].mxu1 %vm315_vm1, %v6255_v33 }
  0x6a   : > { %5260 = vmatpush3.msk.msra.mxu1 %vm672_vm0, %v6090_v27  ;;  %5164 = vmatprep.mubr.msk.f32.mxu1 %vm315_vm1, %v6259_v43  ;;  %v1016_v27 = vrot.slane %v6152_v44, 1 }
  0x6b   : > { %5212 = vmatmul.mubr.msk.f32.vlgmr.msra.gmra.mrb[16].mxu0 %vm315_vm1, %v6266_v53  ;;  %5359 = vmatprep.subr.msk.mxu1 %vm672_vm0, %v6272_v63 }
  0x6c   : > { %5310 = vmatpush3.msk.msra.mxu0 %vm672_vm0, %v6099_v30  ;;  %5214 = vmatprep.mubr.msk.f32.mxu0 %vm315_vm1, %v6277_v3  ;;  %v6320_v30 = vsel %vm997_vm3, %v1013_v11, %v1014_v13  ;;  %v6325_v45 = vsel %vm997_vm3, %v1016_v27, %v1017_v17  ;;  %v6339_v11 = vsel %vm1484_vm4, %v1503_v24, %v1504_v28  ;;  %v1510_v13 = vrot.slane %v451_v19, 2  ;;  %v457_v24 = vld [vmem:[#allocation2 + $0xd8] sm:$0x3] }
  0x6d   : > { %5165 = vmatmul.mubr.msk.f32.gmra.mrb[18].mxu1 %vm315_vm1, %v6285_v10  ;;  %5409 = vmatprep.subr.msk.mxu0 %vm672_vm0, %v6291_v14  ;;  %7872 = vst [vmem:[#allocation22_spill] sm:$0xff] %v6339_v11  ;;  %v1025_v27 = vrot.slane %v6190_v56, 1  ;;  %v6345_v17 = vsel %vm997_vm3, %v1019_v29, %v1020_v37  ;;  %v1512_v19 = vrot.slane %v6190_v56, 2  ;;  %v6355_v28 = vsel %vm1484_vm4, %v1506_v62, %v1507_v5  ;;  %v459_v29 = vld [vmem:[#allocation2 + $0xe8] sm:$0x3] }
  0x6e   : > { %5167 = vmatprep.mubr.msk.f32.mxu1 %vm315_vm1, %v6294_v16  ;;  %7873 = vst [vmem:[#allocation23_spill] sm:$0xff] %v6355_v28  ;;  %v1513_v37 = vrot.slane %v453_v49, 2  ;;  %v1511_v41 = vsel %vm1484_vm4, %v1509_v6, %v1510_v13  ;;  %v6367_v62 = vsel %vm997_vm3, %v1028_v51, %v1029_v22  ;;  %v1034_v49 = vrot.slane %v6214_v0, 1  ;;  %v461_v6 = vld [vmem:[#allocation2 + $0xf8] sm:$0x3] }
  0x6f   : > { %5215 = vmatmul.mubr.msk.f32.gmra.mrb[18].mxu0 %vm315_vm1, %v6306_v18  ;;  %v1035_v5 = vrot.slane %v459_v29, 1  ;;  %v463_v13 = vld [vmem:[#allocation2 + $0x108] sm:$0x3]  ;;  %v1521_v51 = vrot.slane %v6214_v0, 2  ;;  %v1522_v22 = vrot.slane %v459_v29, 2  ;;  %v1525_v18 = vrot.slane %v461_v6, 2 }
  0x70   : > { %5217 = vmatprep.mubr.msk.f32.mxu0 %vm315_vm1, %v6312_v23  ;;  %v1032_v23 = vrot.slane %v457_v24, 1  ;;  %v6374_v58 = vsel %vm1484_vm4, %v1512_v19, %v1513_v37  ;;  %v1037_v19 = vrot.slane %v6228_v8, 1  ;;  %v1038_v37 = vrot.slane %v461_v6, 1 }
  0x71   : > { %5168 = vmatmul.mubr.msk.f32.gmra.mrb[20].mxu1 %vm315_vm1, %v6320_v30  ;;  %7874 = vst [vmem:[#allocation24_spill] sm:$0xff] %v6374_v58  ;;  %v1046_v6 = vrot.slane %v6040_v7, 1 }
  0x72   : > { %5170 = vmatprep.mubr.msk.f32.mxu1 %vm315_vm1, %v6325_v45 }
  0x73   : > { %5218 = vmatmul.mubr.msk.f32.gmra.mrb[20].mxu0 %vm315_vm1, %v6332_v55  ;;  %v6363_v55 = vsel %vm997_vm3, %v1025_v27, %v1026_v20  ;;  %v1518_v27 = vrot.slane %v6209_v61, 2  ;;  %v1519_v20 = vrot.slane %v457_v24, 2  ;;  %v6390_v24 = vsel %vm997_vm3, %v1034_v49, %v1035_v5 }
  0x74   : > { %5220 = vmatprep.mubr.msk.f32.mxu0 %vm315_vm1, %v6339_v11  ;;  %v1031_v11 = vrot.slane %v6209_v61, 1  ;;  %v6404_v49 = vsel %vm1484_vm4, %v1521_v51, %v1522_v22  ;;  %v1527_v5 = vrot.slane %v6233_v12, 2  ;;  %v473_v22 = vld [vmem:[#allocation2 + $0x158] sm:$0x3] }
  0x75   : > { %5171 = vmatmul.mubr.msk.f32.gmra.mrb[22].mxu1 %vm315_vm1, %v6345_v17  ;;  %v6398_v29 = vsel %vm1484_vm4, %v1518_v27, %v1519_v20  ;;  %7877 = vst [vmem:[#allocation27_spill] sm:$0xff] %v6404_v49  ;;  %v1043_v27 = vrot.slane %v6247_v21, 1 }
  0x76   : > { %5173 = vmatprep.mubr.msk.f32.mxu1 %vm315_vm1, %v1024_v9  ;;  %v6380_v9 = vsel %vm1484_vm4, %v1515_v47, %v1516_v1  ;;  %v1040_v1 = vrot.slane %v6233_v12, 1  ;;  %v1041_v47 = vrot.slane %v463_v13, 1  ;;  %7876 = vst [vmem:[#allocation26_spill] sm:$0xff] %v6398_v29  ;;  %v1533_v12 = vrot.slane %v6040_v7, 2 }
  0x77   : > { %5221 = vmatmul.mubr.msk.f32.gmra.mrb[22].mxu0 %vm315_vm1, %v6355_v28  ;;  %7875 = vst [vmem:[#allocation25_spill] sm:$0xff] %v6380_v9  ;;  %v465_v28 = vld [vmem:[#allocation2 + $0x118] sm:$0x3]  ;;  %v1052_v7 = vrot.slane %v6083_v26, 1 }
  0x78   : > { %5223 = vmatprep.mubr.msk.f32.mxu0 %vm315_vm1, %v1511_v41  ;;  %v6386_v41 = vsel %vm997_vm3, %v1031_v11, %v1032_v23  ;;  %v471_v23 = vld [vmem:[#allocation2 + $0x148] sm:$0x3]  ;;  %v1524_v11 = vrot.slane %v6228_v8, 2  ;;  %v1044_v20 = vrot.slane %v465_v28, 1  ;;  %v6415_v3 = vsel %vm997_vm3, %v1040_v1, %v1041_v47 }
  0x79   : > { %5174 = vmatmul.mubr.msk.f32.gmra.mrb[24].mxu1 %vm315_vm1, %v6363_v55  ;;  %7878 = vst [vmem:[#allocation28_spill] sm:$0xff] %v6415_v3  ;;  %v1047_v51 = vrot.slane %v471_v23, 1  ;;  %v1531_v53 = vrot.slane %v465_v28, 2  ;;  %v1534_v47 = vrot.slane %v471_v23, 2  ;;  %v1536_v23 = vrot.slane %v6081_v25, 2 }
  0x7a   : > { %5176 = vmatprep.mubr.msk.f32.mxu1 %vm315_vm1, %v6367_v62 }
  0x7b   : > { %5224 = vmatmul.mubr.msk.f32.gmra.mrb[24].mxu0 %vm315_vm1, %v6374_v58  ;;  %v1528_v58 = vrot.slane %v463_v13, 2  ;;  %v6422_v13 = vsel %vm1484_vm4, %v1524_v11, %v1525_v18  ;;  %v6435_v18 = vsel %vm997_vm3, %v1043_v27, %v1044_v20  ;;  %v1050_v11 = vrot.slane %v473_v22, 1  ;;  %v479_v27 = vld [vmem:[#allocation2 + $0x188] sm:$0x3] }
  0x7c   : > { %5226 = vmatprep.mubr.msk.f32.mxu0 %vm315_vm1, %v6380_v9  ;;  %v6410_v9 = vsel %vm997_vm3, %v1037_v19, %v1038_v37  ;;  %7879 = vst [vmem:[#allocation29_spill] sm:$0xff] %v6422_v13  ;;  %v475_v19 = vld [vmem:[#allocation2 + $0x168] sm:$0x3]  ;;  %v1530_v37 = vrot.slane %v6247_v21, 2  ;;  %v1048_v28 = vsel %vm997_vm3, %v1046_v6, %v1047_v51  ;;  %v1537_v20 = vrot.slane %v473_v22, 2 }
  0x7d   : > { %5177 = vmatmul.mubr.msk.f32.gmra.mrb[26].mxu1 %vm315_vm1, %v6386_v41  ;;  %v6429_v1 = vsel %vm1484_vm4, %v1527_v5, %v1528_v58  ;;  %v477_v58 = vld [vmem:[#allocation2 + $0x178] sm:$0x3]  ;;  %v1535_v6 = vsel %vm1484_vm4, %v1533_v12, %v1534_v47  ;;  %v1539_v51 = vrot.slane %v6083_v26, 2  ;;  %v1058_v22 = vrot.slane %v6112_v34, 1 }
  0x7e   : > { %5179 = vmatprep.mubr.msk.f32.mxu1 %vm315_vm1, %v6390_v24  ;;  %7880 = vst [vmem:[#allocation30_spill] sm:$0xff] %v6429_v1  ;;  %v6445_v5 = vsel %vm1484_vm4, %v1530_v37, %v1531_v53  ;;  %v1059_v12 = vrot.slane %v479_v27, 1  ;;  %v481_v37 = vld [vmem:[#allocation2 + $0x198] sm:$0x3]  ;;  %v1542_v47 = vrot.slane %v6105_v31, 2 }
  0x7f   : > { %5227 = vmatmul.mubr.msk.f32.gmra.mrb[26].mxu0 %vm315_vm1, %v6398_v29  ;;  %v1049_v29 = vrot.slane %v6081_v25, 1  ;;  %7881 = vst [vmem:[#allocation31_spill] sm:$0xff] %v6445_v5 }
  0x80   : > { %5229 = vmatprep.mubr.msk.f32.mxu0 %vm315_vm1, %v6404_v49  ;;  %v1053_v49 = vrot.slane %v475_v19, 1 }
  0x81   : > { %5180 = vmatmul.mubr.msk.f32.gmra.mrb[28].mxu1 %vm315_vm1, %v6410_v9  ;;  %v6453_v25 = vsel %vm997_vm3, %v1049_v29, %v1050_v11  ;;  %v483_v29 = vld [vmem:[#allocation2 + $0x1a8] sm:$0x3]  ;;  %v1543_v11 = vrot.slane %v477_v58, 2 }
  0x82   : > { %5182 = vmatprep.mubr.msk.f32.mxu1 %vm315_vm1, %v6415_v3  ;;  %v1056_v3 = vrot.slane %v477_v58, 1  ;;  %v6457_v53 = vsel %vm997_vm3, %v1052_v7, %v1053_v49  ;;  %v1546_v7 = vrot.slane %v479_v27, 2  ;;  %v6480_v58 = vsel %vm997_vm3, %v1058_v22, %v1059_v12 }
  0x83   : > { %5230 = vmatmul.mubr.msk.f32.gmra.mrb[28].mxu0 %vm315_vm1, %v6422_v13  ;;  %v1540_v13 = vrot.slane %v475_v19, 2  ;;  %v6464_v19 = vsel %vm1484_vm4, %v1536_v23, %v1537_v20  ;;  %v1061_v23 = vrot.slane %v6137_v39, 1  ;;  %v1062_v20 = vrot.slane %v481_v37, 1  ;;  %7884 = vst [vmem:[#allocation34_spill] sm:$0xff] %v6480_v58 }
  0x84   : > { %5232 = vmatprep.mubr.msk.f32.mxu0 %vm315_vm1, %v6429_v1  ;;  %v1055_v1 = vrot.slane %v6105_v31, 1  ;;  %7882 = vst [vmem:[#allocation32_spill] sm:$0xff] %v6464_v19  ;;  %v6488_v27 = vsel %vm1484_vm4, %v1542_v47, %v1543_v11  ;;  %v1551_v12 = vrot.slane %v6139_v40, 2  ;;  %v1067_v47 = vrot.slane %v6158_v46, 1 }
  0x85   : > { %5183 = vmatmul.mubr.msk.f32.gmra.mrb[30].mxu1 %vm315_vm1, %v6435_v18  ;;  %v6470_v49 = vsel %vm1484_vm4, %v1539_v51, %v1540_v13  ;;  %v1064_v13 = vrot.slane %v6139_v40, 1  ;;  %v1065_v51 = vrot.slane %v483_v29, 1  ;;  %7885 = vst [vmem:[#allocation35_spill] sm:$0xff] %v6488_v27 }
  0x86   : > { %5185 = vmatprep.mubr.msk.f32.mxu1 %vm315_vm1, %v1048_v28  ;;  %7883 = vst [vmem:[#allocation33_spill] sm:$0xff] %v6470_v49  ;;  %v1545_v28 = vrot.slane %v6112_v34, 2  ;;  %v1549_v34 = vrot.slane %v481_v37, 2  ;;  %v1070_v37 = vrot.slane %v6162_v48, 1 }
  0x87   : > { %5233 = vmatmul.mubr.msk.f32.gmra.mrb[30].mxu0 %vm315_vm1, %v6445_v5  ;;  %v485_v5 = vld [vmem:[#allocation2 + $0x1b8] sm:$0x3] }
  0x88   : > { %5235 = vmatprep.mubr.msk.f32.mxu0 %vm315_vm1, %v1535_v6  ;;  %v6476_v6 = vsel %vm997_vm3, %v1055_v1, %v1056_v3  ;;  %v491_v3 = vld [vmem:[#allocation2 + $0x1e8] sm:$0x3]  ;;  %v1548_v1 = vrot.slane %v6137_v39, 2  ;;  %v6494_v22 = vsel %vm1484_vm4, %v1545_v28, %v1546_v7  ;;  %v1068_v11 = vrot.slane %v485_v5, 1  ;;  %v6509_v7 = vld [vmem:[#allocation2 + $0x1f8] sm:$0x3] }
  0x89   : > { %5186 = vmatmul.mubr.msk.f32.gmra.mrb[32].mxu1 %vm315_vm1, %v6453_v25  ;;  %7886 = vst [vmem:[#allocation36_spill] sm:$0xff] %v6494_v22  ;;  %v6505_v39 = vsel %vm997_vm3, %v1064_v13, %v1065_v51  ;;  %v1071_v28 = vrot.slane %v491_v3, 1  ;;  %v1555_v40 = vrot.slane %v485_v5, 2  ;;  %v1557_v13 = vrot.slane %v6162_v48, 2 }
  0x8a   : > { %5188 = vmatprep.mubr.msk.f32.mxu1 %vm315_vm1, %v6457_v53  ;;  %v1076_v48 = vrot.slane %v6182_v54, 1 }
  0x8b   : > { %5236 = vmatmul.mubr.msk.f32.gmra.mrb[32].mxu0 %vm315_vm1, %v6464_v19  ;;  %v1552_v19 = vrot.slane %v483_v29, 2  ;;  %v6514_v29 = vsel %vm1484_vm4, %v1548_v1, %v1549_v34  ;;  %v6529_v34 = vsel %vm997_vm3, %v1067_v47, %v1068_v11  ;;  %v1074_v1 = vrot.slane %v6509_v7, 1  ;;  %v6545_v11 = vld [vmem:[#allocation2 + $0x228] sm:$0x3] }
  0x8c   : > { %5238 = vmatprep.mubr.msk.f32.mxu0 %vm315_vm1, %v6470_v49  ;;  %v6500_v49 = vsel %vm997_vm3, %v1061_v23, %v1062_v20  ;;  %7887 = vst [vmem:[#allocation37_spill] sm:$0xff] %v6514_v29  ;;  %v6516_v23 = vld [vmem:[#allocation2 + $0x208] sm:$0x3]  ;;  %v1554_v20 = vrot.slane %v6158_v46, 2  ;;  %v1072_v5 = vsel %vm997_vm3, %v1070_v37, %v1071_v28  ;;  %v1561_v37 = vrot.slane %v6509_v7, 2 }
  0x8d   : > { %5189 = vmatmul.mubr.msk.f32.gmra.mrb[34].mxu1 %vm315_vm1, %v6476_v6  ;;  %v6523_v51 = vsel %vm1484_vm4, %v1551_v12, %v1552_v19  ;;  %v1077_v19 = vrot.slane %v6516_v23, 1  ;;  %v1560_v12 = vrot.slane %v6179_v52, 2 }
  0x8e   : > { %5191 = vmatprep.mubr.msk.f32.mxu1 %vm315_vm1, %v6480_v58  ;;  %7888 = vst [vmem:[#allocation38_spill] sm:$0xff] %v6523_v51  ;;  %v1073_v58 = vrot.slane %v6179_v52, 1  ;;  %v6543_v47 = vsel %vm1484_vm4, %v1554_v20, %v1555_v40  ;;  %v7890_v52 = vmov 0.0   ;;  %v1082_v20 = vrot.slane %v6203_v60, 1 }
  0x8f   : > { %5239 = vmatmul.mubr.msk.f32.gmra.mrb[34].mxu0 %vm315_vm1, %v6488_v27  ;;  %v1558_v27 = vrot.slane %v491_v3, 2  ;;  %v6537_v3 = vld [vmem:[#allocation2 + $0x218] sm:$0x3]  ;;  %7889 = vst [vmem:[#allocation39_spill] sm:$0xff] %v6543_v47  ;;  %528 = vst.msk [vmem:[#allocation3 + $0x88] sm:$0xff] %vm510_vm5, %v7890_v52 }
  0x90   : > { %5241 = vmatprep.mubr.msk.f32.mxu0 %vm315_vm1, %v6494_v22  ;;  %v1564_v22 = vrot.slane %v6516_v23, 2  ;;  %511 = vst.msk [vmem:[#allocation3] sm:$0xff] %vm510_vm5, %v7890_v52  ;;  %512 = vst.msk [vmem:[#allocation3 + $0x8] sm:$0xff] %vm510_vm5, %v7890_v52  ;;  %v6619_v40 = vsel %vm997_vm3, %v1073_v58, %v1074_v1  ;;  %v1080_v7 = vrot.slane %v6537_v3, 1  ;;  %v6624_v23 = vsel %vm997_vm3, %v1076_v48, %v1077_v19  ;;  %v503_v1 = vld [vmem:[#allocation2 + $0x248] sm:$0x3] }
  0x91   : > { %5192 = vmatmul.mubr.msk.f32.gmra.mrb[36].mxu1 %vm315_vm1, %v6500_v49  ;;  %v1559_v28 = vsel %vm1484_vm4, %v1557_v13, %v1558_v27  ;;  %513 = vst.msk [vmem:[#allocation3 + $0x10] sm:$0xff] %vm510_vm5, %v7890_v52  ;;  %514 = vst.msk [vmem:[#allocation3 + $0x18] sm:$0xff] %vm510_vm5, %v7890_v52  ;;  %v1079_v27 = vrot.slane %v6200_v59, 1  ;;  %v1083_v13 = vrot.slane %v6545_v11, 1  ;;  %v6632_v58 = vsel %vm1484_vm4, %v1560_v12, %v1561_v37 }
  0x92   : > { %5194 = vmatprep.mubr.msk.f32.mxu1 %vm315_vm1, %v6505_v39  ;;  %515 = vst.msk [vmem:[#allocation3 + $0x20] sm:$0xff] %vm510_vm5, %v7890_v52  ;;  %516 = vst.msk [vmem:[#allocation3 + $0x28] sm:$0xff] %vm510_vm5, %v7890_v52  ;;  %v1569_v19 = vrot.slane %v6203_v60, 2  ;;  %v1085_v37 = vrot.slane %v6219_v2, 1  ;;  %v505_v60 = vld [vmem:[#allocation2 + $0x258] sm:$0x3] }
  0x93   : > { %5242 = vmatmul.mubr.msk.f32.gmra.mrb[36].mxu0 %vm315_vm1, %v6514_v29  ;;  %v1563_v29 = vrot.slane %v6182_v54, 2  ;;  %517 = vst.msk [vmem:[#allocation3 + $0x30] sm:$0xff] %vm510_vm5, %v7890_v52  ;;  %518 = vst.msk [vmem:[#allocation3 + $0x38] sm:$0xff] %vm510_vm5, %v7890_v52  ;;  %v6646_v12 = vsel %vm997_vm3, %v1079_v27, %v1080_v7  ;;  %v1572_v27 = vrot.slane %v6219_v2, 2 }
  0x94   : > { %5244 = vmatprep.mubr.msk.f32.mxu0 %vm315_vm1, %v6523_v51  ;;  %519 = vst.msk [vmem:[#allocation3 + $0x40] sm:$0xff] %vm510_vm5, %v7890_v52  ;;  %520 = vst.msk [vmem:[#allocation3 + $0x48] sm:$0xff] %vm510_vm5, %v7890_v52  ;;  %v1567_v51 = vrot.slane %v6537_v3, 2  ;;  %v6650_v3 = vsel %vm997_vm3, %v1082_v20, %v1083_v13  ;;  %v1575_v13 = vrot.slane %v6222_v4, 2 }
  0x95   : > { %5195 = vmatmul.mubr.msk.f32.gmra.mrb[38].mxu1 %vm315_vm1, %v6529_v34  ;;  %521 = vst.msk [vmem:[#allocation3 + $0x50] sm:$0xff] %vm510_vm5, %v7890_v52  ;;  %522 = vst.msk [vmem:[#allocation3 + $0x58] sm:$0xff] %vm510_vm5, %v7890_v52  ;;  %v6639_v48 = vsel %vm1484_vm4, %v1563_v29, %v1564_v22  ;;  %v1088_v22 = vrot.slane %v6222_v4, 1  ;;  %v1089_v29 = vrot.slane %v503_v1, 1 }
  0x96   : > { %523 = vst.msk [vmem:[#allocation3 + $0x60] sm:$0xff] %vm510_vm5, %v7890_v52  ;;  %524 = vst.msk [vmem:[#allocation3 + $0x68] sm:$0xff] %vm510_vm5, %v7890_v52  ;;  %5197 = vmatprep.mubr.msk.f32.mxu1 %vm315_vm1, %v1072_v5  ;;  %v1566_v5 = vrot.slane %v6200_v59, 2 }
  0x97   : > { %525 = vst.msk [vmem:[#allocation3 + $0x70] sm:$0xff] %vm510_vm5, %v7890_v52  ;;  %526 = vst.msk [vmem:[#allocation3 + $0x78] sm:$0xff] %vm510_vm5, %v7890_v52  ;;  %5245 = vmatmul.mubr.msk.f32.gmra.mrb[38].mxu0 %vm315_vm1, %v6543_v47  ;;  %v1570_v47 = vrot.slane %v6545_v11, 2 }
  0x98   : > { %527 = vst.msk [vmem:[#allocation3 + $0x80] sm:$0xff] %vm510_vm5, %v7890_v52  ;;  %529 = vst.msk [vmem:[#allocation3 + $0x90] sm:$0xff] %vm510_vm5, %v7890_v52  ;;  %5247 = vmatprep.mubr.msk.f32.mxu0 %vm315_vm1, %v1559_v28  ;;  %v6658_v11 = vsel %vm1484_vm4, %v1566_v5, %v1567_v51  ;;  %v1091_v51 = vrot.slane %v6238_v15, 1  ;;  %v1092_v5 = vrot.slane %v505_v60, 1 }
  0x99   : > { %530 = vst.msk [vmem:[#allocation3 + $0x98] sm:$0xff] %vm510_vm5, %v7890_v52  ;;  %531 = vst.msk [vmem:[#allocation3 + $0xa0] sm:$0xff] %vm510_vm5, %v7890_v52  ;;  %5198 = vmatmul.mubr.msk.f32.gmra.mrb[40].mxu1 %vm315_vm1, %v6619_v40  ;;  %v6664_v20 = vsel %vm1484_vm4, %v1569_v19, %v1570_v47  ;;  %v1579_v19 = vrot.slane %v505_v60, 2 }
  0x9a   : > { %532 = vst.msk [vmem:[#allocation3 + $0xa8] sm:$0xff] %vm510_vm5, %v7890_v52  ;;  %533 = vst.msk [vmem:[#allocation3 + $0xb0] sm:$0xff] %vm510_vm5, %v7890_v52  ;;  %5200 = vmatprep.mubr.msk.f32.mxu1 %vm315_vm1, %v6624_v23 }
  0x9b   : > { %534 = vst.msk [vmem:[#allocation3 + $0xb8] sm:$0xff] %vm510_vm5, %v7890_v52  ;;  %535 = vst.msk [vmem:[#allocation3 + $0xc0] sm:$0xff] %vm510_vm5, %v7890_v52  ;;  %5248 = vmatmul.mubr.msk.f32.gmra.mrb[40].mxu0 %vm315_vm1, %v6632_v58 }
  0x9c   : > { %536 = vst.msk [vmem:[#allocation3 + $0xc8] sm:$0xff] %vm510_vm5, %v7890_v52  ;;  %537 = vst.msk [vmem:[#allocation3 + $0xd0] sm:$0xff] %vm510_vm5, %v7890_v52  ;;  %5250 = vmatprep.mubr.msk.f32.mxu0 %vm315_vm1, %v6639_v48 }
  0x9d   : > { %538 = vst.msk [vmem:[#allocation3 + $0xd8] sm:$0xff] %vm510_vm5, %v7890_v52  ;;  %539 = vst.msk [vmem:[#allocation3 + $0xe0] sm:$0xff] %vm510_vm5, %v7890_v52  ;;  %5201 = vmatmul.mubr.msk.f32.gmra.mrb[42].mxu1 %vm315_vm1, %v6646_v12 }
  0x9e   : > { %540 = vst.msk [vmem:[#allocation3 + $0xe8] sm:$0xff] %vm510_vm5, %v7890_v52  ;;  %541 = vst.msk [vmem:[#allocation3 + $0xf0] sm:$0xff] %vm510_vm5, %v7890_v52  ;;  %5203 = vmatprep.mubr.msk.f32.mxu1 %vm315_vm1, %v6650_v3 }
  0x9f   : > { %542 = vst.msk [vmem:[#allocation3 + $0xf8] sm:$0xff] %vm510_vm5, %v7890_v52  ;;  %7891 = vst [vmem:[#allocation40_spill] sm:$0xff] %v6624_v23  ;;  %v501_v52 = vld [vmem:[#allocation2 + $0x238] sm:$0x3]  ;;  %5251 = vmatmul.mubr.msk.f32.gmra.mrb[42].mxu0 %vm315_vm1, %v6658_v11 }
  0xa0   : > { %7892 = vst [vmem:[#allocation41_spill] sm:$0xff] %v6632_v58  ;;  %7893 = vst [vmem:[#allocation42_spill] sm:$0xff] %v6639_v48  ;;  %v1086_v28 = vrot.slane %v501_v52, 1  ;;  %v1573_v7 = vrot.slane %v501_v52, 2  ;;  %v1576_v58 = vrot.slane %v503_v1, 2  ;;  %v6674_v52 = vsel %vm997_vm3, %v1088_v22, %v1089_v29  ;;  %5253 = vmatprep.mubr.msk.f32.mxu0 %vm315_vm1, %v6664_v20 }
  0xa1   : > { %7894 = vst [vmem:[#allocation43_spill] sm:$0xff] %v6646_v12  ;;  %7895 = vst [vmem:[#allocation44_spill] sm:$0xff] %v6650_v3  ;;  %v1578_v1 = vrot.slane %v6238_v15, 2 }
  0xa2   : > { %7896 = vst [vmem:[#allocation45_spill] sm:$0xff] %v6658_v11  ;;  %7897 = vst [vmem:[#allocation46_spill] sm:$0xff] %v6664_v20  ;;  %v6670_v48 = vsel %vm997_vm3, %v1085_v37, %v1086_v28  ;;  %v6681_v47 = vsel %vm1484_vm4, %v1572_v27, %v1573_v7  ;;  %v6687_v37 = vsel %vm1484_vm4, %v1575_v13, %v1576_v58  ;;  %v6712_v58 = vld [vmem:[%s7784_s1 + $0x1c] sm:$0xf]  ;;  %v7902_v13 = vld [vmem:[#allocation16_spill] sm:$0xff] }
  0xa3   : > { %7898 = vst [vmem:[#allocation47_spill] sm:$0xff] %v6670_v48  ;;  %7899 = vst [vmem:[#allocation48_spill] sm:$0xff] %v6674_v52  ;;  %5204 = vmatmul.mubr.msk.f32.gmra.mrb[44].mxu1 %vm315_vm1, %v6670_v48  ;;  %v6692_v28 = vsel %vm997_vm3, %v1091_v51, %v1092_v5  ;;  %5254 = vmatmul.mubr.msk.f32.gmra.mrb[44].mxu0 %vm315_vm1, %v6681_v47  ;;  %v6699_v60 = vsel %vm1484_vm4, %v1578_v1, %v1579_v19  ;;  %v7903_v51 = vld [vmem:[#allocation28_spill] sm:$0xff]  ;;  %v7904_v1 = vld [vmem:[#allocation10_spill] sm:$0xff] }
  0xa4   : > { %7900 = vst [vmem:[#allocation49_spill] sm:$0xff] %v6681_v47  ;;  %5206 = vmatprep.mubr.msk.f32.mxu1 %vm315_vm1, %v6674_v52  ;;  %7901 = vst [vmem:[#allocation50_spill] sm:$0xff] %v6692_v28  ;;  %5256 = vmatprep.mubr.msk.f32.mxu0 %vm315_vm1, %v6687_v37  ;;  %v7905_v19 = vld [vmem:[#allocation11_spill] sm:$0xff] }
  0xa7   : > { %5207 = vmatmul.mubr.msk.f32.gmra.mrb[46].mxu1 %vm315_vm1, %v6692_v28  ;;  %5257 = vmatmul.mubr.msk.f32.gmra.mrb[46].mxu0 %vm315_vm1, %v6699_v60 }
  0xa8   : > { %5261 = vmatprep.mubr.msk.f32.mxu1 %vm315_vm1, %v6107_v32  ;;  %5311 = vmatprep.mubr.msk.f32.mxu0 %vm315_vm1, %v6255_v33  ;;  %v6723_v32 = vld [vmem:[%s7784_s1 + $0x20] sm:$0xf]  ;;  %v6735_v33 = vld [vmem:[#allocation2 + $0x88] sm:$0x3] }
  0xa9   : > { %v2314_v22 = vrot.slane %v6735_v33, 1 }
  0xab   : > { %5262 = vmatmul.mubr.msk.f32.vlgmr.msra.gmra.mrb[48].mxu1 %vm315_vm1, %v6116_v35  ;;  %5312 = vmatmul.mubr.msk.f32.vlgmr.msra.gmra.mrb[48].mxu0 %vm315_vm1, %v6259_v43 }
  0xac   : > { %5360 = vmatpush3.msk.msra.mxu1 %vm672_vm0, %v6272_v63  ;;  %5264 = vmatprep.mubr.msk.f32.mxu1 %vm315_vm1, %v6125_v36  ;;  %v6741_v63 = vld [vmem:[#allocation2 + $0x80] sm:$0xff] }
  0xad   : > { %5459 = vmatprep.subr.msk.mxu1 %vm672_vm0, %v6712_v58  ;;  %5410 = vmatpush3.msk.msra.mxu0 %vm672_vm0, %v6291_v14  ;;  %v2313_v14 = vrot.slane %v6741_v63, 1 }
  0xae   : > { %5314 = vmatprep.mubr.msk.f32.mxu0 %vm315_vm1, %v6285_v10  ;;  %5509 = vmatprep.subr.msk.mxu0 %vm672_vm0, %v6723_v32 }
  0xaf   : > { %5265 = vmatmul.mubr.msk.f32.gmra.mrb[50].mxu1 %vm315_vm1, %v6130_v38  ;;  %5315 = vmatmul.mubr.msk.f32.gmra.mrb[50].mxu0 %vm315_vm1, %v6294_v16  ;;  %v6758_v29 = vsel %vm997_vm3, %v2313_v14, %v2314_v22  ;;  %v6819_v14 = vld [vmem:[#allocation2 + $0x1c8] sm:$0x3]  ;;  %v7906_v22 = vld [vmem:[#allocation12_spill] sm:$0xff] }
  0xb0   : > { %5267 = vmatprep.mubr.msk.f32.mxu1 %vm315_vm1, %v6146_v42  ;;  %5317 = vmatprep.mubr.msk.f32.mxu0 %vm315_vm1, %v6320_v30 }
  0xb3   : > { %5268 = vmatmul.mubr.msk.f32.gmra.mrb[52].mxu1 %vm315_vm1, %v6152_v44  ;;  %5318 = vmatmul.mubr.msk.f32.gmra.mrb[52].mxu0 %vm315_vm1, %v6325_v45 }
  0xb4   : > { %5270 = vmatprep.mubr.msk.f32.mxu1 %vm315_vm1, %v6170_v50  ;;  %5320 = vmatprep.mubr.msk.f32.mxu0 %vm315_vm1, %v6345_v17 }
  0xb7   : > { %5271 = vmatmul.mubr.msk.f32.gmra.mrb[54].mxu1 %vm315_vm1, %v6741_v63  ;;  %5321 = vmatmul.mubr.msk.f32.gmra.mrb[54].mxu0 %vm315_vm1, %v6758_v29 }
  0xb8   : > { %5273 = vmatprep.mubr.msk.f32.mxu1 %vm315_vm1, %v6190_v56  ;;  %5323 = vmatprep.mubr.msk.f32.mxu0 %vm315_vm1, %v6363_v55  ;;  %v6778_v56 = vld [vmem:[#allocation2 + $0x128] sm:$0x3]  ;;  %v6782_v55 = vld [vmem:[#allocation2 + $0x120] sm:$0xff] }
  0xb9   : > { %v2316_v27 = vrot.slane %v6782_v55, 1  ;;  %v2317_v7 = vrot.slane %v6778_v56, 1 }
  0xbb   : > { %5274 = vmatmul.mubr.msk.f32.gmra.mrb[56].mxu1 %vm315_vm1, %v6195_v57  ;;  %5324 = vmatmul.mubr.msk.f32.gmra.mrb[56].mxu0 %vm315_vm1, %v6367_v62  ;;  %v6799_v5 = vsel %vm997_vm3, %v2316_v27, %v2317_v7  ;;  %v2320_v27 = vrot.slane %v6819_v14, 1  ;;  %v7908_v7 = vld [vmem:[#allocation13_spill] sm:$0xff] }
  0xbc   : > { %5276 = vmatprep.mubr.msk.f32.mxu1 %vm315_vm1, %v6209_v61  ;;  %5326 = vmatprep.mubr.msk.f32.mxu0 %vm315_vm1, %v6386_v41 }
  0xbf   : > { %5277 = vmatmul.mubr.msk.f32.gmra.mrb[58].mxu1 %vm315_vm1, %v6214_v0  ;;  %5327 = vmatmul.mubr.msk.f32.gmra.mrb[58].mxu0 %vm315_vm1, %v6390_v24 }
  0xc0   : > { %5279 = vmatprep.mubr.msk.f32.mxu1 %vm315_vm1, %v6228_v8  ;;  %5329 = vmatprep.mubr.msk.f32.mxu0 %vm315_vm1, %v6410_v9 }
  0xc3   : > { %5280 = vmatmul.mubr.msk.f32.gmra.mrb[60].mxu1 %vm315_vm1, %v7902_v13  ;;  %5330 = vmatmul.mubr.msk.f32.gmra.mrb[60].mxu0 %vm315_vm1, %v7903_v51 }
  0xc4   : > { %5282 = vmatprep.mubr.msk.f32.mxu1 %vm315_vm1, %v6247_v21  ;;  %5332 = vmatprep.mubr.msk.f32.mxu0 %vm315_vm1, %v6435_v18 }
  0xc7   : > { %5283 = vmatmul.mubr.msk.f32.gmra.mrb[62].mxu1 %vm315_vm1, %v6782_v55  ;;  %5333 = vmatmul.mubr.msk.f32.gmra.mrb[62].mxu0 %vm315_vm1, %v6799_v5 }
  0xc8   : > { %5285 = vmatprep.mubr.msk.f32.mxu1 %vm315_vm1, %v7904_v1  ;;  %5335 = vmatprep.mubr.msk.f32.mxu0 %vm315_vm1, %v6453_v25  ;;  %v6823_v25 = vld [vmem:[#allocation2 + $0x1c0] sm:$0xff] }
  0xcb   : > { %5286 = vmatmul.mubr.msk.f32.gmra.mrb[64].mxu1 %vm315_vm1, %v6083_v26  ;;  %5336 = vmatmul.mubr.msk.f32.gmra.mrb[64].mxu0 %vm315_vm1, %v6457_v53  ;;  %v7907_v26 = vld [vmem:[#allocation34_spill] sm:$0xff] }
  0xcc   : > { %5288 = vmatprep.mubr.msk.f32.mxu1 %vm315_vm1, %v6105_v31  ;;  %5338 = vmatprep.mubr.msk.f32.mxu0 %vm315_vm1, %v6476_v6  ;;  %v2319_v31 = vrot.slane %v6823_v25, 1 }
  0xce   : > { %v6840_v1 = vsel %vm997_vm3, %v2319_v31, %v2320_v27  ;;  %v7913_v31 = vld [vmem:[#allocation17_spill] sm:$0xff]  ;;  %v7916_v27 = vld [vmem:[#allocation20_spill] sm:$0xff] }
  0xcf   : > { %5289 = vmatmul.mubr.msk.f32.gmra.mrb[66].mxu1 %vm315_vm1, %v7905_v19  ;;  %5339 = vmatmul.mubr.msk.f32.gmra.mrb[66].mxu0 %vm315_vm1, %v7907_v26  ;;  %7909 = vst [vmem:[#allocation16_spill] sm:$0xff] %v6840_v1  ;;  %v7910_v19 = vld [vmem:[#allocation14_spill] sm:$0xff] }
  0xd0   : > { %5291 = vmatprep.mubr.msk.f32.mxu1 %vm315_vm1, %v7906_v22  ;;  %5341 = vmatprep.mubr.msk.f32.mxu0 %vm315_vm1, %v6500_v49  ;;  %v6860_v22 = vld [vmem:[#allocation2 + $0x268] sm:$0x3] }
  0xd3   : > { %5292 = vmatmul.mubr.msk.f32.gmra.mrb[68].mxu1 %vm315_vm1, %v7908_v7  ;;  %5342 = vmatmul.mubr.msk.f32.gmra.mrb[68].mxu0 %vm315_vm1, %v6505_v39  ;;  %v7917_v7 = vld [vmem:[#allocation21_spill] sm:$0xff] }
  0xd4   : > { %5294 = vmatprep.mubr.msk.f32.mxu1 %vm315_vm1, %v6158_v46  ;;  %5344 = vmatprep.mubr.msk.f32.mxu0 %vm315_vm1, %v6529_v34  ;;  %v7911_v46 = vld [vmem:[#allocation15_spill] sm:$0xff] }
  0xd7   : > { %5295 = vmatmul.mubr.msk.f32.gmra.mrb[70].mxu1 %vm315_vm1, %v6823_v25  ;;  %5345 = vmatmul.mubr.msk.f32.gmra.mrb[70].mxu0 %vm315_vm1, %v6840_v1 }
  0xd8   : > { %5297 = vmatprep.mubr.msk.f32.mxu1 %vm315_vm1, %v7910_v19  ;;  %5347 = vmatprep.mubr.msk.f32.mxu0 %vm315_vm1, %v6619_v40  ;;  %v6864_v40 = vld [vmem:[#allocation2 + $0x260] sm:$0xff]  ;;  %v2662_v19 = vrot.slane %v6782_v55, 2 }
  0xdb   : > { %5298 = vmatmul.mubr.msk.f32.gmra.mrb[72].mxu1 %vm315_vm1, %v6182_v54  ;;  %5348 = vmatmul.mubr.msk.f32.gmra.mrb[72].mxu0 %vm315_vm1, %v6624_v23  ;;  %v2322_v54 = vrot.slane %v6864_v40, 1  ;;  %v562_v23 = vld [vmem:[#allocation3 + $0x98] sm:$0xff] }
  0xdc   : > { %5300 = vmatprep.mubr.msk.f32.mxu1 %vm315_vm1, %v6200_v59  ;;  %5350 = vmatprep.mubr.msk.f32.mxu0 %vm315_vm1, %v6646_v12  ;;  %v2323_v59 = vrot.slane %v6860_v22, 1  ;;  %v2668_v12 = vrot.slane %v6864_v40, 2 }
  0xdf   : > { %5301 = vmatmul.mubr.msk.f32.gmra.mrb[74].mxu1 %vm315_vm1, %v7911_v46  ;;  %5351 = vmatmul.mubr.msk.f32.gmra.mrb[74].mxu0 %vm315_vm1, %v6650_v3  ;;  %v7924_v46 = vld [vmem:[#allocation29_spill] sm:$0xff] }
  0xe0   : > { %5303 = vmatprep.mubr.msk.f32.mxu1 %vm315_vm1, %v6219_v2  ;;  %5353 = vmatprep.mubr.msk.f32.mxu0 %vm315_vm1, %v6670_v48  ;;  %v6881_v2 = vsel %vm997_vm3, %v2322_v54, %v2323_v59  ;;  %v7928_v59 = vld [vmem:[#allocation33_spill] sm:$0xff] }
  0xe1   : > { %7912 = vst [vmem:[#allocation28_spill] sm:$0xff] %v6881_v2 }
  0xe3   : > { %5304 = vmatmul.mubr.msk.f32.gmra.mrb[76].mxu1 %vm315_vm1, %v6222_v4  ;;  %5354 = vmatmul.mubr.msk.f32.gmra.mrb[76].mxu0 %vm315_vm1, %v6674_v52  ;;  %v7914_v4 = vld [vmem:[#allocation18_spill] sm:$0xff] }
  0xe4   : > { %5306 = vmatprep.mubr.msk.f32.mxu1 %vm315_vm1, %v6238_v15  ;;  %5356 = vmatprep.mubr.msk.f32.mxu0 %vm315_vm1, %v6692_v28  ;;  %v7915_v15 = vld [vmem:[#allocation19_spill] sm:$0xff] }
  0xe5   : > { %v544_v52 = vld [vmem:[#allocation3 + $0x8] sm:$0xff] }
  0xe7   : > { %5307 = vmatmul.mubr.msk.f32.gmra.mrb[78].mxu1 %vm315_vm1, %v6864_v40  ;;  %5357 = vmatmul.mubr.msk.f32.gmra.mrb[78].mxu0 %vm315_vm1, %v6881_v2  ;;  %v5627_v2 = vld [vmem:[#allocation2 + $0x1b0] sm:$0xff] }
  0xe8   : > { %5361 = vmatprep.mubr.msk.f32.mxu1 %vm315_vm1, %v7913_v31  ;;  %5411 = vmatprep.mubr.msk.f32.mxu0 %vm315_vm1, %v6116_v35  ;;  %v2659_v35 = vrot.slane %v6741_v63, 2  ;;  %v5624_v31 = vld [vmem:[#allocation2 + $0x180] sm:$0xff] }
  0xeb   : > { %5362 = vmatmul.mubr.msk.f32.vlgmr.msra.gmra.mrb[80].mxu1 %vm315_vm1, %v7914_v4  ;;  %5412 = vmatmul.mubr.msk.f32.vlgmr.msra.gmra.mrb[80].mxu0 %vm315_vm1, %v6125_v36  ;;  %v7918_v36 = vld [vmem:[#allocation22_spill] sm:$0xff] }
  0xec   : > { %5460 = vmatpush3.msk.msra.mxu1 %vm672_vm0, %v6712_v58  ;;  %5364 = vmatprep.mubr.msk.f32.mxu1 %vm315_vm1, %v7915_v15  ;;  %v2660_v58 = vrot.slane %v6735_v33, 2  ;;  %v6924_v33 = vld [vmem:[#allocation2 + $0x90] sm:$0xff] }
  0xed   : > { %5510 = vmatpush3.msk.msra.mxu0 %vm672_vm0, %v6723_v32  ;;  %5414 = vmatprep.mubr.msk.f32.mxu0 %vm315_vm1, %v6130_v38  ;;  %v7919_v38 = vld [vmem:[#allocation23_spill] sm:$0xff] }
  0xee   : > { %v6918_v32 = vsel %vm1484_vm4, %v2659_v35, %v2660_v58  ;;  %v7930_v35 = vld [vmem:[#allocation36_spill] sm:$0xff]  ;;  %v2665_v58 = vrot.slane %v6823_v25, 2 }
  0xef   : > { %5365 = vmatmul.mubr.msk.f32.gmra.mrb[82].mxu1 %vm315_vm1, %v7916_v27  ;;  %5415 = vmatmul.mubr.msk.f32.gmra.mrb[82].mxu0 %vm315_vm1, %v6146_v42  ;;  %v7920_v42 = vld [vmem:[#allocation24_spill] sm:$0xff] }
  0xf0   : > { %5367 = vmatprep.mubr.msk.f32.mxu1 %vm315_vm1, %v7917_v7  ;;  %5417 = vmatprep.mubr.msk.f32.mxu0 %vm315_vm1, %v6152_v44  ;;  %v7921_v44 = vld [vmem:[#allocation25_spill] sm:$0xff] }
  0xf3   : > { %5368 = vmatmul.mubr.msk.f32.gmra.mrb[84].mxu1 %vm315_vm1, %v7918_v36  ;;  %5418 = vmatmul.mubr.msk.f32.gmra.mrb[84].mxu0 %vm315_vm1, %v6170_v50  ;;  %v7922_v50 = vld [vmem:[#allocation26_spill] sm:$0xff] }
  0xf4   : > { %5370 = vmatprep.mubr.msk.f32.mxu1 %vm315_vm1, %v7919_v38  ;;  %5420 = vmatprep.mubr.msk.f32.mxu0 %vm315_vm1, %v6741_v63  ;;  %v7923_v63 = vld [vmem:[#allocation27_spill] sm:$0xff] }
  0xf7   : > { %5371 = vmatmul.mubr.msk.f32.gmra.mrb[86].mxu1 %vm315_vm1, %v6918_v32  ;;  %5421 = vmatmul.mubr.msk.f32.gmra.mrb[86].mxu0 %vm315_vm1, %v6924_v33 }
  0xf8   : > { %5373 = vmatprep.mubr.msk.f32.mxu1 %vm315_vm1, %v7920_v42  ;;  %5423 = vmatprep.mubr.msk.f32.mxu0 %vm315_vm1, %v6195_v57  ;;  %v2663_v57 = vrot.slane %v6778_v56, 2  ;;  %v6963_v56 = vld [vmem:[#allocation2 + $0x130] sm:$0xff]  ;;  %v7931_v42 = vld [vmem:[#allocation37_spill] sm:$0xff] }
  0xfa   : > { %v6957_v54 = vsel %vm1484_vm4, %v2662_v19, %v2663_v57  ;;  %v2666_v19 = vrot.slane %v6819_v14, 2  ;;  %v5625_v57 = vld [vmem:[#allocation2 + $0x190] sm:$0xff] }
  0xfb   : > { %5374 = vmatmul.mubr.msk.f32.gmra.mrb[88].mxu1 %vm315_vm1, %v7921_v44  ;;  %5424 = vmatmul.mubr.msk.f32.gmra.mrb[88].mxu0 %vm315_vm1, %v6209_v61  ;;  %v7925_v61 = vld [vmem:[#allocation30_spill] sm:$0xff]  ;;  %v6996_v14 = vld [vmem:[#allocation2 + $0x1d0] sm:$0xff] }
  0xfc   : > { %5376 = vmatprep.mubr.msk.f32.mxu1 %vm315_vm1, %v7922_v50  ;;  %5426 = vmatprep.mubr.msk.f32.mxu0 %vm315_vm1, %v6214_v0  ;;  %v7926_v0 = vld [vmem:[#allocation31_spill] sm:$0xff] }
  0xff   : > { %5377 = vmatmul.mubr.msk.f32.gmra.mrb[90].mxu1 %vm315_vm1, %v7923_v63  ;;  %5427 = vmatmul.mubr.msk.f32.gmra.mrb[90].mxu0 %vm315_vm1, %v6228_v8  ;;  %v7927_v8 = vld [vmem:[#allocation32_spill] sm:$0xff] }
 0x100   : > { %5379 = vmatprep.mubr.msk.f32.mxu1 %vm315_vm1, %v7924_v46  ;;  %5429 = vmatprep.mubr.msk.f32.mxu0 %vm315_vm1, %v7902_v13  ;;  %v5622_v13 = vld [vmem:[#allocation2 + $0x160] sm:$0xff] }
 0x103   : > { %5380 = vmatmul.mubr.msk.f32.gmra.mrb[92].mxu1 %vm315_vm1, %v7925_v61  ;;  %5430 = vmatmul.mubr.msk.f32.gmra.mrb[92].mxu0 %vm315_vm1, %v6247_v21  ;;  %v7929_v21 = vld [vmem:[#allocation35_spill] sm:$0xff] }
 0x104   : > { %5382 = vmatprep.mubr.msk.f32.mxu1 %vm315_vm1, %v7926_v0  ;;  %5432 = vmatprep.mubr.msk.f32.mxu0 %vm315_vm1, %v6782_v55  ;;  %v5623_v55 = vld [vmem:[#allocation2 + $0x170] sm:$0xff] }
 0x107   : > { %5383 = vmatmul.mubr.msk.f32.gmra.mrb[94].mxu1 %vm315_vm1, %v6957_v54  ;;  %5433 = vmatmul.mubr.msk.f32.gmra.mrb[94].mxu0 %vm315_vm1, %v6963_v56 }
 0x108   : > { %5385 = vmatprep.mubr.msk.f32.mxu1 %vm315_vm1, %v7927_v8  ;;  %5435 = vmatprep.mubr.msk.f32.mxu0 %vm315_vm1, %v5622_v13  ;;  %v5626_v8 = vld [vmem:[#allocation2 + $0x1a0] sm:$0xff] }
 0x109   : > { %v7932_v13 = vld [vmem:[#allocation38_spill] sm:$0xff] }
 0x10b   : > { %5386 = vmatmul.mubr.msk.f32.gmra.mrb[96].mxu1 %vm315_vm1, %v7928_v59  ;;  %5436 = vmatmul.mubr.msk.f32.gmra.mrb[96].mxu0 %vm315_vm1, %v5623_v55  ;;  %v7933_v55 = vld [vmem:[#allocation39_spill] sm:$0xff] }
 0x10c   : > { %5388 = vmatprep.mubr.msk.f32.mxu1 %vm315_vm1, %v7929_v21  ;;  %5438 = vmatprep.mubr.msk.f32.mxu0 %vm315_vm1, %v5624_v31  ;;  %v6991_v31 = vsel %vm1484_vm4, %v2665_v58, %v2666_v19  ;;  %v7936_v58 = vld [vmem:[#allocation42_spill] sm:$0xff]  ;;  %v5629_v19 = vld [vmem:[#allocation2 + $0x210] sm:$0xff] }
 0x10d   : > { %7934 = vst [vmem:[#allocation10_spill] sm:$0xff] %v6991_v31 }
 0x10f   : > { %5389 = vmatmul.mubr.msk.f32.gmra.mrb[98].mxu1 %vm315_vm1, %v7930_v35  ;;  %5439 = vmatmul.mubr.msk.f32.gmra.mrb[98].mxu0 %vm315_vm1, %v5625_v57  ;;  %v7935_v57 = vld [vmem:[#allocation41_spill] sm:$0xff] }
 0x110   : > { %5391 = vmatprep.mubr.msk.f32.mxu1 %vm315_vm1, %v7931_v42  ;;  %5441 = vmatprep.mubr.msk.f32.mxu0 %vm315_vm1, %v5626_v8  ;;  %v5628_v8 = vld [vmem:[#allocation2 + $0x200] sm:$0xff] }
 0x113   : > { %5392 = vmatmul.mubr.msk.f32.gmra.mrb[100].mxu1 %vm315_vm1, %v7932_v13  ;;  %5442 = vmatmul.mubr.msk.f32.gmra.mrb[100].mxu0 %vm315_vm1, %v5627_v2  ;;  %v560_v2 = vld [vmem:[#allocation3 + $0x88] sm:$0xff] }
 0x114   : > { %5394 = vmatprep.mubr.msk.f32.mxu1 %vm315_vm1, %v7933_v55  ;;  %5444 = vmatprep.mubr.msk.f32.mxu0 %vm315_vm1, %v6823_v25  ;;  %v559_v25 = vld [vmem:[#allocation3 + $0x80] sm:$0xff] }
 0x117   : > { %5395 = vmatmul.mubr.msk.f32.gmra.mrb[102].mxu1 %vm315_vm1, %v6991_v31  ;;  %5445 = vmatmul.mubr.msk.f32.gmra.mrb[102].mxu0 %vm315_vm1, %v6996_v14  ;;  %v561_v31 = vld [vmem:[#allocation3 + $0x90] sm:$0xff] }
 0x118   : > { %5397 = vmatprep.mubr.msk.f32.mxu1 %vm315_vm1, %v7935_v57  ;;  %5447 = vmatprep.mubr.msk.f32.mxu0 %vm315_vm1, %v5628_v8  ;;  %v5630_v57 = vld [vmem:[#allocation2 + $0x220] sm:$0xff] }
 0x119   : > { %v543_v8 = vld [vmem:[#allocation3] sm:$0xff] }
 0x11b   : > { %5398 = vmatmul.mubr.msk.f32.gmra.mrb[104].mxu1 %vm315_vm1, %v7936_v58  ;;  %5448 = vmatmul.mubr.msk.f32.gmra.mrb[104].mxu0 %vm315_vm1, %v5629_v19  ;;  %v2669_v19 = vrot.slane %v6860_v22, 2 }
 0x11c   : > { %5400 = vmatprep.mubr.msk.f32.mxu1 %vm315_vm1, %v6658_v11  ;;  %v5137_v28 = vpop.f32.mrb[0].mxu1  ;;  %5450 = vmatprep.mubr.msk.f32.mxu0 %vm315_vm1, %v5630_v57 }
 0x11d   : > { %v918_v48 = vadd.f32 %v5137_v28, %v560_v2  ;;  %v822_v3 = vpop.f32.mrb[1].mxu1  ;;  %v5631_v2 = vld [vmem:[#allocation2 + $0x230] sm:$0xff]  ;;  %v7027_v22 = vsel %vm1484_vm4, %v2668_v12, %v2669_v19 }
 0x11e   : > { %v917_v58 = vadd.f32 %v822_v3, %v559_v25  ;;  %v5113_v11 = vpop.f32.mrb[0].mxu0  ;;  %v546_v3 = vld [vmem:[#allocation3 + $0x18] sm:$0xff]  ;;  %v5632_v25 = vld [vmem:[#allocation2 + $0x240] sm:$0xff]  ;;  %v7035_v12 = vld [vmem:[#allocation2 + $0x270] sm:$0xff] }
 0x11f   : > { %5401 = vmatmul.mubr.msk.f32.gmra.mrb[106].mxu1 %vm315_vm1, %v6664_v20  ;;  %950 = vst.msk [vmem:[#allocation3 + $0x88] sm:$0xff] %vm510_vm5, %v918_v48  ;;  %v902_v57 = vadd.f32 %v5113_v11, %v544_v52  ;;  %v742_v28 = vpop.f32.mrb[1].mxu0  ;;  %5451 = vmatmul.mubr.msk.f32.gmra.mrb[106].mxu0 %vm315_vm1, %v5631_v2  ;;  %v545_v48 = vld [vmem:[#allocation3 + $0x10] sm:$0xff]  ;;  %v564_v52 = vld [vmem:[#allocation3 + $0xa8] sm:$0xff] }
 0x120   : > { %5403 = vmatprep.mubr.msk.f32.mxu1 %vm315_vm1, %v6681_v47  ;;  %949 = vst.msk [vmem:[#allocation3 + $0x80] sm:$0xff] %vm510_vm5, %v917_v58  ;;  %v5140_v20 = vpop.f32.mrb[2].mxu1  ;;  %v901_v55 = vadd.f32 %v742_v28, %v543_v8  ;;  %5453 = vmatprep.mubr.msk.f32.mxu0 %vm315_vm1, %v5632_v25  ;;  %v5633_v28 = vld [vmem:[#allocation2 + $0x250] sm:$0xff] }
 0x121   : > { %v920_v47 = vadd.f32 %v5140_v20, %v562_v23  ;;  %v832_v1 = vpop.f32.mrb[3].mxu1  ;;  %934 = vst.msk [vmem:[#allocation3 + $0x8] sm:$0xff] %vm510_vm5, %v902_v57  ;;  %v563_v23 = vld [vmem:[#allocation3 + $0xa0] sm:$0xff]  ;;  %v548_v57 = vld [vmem:[#allocation3 + $0x28] sm:$0xff] }
 0x122   : > { %v919_v11 = vadd.f32 %v832_v1, %v561_v31  ;;  %933 = vst.msk [vmem:[#allocation3] sm:$0xff] %vm510_vm5, %v901_v55  ;;  %v5116_v58 = vpop.f32.mrb[2].mxu0 }
 0x123   : > { %5404 = vmatmul.mubr.msk.f32.gmra.mrb[108].mxu1 %vm315_vm1, %v6687_v37  ;;  %952 = vst.msk [vmem:[#allocation3 + $0x98] sm:$0xff] %vm510_vm5, %v920_v47  ;;  %v904_v20 = vadd.f32 %v5116_v58, %v546_v3  ;;  %v752_v8 = vpop.f32.mrb[3].mxu0  ;;  %5454 = vmatmul.mubr.msk.f32.gmra.mrb[108].mxu0 %vm315_vm1, %v5633_v28  ;;  %v547_v47 = vld [vmem:[#allocation3 + $0x20] sm:$0xff]  ;;  %v566_v3 = vld [vmem:[#allocation3 + $0xb8] sm:$0xff] }
 0x124   : > { %5406 = vmatprep.mubr.msk.f32.mxu1 %vm315_vm1, %v6699_v60  ;;  %951 = vst.msk [vmem:[#allocation3 + $0x90] sm:$0xff] %vm510_vm5, %v919_v11  ;;  %v5143_v1 = vpop.f32.mrb[4].mxu1  ;;  %v903_v31 = vadd.f32 %v752_v8, %v545_v48  ;;  %5456 = vmatprep.mubr.msk.f32.mxu0 %vm315_vm1, %v6864_v40  ;;  %v565_v40 = vld [vmem:[#allocation3 + $0xb0] sm:$0xff] }
 0x125   : > { %v922_v55 = vadd.f32 %v5143_v1, %v564_v52  ;;  %v842_v19 = vpop.f32.mrb[5].mxu1  ;;  %936 = vst.msk [vmem:[#allocation3 + $0x18] sm:$0xff] %vm510_vm5, %v904_v20  ;;  %v549_v8 = vld [vmem:[#allocation3 + $0x30] sm:$0xff]  ;;  %v568_v1 = vld [vmem:[#allocation3 + $0xc8] sm:$0xff] }
 0x126   : > { %v921_v2 = vadd.f32 %v842_v19, %v563_v23  ;;  %935 = vst.msk [vmem:[#allocation3 + $0x10] sm:$0xff] %vm510_vm5, %v903_v31  ;;  %v5119_v25 = vpop.f32.mrb[4].mxu0  ;;  %v550_v23 = vld [vmem:[#allocation3 + $0x38] sm:$0xff] }
 0x127   : > { %5407 = vmatmul.mubr.msk.f32.gmra.mrb[110].mxu1 %vm315_vm1, %v7027_v22  ;;  %954 = vst.msk [vmem:[#allocation3 + $0xa8] sm:$0xff] %vm510_vm5, %v922_v55  ;;  %v906_v48 = vadd.f32 %v5119_v25, %v548_v57  ;;  %v762_v11 = vpop.f32.mrb[5].mxu0  ;;  %5457 = vmatmul.mubr.msk.f32.gmra.mrb[110].mxu0 %vm315_vm1, %v7035_v12  ;;  %v567_v57 = vld [vmem:[#allocation3 + $0xc0] sm:$0xff] }
 0x128   : > { %5461 = vmatprep.mubr.msk.f32.mxu1 %vm315_vm1, %v6259_v43  ;;  %953 = vst.msk [vmem:[#allocation3 + $0xa0] sm:$0xff] %vm510_vm5, %v921_v2  ;;  %v5146_v52 = vpop.f32.mrb[6].mxu1  ;;  %v905_v58 = vadd.f32 %v762_v11, %v547_v47  ;;  %5511 = vmatprep.mubr.msk.f32.mxu0 %vm315_vm1, %v7914_v4  ;;  %v552_v2 = vld [vmem:[#allocation3 + $0x48] sm:$0xff]  ;;  %v551_v25 = vld [vmem:[#allocation3 + $0x40] sm:$0xff] }
 0x129   : > { %v924_v43 = vadd.f32 %v5146_v52, %v566_v3  ;;  %v852_v20 = vpop.f32.mrb[7].mxu1  ;;  %938 = vst.msk [vmem:[#allocation3 + $0x28] sm:$0xff] %vm510_vm5, %v906_v48  ;;  %v570_v48 = vld [vmem:[#allocation3 + $0xd8] sm:$0xff] }
 0x12a   : > { %v923_v28 = vadd.f32 %v852_v20, %v565_v40  ;;  %937 = vst.msk [vmem:[#allocation3 + $0x20] sm:$0xff] %vm510_vm5, %v905_v58  ;;  %v5122_v31 = vpop.f32.mrb[6].mxu0  ;;  %v3347_v40 = vrot.slane %v6924_v33, 1 }
 0x12b   : > { %5462 = vmatmul.mubr.msk.f32.vlgmr.msra.gmra.mrb[112].mxu1 %vm315_vm1, %v6285_v10  ;;  %956 = vst.msk [vmem:[#allocation3 + $0xb8] sm:$0xff] %vm510_vm5, %v924_v43  ;;  %v908_v4 = vadd.f32 %v5122_v31, %v550_v23  ;;  %v772_v55 = vpop.f32.mrb[7].mxu0  ;;  %5512 = vmatmul.mubr.msk.f32.vlgmr.msra.gmra.mrb[112].mxu0 %vm315_vm1, %v7915_v15  ;;  %v449_v10 = vld [vmem:[#allocation2 + $0x98] sm:$0x3]  ;;  %v553_v31 = vld [vmem:[#allocation3 + $0x50] sm:$0xff] }
 0x12c   : > { %5464 = vmatprep.mubr.msk.f32.mxu1 %vm315_vm1, %v6294_v16  ;;  %955 = vst.msk [vmem:[#allocation3 + $0xb0] sm:$0xff] %vm510_vm5, %v923_v28  ;;  %v5149_v19 = vpop.f32.mrb[8].mxu1  ;;  %v907_v47 = vadd.f32 %v772_v55, %v549_v8  ;;  %5514 = vmatprep.mubr.msk.f32.mxu0 %vm315_vm1, %v7916_v27  ;;  %v3348_v52 = vrot.slane %v449_v10, 1  ;;  %v569_v27 = vld [vmem:[#allocation3 + $0xd0] sm:$0xff]  ;;  %v554_v8 = vld [vmem:[#allocation3 + $0x58] sm:$0xff] }
 0x12d   : > { %v926_v16 = vadd.f32 %v5149_v19, %v568_v1  ;;  %v862_v3 = vpop.f32.mrb[9].mxu1  ;;  %940 = vst.msk [vmem:[#allocation3 + $0x38] sm:$0xff] %vm510_vm5, %v908_v4 }
 0x12e   : > { %v925_v15 = vadd.f32 %v862_v3, %v567_v57  ;;  %939 = vst.msk [vmem:[#allocation3 + $0x30] sm:$0xff] %vm510_vm5, %v907_v47  ;;  %v5125_v11 = vpop.f32.mrb[8].mxu0  ;;  %v572_v57 = vld [vmem:[#allocation3 + $0xe8] sm:$0xff]  ;;  %v555_v3 = vld [vmem:[#allocation3 + $0x60] sm:$0xff] }
 0x12f   : > { %5465 = vmatmul.mubr.msk.f32.gmra.mrb[114].mxu1 %vm315_vm1, %v6320_v30  ;;  %958 = vst.msk [vmem:[#allocation3 + $0xc8] sm:$0xff] %vm510_vm5, %v926_v16  ;;  %v910_v58 = vadd.f32 %v5125_v11, %v552_v2  ;;  %v782_v23 = vpop.f32.mrb[9].mxu0  ;;  %5515 = vmatmul.mubr.msk.f32.gmra.mrb[114].mxu0 %vm315_vm1, %v7917_v7  ;;  %v3693_v30 = vrot.slane %v6924_v33, 2  ;;  %v3349_v33 = vsel %vm997_vm3, %v3347_v40, %v3348_v52  ;;  %v556_v47 = vld [vmem:[#allocation3 + $0x68] sm:$0xff]  ;;  %v574_v40 = vld [vmem:[#allocation3 + $0xf8] sm:$0xff] }
 0x130   : > { %5467 = vmatprep.mubr.msk.f32.mxu1 %vm315_vm1, %v6325_v45  ;;  %957 = vst.msk [vmem:[#allocation3 + $0xc0] sm:$0xff] %vm510_vm5, %v925_v15  ;;  %v5152_v43 = vpop.f32.mrb[10].mxu1  ;;  %v909_v20 = vadd.f32 %v782_v23, %v551_v25  ;;  %5517 = vmatprep.mubr.msk.f32.mxu0 %vm315_vm1, %v7918_v36  ;;  %v3694_v45 = vrot.slane %v449_v10, 2  ;;  %v571_v36 = vld [vmem:[#allocation3 + $0xe0] sm:$0xff]  ;;  %v557_v23 = vld [vmem:[#allocation3 + $0x70] sm:$0xff] }
 0x131   : > { %v928_v28 = vadd.f32 %v5152_v43, %v570_v48  ;;  %v872_v1 = vpop.f32.mrb[11].mxu1  ;;  %942 = vst.msk [vmem:[#allocation3 + $0x48] sm:$0xff] %vm510_vm5, %v910_v58 }
 0x132   : > { %v927_v7 = vadd.f32 %v872_v1, %v569_v27  ;;  %941 = vst.msk [vmem:[#allocation3 + $0x40] sm:$0xff] %vm510_vm5, %v909_v20  ;;  %v5128_v4 = vpop.f32.mrb[10].mxu0  ;;  %v558_v27 = vld [vmem:[#allocation3 + $0x78] sm:$0xff]  ;;  %v1094_v1 = vld [vmem:[#allocation3] sm:$0xff] }
 0x133   : > { %5468 = vmatmul.mubr.msk.f32.gmra.mrb[116].mxu1 %vm315_vm1, %v6345_v17  ;;  %960 = vst.msk [vmem:[#allocation3 + $0xd8] sm:$0xff] %vm510_vm5, %v928_v28  ;;  %v912_v55 = vadd.f32 %v5128_v4, %v554_v8  ;;  %v792_v10 = vpop.f32.mrb[11].mxu0  ;;  %5518 = vmatmul.mubr.msk.f32.gmra.mrb[116].mxu0 %vm315_vm1, %v7919_v38  ;;  %v1097_v4 = vld [vmem:[#allocation3 + $0x18] sm:$0xff] }
 0x134   : > { %5470 = vmatprep.mubr.msk.f32.mxu1 %vm315_vm1, %v6758_v29  ;;  %959 = vst.msk [vmem:[#allocation3 + $0xd0] sm:$0xff] %vm510_vm5, %v927_v7  ;;  %v5155_v17 = vpop.f32.mrb[12].mxu1  ;;  %v911_v19 = vadd.f32 %v792_v10, %v553_v31  ;;  %5520 = vmatprep.mubr.msk.f32.mxu0 %vm315_vm1, %v6918_v32  ;;  %v3695_v29 = vsel %vm1484_vm4, %v3693_v30, %v3694_v45  ;;  %v573_v32 = vld [vmem:[#allocation3 + $0xf0] sm:$0xff]  ;;  %v3350_v7 = vrot.slane %v6963_v56, 1 }
 0x135   : > { %v930_v2 = vadd.f32 %v5155_v17, %v572_v57  ;;  %v882_v16 = vpop.f32.mrb[13].mxu1  ;;  %944 = vst.msk [vmem:[#allocation3 + $0x58] sm:$0xff] %vm510_vm5, %v912_v55  ;;  %v1096_v10 = vld [vmem:[#allocation3 + $0x10] sm:$0xff] }
 0x136   : > { %v929_v25 = vadd.f32 %v882_v16, %v571_v36  ;;  %943 = vst.msk [vmem:[#allocation3 + $0x50] sm:$0xff] %vm510_vm5, %v911_v19  ;;  %v5131_v38 = vpop.f32.mrb[12].mxu0 }
 0x137   : > { %5471 = vmatmul.mubr.msk.f32.gmra.mrb[118].mxu1 %vm315_vm1, %v3349_v33  ;;  %962 = vst.msk [vmem:[#allocation3 + $0xe8] sm:$0xff] %vm510_vm5, %v930_v2  ;;  %v914_v15 = vadd.f32 %v5131_v38, %v556_v47  ;;  %v802_v48 = vpop.f32.mrb[13].mxu0  ;;  %5521 = vmatmul.mubr.msk.f32.gmra.mrb[118].mxu0 %vm315_vm1, %v3695_v29 }
 0x138   : > { %5473 = vmatprep.mubr.msk.f32.mxu1 %vm315_vm1, %v6367_v62  ;;  %961 = vst.msk [vmem:[#allocation3 + $0xe0] sm:$0xff] %vm510_vm5, %v929_v25  ;;  %v5158_v11 = vpop.f32.mrb[14].mxu1  ;;  %v913_v52 = vadd.f32 %v802_v48, %v555_v3  ;;  %5523 = vmatprep.mubr.msk.f32.mxu0 %vm315_vm1, %v7921_v44  ;;  %v469_v44 = vld [vmem:[#allocation2 + $0x138] sm:$0x3] }
 0x139   : > { %v932_v58 = vadd.f32 %v5158_v11, %v574_v40  ;;  %v892_v62 = vpop.f32.mrb[15].mxu1  ;;  %946 = vst.msk [vmem:[#allocation3 + $0x68] sm:$0xff] %vm510_vm5, %v914_v15  ;;  %v3351_v33 = vrot.slane %v469_v44, 1  ;;  %v1101_v15 = vld [vmem:[#allocation3 + $0x38] sm:$0xff] }
 0x13a   : > { %v931_v30 = vadd.f32 %v892_v62, %v573_v32  ;;  %945 = vst.msk [vmem:[#allocation3 + $0x60] sm:$0xff] %vm510_vm5, %v913_v52  ;;  %v5134_v43 = vpop.f32.mrb[14].mxu0 }
 0x13b   : > { %5474 = vmatmul.mubr.msk.f32.gmra.mrb[120].mxu1 %vm315_vm1, %v6386_v41  ;;  %964 = vst.msk [vmem:[#allocation3 + $0xf8] sm:$0xff] %vm510_vm5, %v932_v58  ;;  %v916_v20 = vadd.f32 %v5134_v43, %v558_v27  ;;  %v812_v8 = vpop.f32.mrb[15].mxu0  ;;  %5524 = vmatmul.mubr.msk.f32.gmra.mrb[120].mxu0 %vm315_vm1, %v7922_v50  ;;  %v1095_v41 = vld [vmem:[#allocation3 + $0x8] sm:$0xff]  ;;  %v489_v43 = vld [vmem:[#allocation2 + $0x1d8] sm:$0x3] }
 0x13c   : > { %5476 = vmatprep.mubr.msk.f32.mxu1 %vm315_vm1, %v6390_v24  ;;  %963 = vst.msk [vmem:[#allocation3 + $0xf0] sm:$0xff] %vm510_vm5, %v931_v30  ;;  %v5163_v45 = vpop.f32.mrb[16].mxu1  ;;  %v915_v28 = vadd.f32 %v812_v8, %v557_v23  ;;  %5526 = vmatprep.mubr.msk.f32.mxu0 %vm315_vm1, %v7923_v63 }
 0x13d   : > { %v1421_v24 = vadd.f32 %v5163_v45, %v1095_v41  ;;  %v1261_v31 = vpop.f32.mrb[17].mxu1  ;;  %948 = vst.msk [vmem:[#allocation3 + $0x78] sm:$0xff] %vm510_vm5, %v916_v20  ;;  %v1103_v20 = vld [vmem:[#allocation3 + $0x48] sm:$0xff]  ;;  %v3353_v45 = vrot.slane %v6996_v14, 1 }
 0x13e   : > { %v1420_v50 = vadd.f32 %v1261_v31, %v1094_v1  ;;  %947 = vst.msk [vmem:[#allocation3 + $0x70] sm:$0xff] %vm510_vm5, %v915_v28  ;;  %v5213_v57 = vpop.f32.mrb[16].mxu0  ;;  %v3354_v1 = vrot.slane %v489_v43, 1 }
 0x13f   : > { %5477 = vmatmul.mubr.msk.f32.gmra.mrb[122].mxu1 %vm315_vm1, %v6410_v9  ;;  %1453 = vst.msk [vmem:[#allocation3 + $0x8] sm:$0xff] %vm510_vm5, %v1421_v24  ;;  %v1748_v63 = vpop.f32.mrb[17].mxu0  ;;  %5527 = vmatmul.mubr.msk.f32.gmra.mrb[122].mxu0 %vm315_vm1, %v7924_v46  ;;  %v3696_v9 = vrot.slane %v6963_v56, 2  ;;  %v3352_v46 = vsel %vm997_vm3, %v3350_v7, %v3351_v33 }
 0x140   : > { %5479 = vmatprep.mubr.msk.f32.mxu1 %vm315_vm1, %v7903_v51  ;;  %1452 = vst.msk [vmem:[#allocation3] sm:$0xff] %vm510_vm5, %v1420_v50  ;;  %v5166_v36 = vpop.f32.mrb[18].mxu1  ;;  %5529 = vmatprep.mubr.msk.f32.mxu0 %vm315_vm1, %v7925_v61  ;;  %v3697_v51 = vrot.slane %v469_v44, 2  ;;  %v1099_v61 = vld [vmem:[#allocation3 + $0x28] sm:$0xff]  ;;  %v1102_v44 = vld [vmem:[#allocation3 + $0x40] sm:$0xff] }
 0x141   : > { %v1423_v55 = vadd.f32 %v5166_v36, %v1097_v4  ;;  %v1271_v17 = vpop.f32.mrb[19].mxu1  ;;  %v7937_v36 = vld [vmem:[#allocation16_spill] sm:$0xff] }
 0x142   : > { %v1422_v19 = vadd.f32 %v1271_v17, %v1096_v10  ;;  %v5216_v56 = vpop.f32.mrb[18].mxu0 }
 0x143   : > { %5480 = vmatmul.mubr.msk.f32.gmra.mrb[124].mxu1 %vm315_vm1, %v6435_v18  ;;  %1455 = vst.msk [vmem:[#allocation3 + $0x18] sm:$0xff] %vm510_vm5, %v1423_v55  ;;  %v1758_v47 = vpop.f32.mrb[19].mxu0  ;;  %5530 = vmatmul.mubr.msk.f32.gmra.mrb[124].mxu0 %vm315_vm1, %v7926_v0  ;;  %v3698_v18 = vsel %vm1484_vm4, %v3696_v9, %v3697_v51  ;;  %v1104_v9 = vld [vmem:[#allocation3 + $0x50] sm:$0xff]  ;;  %v3355_v51 = vsel %vm997_vm3, %v3353_v45, %v3354_v1  ;;  %v7945_v45 = vld [vmem:[#allocation46_spill] sm:$0xff] }
 0x144   : > { %5482 = vmatprep.mubr.msk.f32.mxu1 %vm315_vm1, %v6799_v5  ;;  %1454 = vst.msk [vmem:[#allocation3 + $0x10] sm:$0xff] %vm510_vm5, %v1422_v19  ;;  %v5169_v29 = vpop.f32.mrb[20].mxu1  ;;  %5532 = vmatprep.mubr.msk.f32.mxu0 %vm315_vm1, %v6957_v54  ;;  %v1098_v5 = vld [vmem:[#allocation3 + $0x20] sm:$0xff]  ;;  %v7938_v19 = vld [vmem:[#allocation39_spill] sm:$0xff] }
 0x145   : > { %v1425_v2 = vadd.f32 %v5169_v29, %v1099_v61  ;;  %v1281_v16 = vpop.f32.mrb[21].mxu1  ;;  %v7946_v1 = vld [vmem:[#allocation47_spill] sm:$0xff] }
 0x146   : > { %v1424_v3 = vadd.f32 %v1281_v16, %v1098_v5  ;;  %v1582_v25 = vld [vmem:[#allocation3 + $0x8] sm:$0xff]  ;;  %v5219_v0 = vpop.f32.mrb[20].mxu0 }
 0x147   : > { %5483 = vmatmul.mubr.msk.f32.gmra.mrb[126].mxu1 %vm315_vm1, %v3352_v46  ;;  %1457 = vst.msk [vmem:[#allocation3 + $0x28] sm:$0xff] %vm510_vm5, %v1425_v2  ;;  %v1908_v40 = vadd.f32 %v5213_v57, %v1582_v25  ;;  %v1581_v38 = vld [vmem:[#allocation3] sm:$0xff]  ;;  %v1768_v32 = vpop.f32.mrb[21].mxu0  ;;  %5533 = vmatmul.mubr.msk.f32.gmra.mrb[126].mxu0 %vm315_vm1, %v3698_v18  ;;  %v1105_v57 = vld [vmem:[#allocation3 + $0x58] sm:$0xff]  ;;  %v1107_v46 = vld [vmem:[#allocation3 + $0x68] sm:$0xff] }
 0x148   : > { %5485 = vmatprep.mubr.msk.f32.mxu1 %vm315_vm1, %v6457_v53  ;;  %1456 = vst.msk [vmem:[#allocation3 + $0x20] sm:$0xff] %vm510_vm5, %v1424_v3  ;;  %v1907_v54 = vadd.f32 %v1748_v63, %v1581_v38  ;;  %v5172_v48 = vpop.f32.mrb[22].mxu1  ;;  %5535 = vmatprep.mubr.msk.f32.mxu0 %vm315_vm1, %v7928_v59  ;;  %v1100_v53 = vld [vmem:[#allocation3 + $0x30] sm:$0xff]  ;;  %v1106_v18 = vld [vmem:[#allocation3 + $0x60] sm:$0xff] }
 0x149   : > { %1940 = vst.msk [vmem:[#allocation3 + $0x8] sm:$0xff] %vm510_vm5, %v1908_v40  ;;  %v1427_v11 = vadd.f32 %v5172_v48, %v1101_v15  ;;  %v1291_v52 = vpop.f32.mrb[23].mxu1  ;;  %v7940_v3 = vld [vmem:[#allocation40_spill] sm:$0xff]  ;;  %v7941_v48 = vld [vmem:[#allocation42_spill] sm:$0xff] }
 0x14a   : > { %1939 = vst.msk [vmem:[#allocation3] sm:$0xff] %vm510_vm5, %v1907_v54  ;;  %v1426_v27 = vadd.f32 %v1291_v52, %v1100_v53  ;;  %v1584_v58 = vld [vmem:[#allocation3 + $0x18] sm:$0xff]  ;;  %v5222_v62 = vpop.f32.mrb[22].mxu0  ;;  %v1108_v53 = vld [vmem:[#allocation3 + $0x70] sm:$0xff] }
 0x14b   : > { %5486 = vmatmul.mubr.msk.f32.gmra.mrb[128].mxu1 %vm315_vm1, %v6476_v6  ;;  %1459 = vst.msk [vmem:[#allocation3 + $0x38] sm:$0xff] %vm510_vm5, %v1427_v11  ;;  %v1910_v23 = vadd.f32 %v5216_v56, %v1584_v58  ;;  %v1583_v59 = vld [vmem:[#allocation3 + $0x10] sm:$0xff]  ;;  %v1778_v30 = vpop.f32.mrb[23].mxu0  ;;  %5536 = vmatmul.mubr.msk.f32.gmra.mrb[128].mxu0 %vm315_vm1, %v7929_v21  ;;  %v1109_v54 = vld [vmem:[#allocation3 + $0x78] sm:$0xff] }
 0x14c   : > { %5488 = vmatprep.mubr.msk.f32.mxu1 %vm315_vm1, %v7907_v26  ;;  %1458 = vst.msk [vmem:[#allocation3 + $0x30] sm:$0xff] %vm510_vm5, %v1426_v27  ;;  %v1909_v6 = vadd.f32 %v1758_v47, %v1583_v59  ;;  %v5175_v8 = vpop.f32.mrb[24].mxu1  ;;  %5538 = vmatprep.mubr.msk.f32.mxu0 %vm315_vm1, %v7930_v35  ;;  %v7939_v47 = vld [vmem:[#allocation10_spill] sm:$0xff]  ;;  %v7942_v27 = vld [vmem:[#allocation43_spill] sm:$0xff] }
 0x14d   : > { %1942 = vst.msk [vmem:[#allocation3 + $0x18] sm:$0xff] %vm510_vm5, %v1910_v23  ;;  %v1429_v26 = vadd.f32 %v5175_v8, %v1103_v20  ;;  %v1301_v41 = vpop.f32.mrb[25].mxu1  ;;  %v7943_v23 = vld [vmem:[#allocation44_spill] sm:$0xff]  ;;  %v7944_v20 = vld [vmem:[#allocation45_spill] sm:$0xff] }
 0x14e   : > { %1941 = vst.msk [vmem:[#allocation3 + $0x10] sm:$0xff] %vm510_vm5, %v1909_v6  ;;  %v1428_v21 = vadd.f32 %v1301_v41, %v1102_v44  ;;  %v1586_v28 = vld [vmem:[#allocation3 + $0x28] sm:$0xff]  ;;  %v5225_v24 = vpop.f32.mrb[24].mxu0  ;;  %v509_v8 = vld [vmem:[#allocation2 + $0x278] sm:$0x3] }
 0x14f   : > { %5489 = vmatmul.mubr.msk.f32.gmra.mrb[130].mxu1 %vm315_vm1, %v6500_v49  ;;  %1461 = vst.msk [vmem:[#allocation3 + $0x48] sm:$0xff] %vm510_vm5, %v1429_v26  ;;  %v1912_v35 = vadd.f32 %v5219_v0, %v1586_v28  ;;  %v1585_v31 = vld [vmem:[#allocation3 + $0x20] sm:$0xff]  ;;  %v1788_v7 = vpop.f32.mrb[25].mxu0  ;;  %5539 = vmatmul.mubr.msk.f32.gmra.mrb[130].mxu0 %vm315_vm1, %v7931_v42  ;;  %v3699_v49 = vrot.slane %v6996_v14, 2  ;;  %v1111_v44 = vld [vmem:[#allocation3 + $0x88] sm:$0xff] }
 0x150   : > { %5491 = vmatprep.mubr.msk.f32.mxu1 %vm315_vm1, %v6505_v39  ;;  %1460 = vst.msk [vmem:[#allocation3 + $0x40] sm:$0xff] %vm510_vm5, %v1428_v21  ;;  %v1911_v50 = vadd.f32 %v1768_v32, %v1585_v31  ;;  %v5178_v33 = vpop.f32.mrb[26].mxu1  ;;  %5541 = vmatprep.mubr.msk.f32.mxu0 %vm315_vm1, %v7932_v13  ;;  %v3700_v39 = vrot.slane %v489_v43, 2  ;;  %v1110_v28 = vld [vmem:[#allocation3 + $0x80] sm:$0xff] }
 0x151   : > { %1944 = vst.msk [vmem:[#allocation3 + $0x28] sm:$0xff] %vm510_vm5, %v1912_v35  ;;  %v1431_v63 = vadd.f32 %v5178_v33, %v1105_v57  ;;  %v1311_v4 = vpop.f32.mrb[27].mxu1  ;;  %v3356_v35 = vrot.slane %v7035_v12, 1  ;;  %v3357_v57 = vrot.slane %v509_v8, 1 }
 0x152   : > { %1943 = vst.msk [vmem:[#allocation3 + $0x20] sm:$0xff] %vm510_vm5, %v1911_v50  ;;  %v1430_v42 = vadd.f32 %v1311_v4, %v1104_v9  ;;  %v1588_v14 = vld [vmem:[#allocation3 + $0x38] sm:$0xff]  ;;  %v5228_v55 = vpop.f32.mrb[26].mxu0  ;;  %v3701_v61 = vsel %vm1484_vm4, %v3699_v49, %v3700_v39  ;;  %v3702_v4 = vrot.slane %v7035_v12, 2 }
 0x153   : > { %5492 = vmatmul.mubr.msk.f32.gmra.mrb[132].mxu1 %vm315_vm1, %v6529_v34  ;;  %1463 = vst.msk [vmem:[#allocation3 + $0x58] sm:$0xff] %vm510_vm5, %v1431_v63  ;;  %v1914_v13 = vadd.f32 %v5222_v62, %v1588_v14  ;;  %v1587_v10 = vld [vmem:[#allocation3 + $0x30] sm:$0xff]  ;;  %v1798_v17 = vpop.f32.mrb[27].mxu0  ;;  %5542 = vmatmul.mubr.msk.f32.gmra.mrb[132].mxu0 %vm315_vm1, %v7938_v19  ;;  %v7948_v9 = vld [vmem:[#allocation49_spill] sm:$0xff] }
 0x154   : > { %5494 = vmatprep.mubr.msk.f32.mxu1 %vm315_vm1, %v7937_v36  ;;  %1462 = vst.msk [vmem:[#allocation3 + $0x50] sm:$0xff] %vm510_vm5, %v1430_v42  ;;  %v1913_v34 = vadd.f32 %v1778_v30, %v1587_v10  ;;  %v5181_v56 = vpop.f32.mrb[28].mxu1  ;;  %5544 = vmatprep.mubr.msk.f32.mxu0 %vm315_vm1, %v7939_v47  ;;  %v7947_v49 = vld [vmem:[#allocation48_spill] sm:$0xff] }
 0x155   : > { %1946 = vst.msk [vmem:[#allocation3 + $0x38] sm:$0xff] %vm510_vm5, %v1914_v13  ;;  %v1433_v29 = vadd.f32 %v5181_v56, %v1107_v46  ;;  %v1321_v2 = vpop.f32.mrb[29].mxu1  ;;  %v1113_v14 = vld [vmem:[#allocation3 + $0x98] sm:$0xff]  ;;  %v1112_v13 = vld [vmem:[#allocation3 + $0x90] sm:$0xff]  ;;  %v3358_v46 = vsel %vm997_vm3, %v3356_v35, %v3357_v57 }
 0x156   : > { %1945 = vst.msk [vmem:[#allocation3 + $0x30] sm:$0xff] %vm510_vm5, %v1913_v34  ;;  %v1432_v5 = vadd.f32 %v1321_v2, %v1106_v18  ;;  %v1590_v16 = vld [vmem:[#allocation3 + $0x48] sm:$0xff]  ;;  %v5231_v25 = vpop.f32.mrb[28].mxu0  ;;  %v7950_v34 = vld [vmem:[#allocation28_spill] sm:$0xff] }
 0x157   : > { %5495 = vmatmul.mubr.msk.f32.gmra.mrb[134].mxu1 %vm315_vm1, %v3355_v51  ;;  %1465 = vst.msk [vmem:[#allocation3 + $0x68] sm:$0xff] %vm510_vm5, %v1433_v29  ;;  %v1916_v0 = vadd.f32 %v5225_v24, %v1590_v16  ;;  %v1589_v40 = vld [vmem:[#allocation3 + $0x40] sm:$0xff]  ;;  %v1808_v38 = vpop.f32.mrb[29].mxu0  ;;  %5545 = vmatmul.mubr.msk.f32.gmra.mrb[134].mxu0 %vm315_vm1, %v3701_v61  ;;  %v3703_v51 = vrot.slane %v509_v8, 2  ;;  %v1115_v18 = vld [vmem:[#allocation3 + $0xa8] sm:$0xff] }
 0x158   : > { %5497 = vmatprep.mubr.msk.f32.mxu1 %vm315_vm1, %v7940_v3  ;;  %1464 = vst.msk [vmem:[#allocation3 + $0x60] sm:$0xff] %vm510_vm5, %v1432_v5  ;;  %v1915_v32 = vadd.f32 %v1788_v7, %v1589_v40  ;;  %v5184_v15 = vpop.f32.mrb[30].mxu1  ;;  %5547 = vmatprep.mubr.msk.f32.mxu0 %vm315_vm1, %v7941_v48  ;;  %v1114_v3 = vld [vmem:[#allocation3 + $0xa0] sm:$0xff] }
 0x159   : > { %1948 = vst.msk [vmem:[#allocation3 + $0x48] sm:$0xff] %vm510_vm5, %v1916_v0  ;;  %v1435_v11 = vadd.f32 %v5184_v15, %v1109_v54  ;;  %v1331_v52 = vpop.f32.mrb[31].mxu1  ;;  %v3704_v5 = vsel %vm1484_vm4, %v3702_v4, %v3703_v51  ;;  %v1117_v15 = vld [vmem:[#allocation3 + $0xb8] sm:$0xff] }
 0x15a   : > { %1947 = vst.msk [vmem:[#allocation3 + $0x40] sm:$0xff] %vm510_vm5, %v1915_v32  ;;  %v1434_v58 = vadd.f32 %v1331_v52, %v1108_v53  ;;  %v1592_v62 = vld [vmem:[#allocation3 + $0x58] sm:$0xff]  ;;  %v5234_v59 = vpop.f32.mrb[30].mxu0  ;;  %v1116_v53 = vld [vmem:[#allocation3 + $0xb0] sm:$0xff] }
 0x15b   : > { %5498 = vmatmul.mubr.msk.f32.gmra.mrb[136].mxu1 %vm315_vm1, %v7942_v27  ;;  %1467 = vst.msk [vmem:[#allocation3 + $0x78] sm:$0xff] %vm510_vm5, %v1435_v11  ;;  %v1918_v30 = vadd.f32 %v5228_v55, %v1592_v62  ;;  %v1591_v43 = vld [vmem:[#allocation3 + $0x50] sm:$0xff]  ;;  %v1818_v6 = vpop.f32.mrb[31].mxu0  ;;  %5548 = vmatmul.mubr.msk.f32.gmra.mrb[136].mxu0 %vm315_vm1, %v7944_v20 }
 0x15c   : > { %5500 = vmatprep.mubr.msk.f32.mxu1 %vm315_vm1, %v7943_v23  ;;  %1466 = vst.msk [vmem:[#allocation3 + $0x70] sm:$0xff] %vm510_vm5, %v1434_v58  ;;  %v1917_v26 = vadd.f32 %v1798_v17, %v1591_v43  ;;  %v5187_v41 = vpop.f32.mrb[32].mxu1  ;;  %5550 = vmatprep.mubr.msk.f32.mxu0 %vm315_vm1, %v7945_v45  ;;  %v7949_v17 = vld [vmem:[#allocation50_spill] sm:$0xff] }
 0x15d   : > { %1950 = vst.msk [vmem:[#allocation3 + $0x58] sm:$0xff] %vm510_vm5, %v1918_v30  ;;  %v1437_v21 = vadd.f32 %v5187_v41, %v1111_v44  ;;  %v1341_v24 = vpop.f32.mrb[33].mxu1 }
 0x15e   : > { %1949 = vst.msk [vmem:[#allocation3 + $0x50] sm:$0xff] %vm510_vm5, %v1917_v26  ;;  %v1436_v31 = vadd.f32 %v1341_v24, %v1110_v28  ;;  %v1594_v7 = vld [vmem:[#allocation3 + $0x68] sm:$0xff]  ;;  %v5237_v50 = vpop.f32.mrb[32].mxu0  ;;  %v1118_v26 = vld [vmem:[#allocation3 + $0xc0] sm:$0xff] }
 0x15f   : > { %5501 = vmatmul.mubr.msk.f32.gmra.mrb[138].mxu1 %vm315_vm1, %v7946_v1  ;;  %1469 = vst.msk [vmem:[#allocation3 + $0x88] sm:$0xff] %vm510_vm5, %v1437_v21  ;;  %v1920_v33 = vadd.f32 %v5231_v25, %v1594_v7  ;;  %v1593_v39 = vld [vmem:[#allocation3 + $0x60] sm:$0xff]  ;;  %v1828_v63 = vpop.f32.mrb[33].mxu0  ;;  %5551 = vmatmul.mubr.msk.f32.gmra.mrb[138].mxu0 %vm315_vm1, %v7948_v9 }
 0x160   : > { %5503 = vmatprep.mubr.msk.f32.mxu1 %vm315_vm1, %v7947_v49  ;;  %1468 = vst.msk [vmem:[#allocation3 + $0x80] sm:$0xff] %vm510_vm5, %v1436_v31  ;;  %v1919_v42 = vadd.f32 %v1808_v38, %v1593_v39  ;;  %v5190_v36 = vpop.f32.mrb[34].mxu1  ;;  %5553 = vmatprep.mubr.msk.f32.mxu0 %vm315_vm1, %v6687_v37  ;;  %v1121_v31 = vld [vmem:[#allocation3 + $0xd8] sm:$0xff] }
 0x161   : > { %1952 = vst.msk [vmem:[#allocation3 + $0x68] sm:$0xff] %vm510_vm5, %v1920_v33  ;;  %v1439_v55 = vadd.f32 %v5190_v36, %v1113_v14  ;;  %v1351_v10 = vpop.f32.mrb[35].mxu1  ;;  %v1123_v36 = vld [vmem:[#allocation3 + $0xe8] sm:$0xff] }
 0x162   : > { %1951 = vst.msk [vmem:[#allocation3 + $0x60] sm:$0xff] %vm510_vm5, %v1919_v42  ;;  %v1438_v12 = vadd.f32 %v1351_v10, %v1112_v13  ;;  %v1596_v19 = vld [vmem:[#allocation3 + $0x78] sm:$0xff]  ;;  %v5240_v56 = vpop.f32.mrb[34].mxu0  ;;  %v1122_v13 = vld [vmem:[#allocation3 + $0xe0] sm:$0xff] }
 0x163   : > { %5504 = vmatmul.mubr.msk.f32.gmra.mrb[140].mxu1 %vm315_vm1, %v7949_v17  ;;  %1471 = vst.msk [vmem:[#allocation3 + $0x98] sm:$0xff] %vm510_vm5, %v1439_v55  ;;  %v1922_v37 = vadd.f32 %v5234_v59, %v1596_v19  ;;  %v1595_v47 = vld [vmem:[#allocation3 + $0x70] sm:$0xff]  ;;  %v1838_v61 = vpop.f32.mrb[35].mxu0  ;;  %5554 = vmatmul.mubr.msk.f32.gmra.mrb[140].mxu0 %vm315_vm1, %v6699_v60 }
 0x164   : > { %5506 = vmatprep.mubr.msk.f32.mxu1 %vm315_vm1, %v7950_v34  ;;  %1470 = vst.msk [vmem:[#allocation3 + $0x90] sm:$0xff] %vm510_vm5, %v1438_v12  ;;  %v1921_v29 = vadd.f32 %v1818_v6, %v1595_v47  ;;  %v5193_v2 = vpop.f32.mrb[36].mxu1  ;;  %5556 = vmatprep.mubr.msk.f32.mxu0 %vm315_vm1, %v7027_v22  ;;  %v1119_v6 = vld [vmem:[#allocation3 + $0xc8] sm:$0xff]  ;;  %v1125_v47 = vld [vmem:[#allocation3 + $0xf8] sm:$0xff] }
 0x165   : > { %1954 = vst.msk [vmem:[#allocation3 + $0x78] sm:$0xff] %vm510_vm5, %v1922_v37  ;;  %v1441_v16 = vadd.f32 %v5193_v2, %v1115_v18  ;;  %v1361_v25 = vpop.f32.mrb[37].mxu1  ;;  %v1124_v18 = vld [vmem:[#allocation3 + $0xf0] sm:$0xff] }
 0x166   : > { %1953 = vst.msk [vmem:[#allocation3 + $0x70] sm:$0xff] %vm510_vm5, %v1921_v29  ;;  %v1440_v60 = vadd.f32 %v1361_v25, %v1114_v3  ;;  %v1598_v0 = vld [vmem:[#allocation3 + $0x88] sm:$0xff]  ;;  %v5243_v40 = vpop.f32.mrb[36].mxu0 }
 0x167   : > { %5507 = vmatmul.mubr.msk.f32.gmra.mrb[142].mxu1 %vm315_vm1, %v3358_v46  ;;  %1473 = vst.msk [vmem:[#allocation3 + $0xa8] sm:$0xff] %vm510_vm5, %v1441_v16  ;;  %v1924_v38 = vadd.f32 %v5237_v50, %v1598_v0  ;;  %v1597_v32 = vld [vmem:[#allocation3 + $0x80] sm:$0xff]  ;;  %v1848_v54 = vpop.f32.mrb[37].mxu0  ;;  %5557 = vmatmul.mubr.msk.f32.gmra.mrb[142].mxu0 %vm315_vm1, %v3704_v5  ;;  %v1120_v50 = vld [vmem:[#allocation3 + $0xd0] sm:$0xff] }
 0x168   : > { %1472 = vst.msk [vmem:[#allocation3 + $0xa0] sm:$0xff] %vm510_vm5, %v1440_v60  ;;  %v1923_v22 = vadd.f32 %v1828_v63, %v1597_v32  ;;  %v5196_v48 = vpop.f32.mrb[38].mxu1 }
 0x169   : > { %1956 = vst.msk [vmem:[#allocation3 + $0x88] sm:$0xff] %vm510_vm5, %v1924_v38  ;;  %v1443_v11 = vadd.f32 %v5196_v48, %v1117_v15  ;;  %v1371_v52 = vpop.f32.mrb[39].mxu1  ;;  %v1972_v38 = vld [vmem:[#allocation3 + $0x8] sm:$0xff] }
 0x16a   : > { %1955 = vst.msk [vmem:[#allocation3 + $0x80] sm:$0xff] %vm510_vm5, %v1923_v22  ;;  %v1442_v27 = vadd.f32 %v1371_v52, %v1116_v53  ;;  %v1600_v58 = vld [vmem:[#allocation3 + $0x98] sm:$0xff]  ;;  %v5246_v62 = vpop.f32.mrb[38].mxu0  ;;  %v1971_v22 = vld [vmem:[#allocation3] sm:$0xff] }
 0x16b   : > { %1475 = vst.msk [vmem:[#allocation3 + $0xb8] sm:$0xff] %vm510_vm5, %v1443_v11  ;;  %v1926_v23 = vadd.f32 %v5240_v56, %v1600_v58  ;;  %v1599_v59 = vld [vmem:[#allocation3 + $0x90] sm:$0xff]  ;;  %v1858_v30 = vpop.f32.mrb[39].mxu0 }
 0x16c   : > { %1474 = vst.msk [vmem:[#allocation3 + $0xb0] sm:$0xff] %vm510_vm5, %v1442_v27  ;;  %v1925_v43 = vadd.f32 %v1838_v61, %v1599_v59  ;;  %v5199_v20 = vpop.f32.mrb[40].mxu1 }
 0x16d   : > { %1958 = vst.msk [vmem:[#allocation3 + $0x98] sm:$0xff] %vm510_vm5, %v1926_v23  ;;  %v1445_v8 = vadd.f32 %v5199_v20, %v1119_v6  ;;  %v1381_v44 = vpop.f32.mrb[41].mxu1  ;;  %v1974_v23 = vld [vmem:[#allocation3 + $0x18] sm:$0xff] }
 0x16e   : > { %1957 = vst.msk [vmem:[#allocation3 + $0x90] sm:$0xff] %vm510_vm5, %v1925_v43  ;;  %v1444_v41 = vadd.f32 %v1381_v44, %v1118_v26  ;;  %v1602_v45 = vld [vmem:[#allocation3 + $0xa8] sm:$0xff]  ;;  %v5249_v21 = vpop.f32.mrb[40].mxu0  ;;  %v1973_v43 = vld [vmem:[#allocation3 + $0x10] sm:$0xff] }
 0x16f   : > { %1477 = vst.msk [vmem:[#allocation3 + $0xc8] sm:$0xff] %vm510_vm5, %v1445_v8  ;;  %v1928_v28 = vadd.f32 %v5243_v40, %v1602_v45  ;;  %v1601_v24 = vld [vmem:[#allocation3 + $0xa0] sm:$0xff]  ;;  %v1868_v1 = vpop.f32.mrb[41].mxu0 }
 0x170   : > { %1476 = vst.msk [vmem:[#allocation3 + $0xc0] sm:$0xff] %vm510_vm5, %v1444_v41  ;;  %v1927_v35 = vadd.f32 %v1848_v54, %v1601_v24  ;;  %v5202_v7 = vpop.f32.mrb[42].mxu1 }
 0x171   : > { %1960 = vst.msk [vmem:[#allocation3 + $0xa8] sm:$0xff] %vm510_vm5, %v1928_v28  ;;  %v1447_v49 = vadd.f32 %v5202_v7, %v1121_v31  ;;  %v1391_v57 = vpop.f32.mrb[43].mxu1  ;;  %v1976_v28 = vld [vmem:[#allocation3 + $0x28] sm:$0xff] }
 0x172   : > { %1959 = vst.msk [vmem:[#allocation3 + $0xa0] sm:$0xff] %vm510_vm5, %v1927_v35  ;;  %v1446_v33 = vadd.f32 %v1391_v57, %v1120_v50  ;;  %v1604_v39 = vld [vmem:[#allocation3 + $0xb8] sm:$0xff]  ;;  %v5252_v63 = vpop.f32.mrb[42].mxu0  ;;  %v1975_v35 = vld [vmem:[#allocation3 + $0x20] sm:$0xff] }
 0x173   : > { %1479 = vst.msk [vmem:[#allocation3 + $0xd8] sm:$0xff] %vm510_vm5, %v1447_v49  ;;  %v1930_v9 = vadd.f32 %v5246_v62, %v1604_v39  ;;  %v1603_v4 = vld [vmem:[#allocation3 + $0xb0] sm:$0xff]  ;;  %v1878_v42 = vpop.f32.mrb[43].mxu0 }
 0x174   : > { %1478 = vst.msk [vmem:[#allocation3 + $0xd0] sm:$0xff] %vm510_vm5, %v1446_v33  ;;  %v1929_v14 = vadd.f32 %v1858_v30, %v1603_v4 }
 0x175   : > { %1962 = vst.msk [vmem:[#allocation3 + $0xb8] sm:$0xff] %vm510_vm5, %v1930_v9  ;;  %v1978_v9 = vld [vmem:[#allocation3 + $0x38] sm:$0xff] }
 0x176   : > { %v5205_v51 = vpop.f32.mrb[44].mxu1  ;;  %1961 = vst.msk [vmem:[#allocation3 + $0xb0] sm:$0xff] %vm510_vm5, %v1929_v14  ;;  %v1606_v12 = vld [vmem:[#allocation3 + $0xc8] sm:$0xff]  ;;  %v5255_v19 = vpop.f32.mrb[44].mxu0  ;;  %v1977_v14 = vld [vmem:[#allocation3 + $0x30] sm:$0xff] }
 0x177   : > { %v1449_v55 = vadd.f32 %v5205_v51, %v1123_v36  ;;  %v1401_v10 = vpop.f32.mrb[45].mxu1  ;;  %v1932_v34 = vadd.f32 %v5249_v21, %v1606_v12  ;;  %v1605_v46 = vld [vmem:[#allocation3 + $0xc0] sm:$0xff]  ;;  %v1888_v56 = vpop.f32.mrb[45].mxu0 }
 0x178   : > { %v1448_v17 = vadd.f32 %v1401_v10, %v1122_v13  ;;  %v1931_v37 = vadd.f32 %v1868_v1, %v1605_v46 }
 0x179   : > { %1481 = vst.msk [vmem:[#allocation3 + $0xe8] sm:$0xff] %vm510_vm5, %v1449_v55  ;;  %1964 = vst.msk [vmem:[#allocation3 + $0xc8] sm:$0xff] %vm510_vm5, %v1932_v34  ;;  %v1980_v34 = vld [vmem:[#allocation3 + $0x48] sm:$0xff] }
 0x17a   : > { %1480 = vst.msk [vmem:[#allocation3 + $0xe0] sm:$0xff] %vm510_vm5, %v1448_v17  ;;  %v5208_v61 = vpop.f32.mrb[46].mxu1  ;;  %1963 = vst.msk [vmem:[#allocation3 + $0xc0] sm:$0xff] %vm510_vm5, %v1931_v37  ;;  %v1608_v16 = vld [vmem:[#allocation3 + $0xd8] sm:$0xff]  ;;  %v5258_v3 = vpop.f32.mrb[46].mxu0  ;;  %v1979_v37 = vld [vmem:[#allocation3 + $0x40] sm:$0xff] }
 0x17b   : > { %v1451_v29 = vadd.f32 %v5208_v61, %v1125_v47  ;;  %v1411_v2 = vpop.f32.mrb[47].mxu1  ;;  %v1934_v25 = vadd.f32 %v5252_v63, %v1608_v16  ;;  %v1607_v60 = vld [vmem:[#allocation3 + $0xd0] sm:$0xff]  ;;  %v1898_v0 = vpop.f32.mrb[47].mxu0 }
 0x17c   : > { %v1450_v5 = vadd.f32 %v1411_v2, %v1124_v18  ;;  %v1933_v40 = vadd.f32 %v1878_v42, %v1607_v60 }
 0x17d   : > { %1483 = vst.msk [vmem:[#allocation3 + $0xf8] sm:$0xff] %vm510_vm5, %v1451_v29  ;;  %1966 = vst.msk [vmem:[#allocation3 + $0xd8] sm:$0xff] %vm510_vm5, %v1934_v25  ;;  %v1982_v25 = vld [vmem:[#allocation3 + $0x58] sm:$0xff] }
 0x17e   : > { %1482 = vst.msk [vmem:[#allocation3 + $0xf0] sm:$0xff] %vm510_vm5, %v1450_v5  ;;  %v5263_v32 = vpop.f32.mrb[48].mxu1  ;;  %1965 = vst.msk [vmem:[#allocation3 + $0xd0] sm:$0xff] %vm510_vm5, %v1933_v40  ;;  %v5313_v53 = vpop.f32.mrb[48].mxu0  ;;  %v1981_v40 = vld [vmem:[#allocation3 + $0x50] sm:$0xff] }
 0x17f   : > { %v2246_v54 = vadd.f32 %v5263_v32, %v1972_v38  ;;  %v2086_v15 = vpop.f32.mrb[49].mxu1  ;;  %v2436_v58 = vpop.f32.mrb[49].mxu0 }
 0x180   : > { %v1610_v48 = vld [vmem:[#allocation3 + $0xe8] sm:$0xff]  ;;  %v2245_v11 = vadd.f32 %v2086_v15, %v1971_v22 }
 0x181   : > { %2278 = vst.msk [vmem:[#allocation3 + $0x8] sm:$0xff] %vm510_vm5, %v2246_v54  ;;  %v1936_v52 = vadd.f32 %v5255_v19, %v1610_v48  ;;  %v1609_v27 = vld [vmem:[#allocation3 + $0xe0] sm:$0xff] }
 0x182   : > { %2277 = vst.msk [vmem:[#allocation3] sm:$0xff] %vm510_vm5, %v2245_v11  ;;  %v1935_v62 = vadd.f32 %v1888_v56, %v1609_v27  ;;  %v5266_v59 = vpop.f32.mrb[50].mxu1  ;;  %v5316_v26 = vpop.f32.mrb[50].mxu0 }
 0x183   : > { %1968 = vst.msk [vmem:[#allocation3 + $0xe8] sm:$0xff] %vm510_vm5, %v1936_v52  ;;  %v2248_v30 = vadd.f32 %v5266_v59, %v1974_v23  ;;  %v2096_v6 = vpop.f32.mrb[51].mxu1  ;;  %v2446_v45 = vpop.f32.mrb[51].mxu0  ;;  %v1984_v52 = vld [vmem:[#allocation3 + $0x68] sm:$0xff] }
 0x184   : > { %1967 = vst.msk [vmem:[#allocation3 + $0xe0] sm:$0xff] %vm510_vm5, %v1935_v62  ;;  %v1612_v20 = vld [vmem:[#allocation3 + $0xf8] sm:$0xff]  ;;  %v2247_v8 = vadd.f32 %v2096_v6, %v1973_v43  ;;  %v1983_v62 = vld [vmem:[#allocation3 + $0x60] sm:$0xff] }
 0x185   : > { %2280 = vst.msk [vmem:[#allocation3 + $0x18] sm:$0xff] %vm510_vm5, %v2248_v30  ;;  %v1938_v44 = vadd.f32 %v5258_v3, %v1612_v20  ;;  %v1611_v41 = vld [vmem:[#allocation3 + $0xf0] sm:$0xff] }
 0x186   : > { %2279 = vst.msk [vmem:[#allocation3 + $0x10] sm:$0xff] %vm510_vm5, %v2247_v8  ;;  %v1937_v21 = vadd.f32 %v1898_v0, %v1611_v41  ;;  %v5269_v24 = vpop.f32.mrb[52].mxu1  ;;  %v5319_v50 = vpop.f32.mrb[52].mxu0 }
 0x187   : > { %1970 = vst.msk [vmem:[#allocation3 + $0xf8] sm:$0xff] %vm510_vm5, %v1938_v44  ;;  %v2250_v1 = vadd.f32 %v5269_v24, %v1976_v28  ;;  %v2106_v31 = vpop.f32.mrb[53].mxu1  ;;  %v2456_v39 = vpop.f32.mrb[53].mxu0  ;;  %v1986_v44 = vld [vmem:[#allocation3 + $0x78] sm:$0xff] }
 0x188   : > { %1969 = vst.msk [vmem:[#allocation3 + $0xf0] sm:$0xff] %vm510_vm5, %v1937_v21  ;;  %v2249_v7 = vadd.f32 %v2106_v31, %v1975_v35  ;;  %v2326_v49 = vld [vmem:[#allocation3 + $0x8] sm:$0xff]  ;;  %v1985_v21 = vld [vmem:[#allocation3 + $0x70] sm:$0xff] }
 0x189   : > { %2282 = vst.msk [vmem:[#allocation3 + $0x28] sm:$0xff] %vm510_vm5, %v2250_v1  ;;  %v2596_v57 = vadd.f32 %v5313_v53, %v2326_v49  ;;  %v2325_v33 = vld [vmem:[#allocation3] sm:$0xff] }
 0x18a   : > { %2281 = vst.msk [vmem:[#allocation3 + $0x20] sm:$0xff] %vm510_vm5, %v2249_v7  ;;  %v2595_v63 = vadd.f32 %v2436_v58, %v2325_v33  ;;  %v5272_v4 = vpop.f32.mrb[54].mxu1  ;;  %v5322_v13 = vpop.f32.mrb[54].mxu0 }
 0x18b   : > { %2628 = vst.msk [vmem:[#allocation3 + $0x8] sm:$0xff] %vm510_vm5, %v2596_v57  ;;  %v2252_v42 = vadd.f32 %v5272_v4, %v1978_v9  ;;  %v2116_v36 = vpop.f32.mrb[55].mxu1  ;;  %v2466_v12 = vpop.f32.mrb[55].mxu0  ;;  %v1988_v57 = vld [vmem:[#allocation3 + $0x88] sm:$0xff] }
 0x18c   : > { %2627 = vst.msk [vmem:[#allocation3] sm:$0xff] %vm510_vm5, %v2595_v63  ;;  %v2251_v51 = vadd.f32 %v2116_v36, %v1977_v14  ;;  %v2328_v55 = vld [vmem:[#allocation3 + $0x18] sm:$0xff]  ;;  %v1987_v63 = vld [vmem:[#allocation3 + $0x80] sm:$0xff] }
 0x18d   : > { %2284 = vst.msk [vmem:[#allocation3 + $0x38] sm:$0xff] %vm510_vm5, %v2252_v42  ;;  %v2598_v10 = vadd.f32 %v5316_v26, %v2328_v55  ;;  %v2327_v17 = vld [vmem:[#allocation3 + $0x10] sm:$0xff] }
 0x18e   : > { %2283 = vst.msk [vmem:[#allocation3 + $0x30] sm:$0xff] %vm510_vm5, %v2251_v51  ;;  %v2597_v19 = vadd.f32 %v2446_v45, %v2327_v17  ;;  %v5275_v46 = vpop.f32.mrb[56].mxu1  ;;  %v5325_v18 = vpop.f32.mrb[56].mxu0 }
 0x18f   : > { %2630 = vst.msk [vmem:[#allocation3 + $0x18] sm:$0xff] %vm510_vm5, %v2598_v10  ;;  %v2254_v56 = vadd.f32 %v5275_v46, %v1980_v34  ;;  %v2126_v47 = vpop.f32.mrb[57].mxu1  ;;  %v2476_v16 = vpop.f32.mrb[57].mxu0  ;;  %v1990_v10 = vld [vmem:[#allocation3 + $0x98] sm:$0xff] }
 0x190   : > { %2629 = vst.msk [vmem:[#allocation3 + $0x10] sm:$0xff] %vm510_vm5, %v2597_v19  ;;  %v2253_v61 = vadd.f32 %v2126_v47, %v1979_v37  ;;  %v2330_v29 = vld [vmem:[#allocation3 + $0x28] sm:$0xff]  ;;  %v1989_v19 = vld [vmem:[#allocation3 + $0x90] sm:$0xff] }
 0x191   : > { %2286 = vst.msk [vmem:[#allocation3 + $0x48] sm:$0xff] %vm510_vm5, %v2254_v56  ;;  %v2600_v2 = vadd.f32 %v5319_v50, %v2330_v29  ;;  %v2329_v5 = vld [vmem:[#allocation3 + $0x20] sm:$0xff] }
 0x192   : > { %2285 = vst.msk [vmem:[#allocation3 + $0x40] sm:$0xff] %vm510_vm5, %v2253_v61  ;;  %v2599_v3 = vadd.f32 %v2456_v39, %v2329_v5  ;;  %v5278_v60 = vpop.f32.mrb[58].mxu1  ;;  %v5328_v22 = vpop.f32.mrb[58].mxu0 }
 0x193   : > { %2632 = vst.msk [vmem:[#allocation3 + $0x28] sm:$0xff] %vm510_vm5, %v2600_v2  ;;  %v2256_v0 = vadd.f32 %v5278_v60, %v1982_v25  ;;  %v2136_v38 = vpop.f32.mrb[59].mxu1  ;;  %v2486_v11 = vpop.f32.mrb[59].mxu0  ;;  %v1992_v2 = vld [vmem:[#allocation3 + $0xa8] sm:$0xff] }
 0x194   : > { %2631 = vst.msk [vmem:[#allocation3 + $0x20] sm:$0xff] %vm510_vm5, %v2599_v3  ;;  %v2255_v32 = vadd.f32 %v2136_v38, %v1981_v40  ;;  %v2332_v54 = vld [vmem:[#allocation3 + $0x38] sm:$0xff]  ;;  %v1991_v3 = vld [vmem:[#allocation3 + $0xa0] sm:$0xff] }
 0x195   : > { %2288 = vst.msk [vmem:[#allocation3 + $0x58] sm:$0xff] %vm510_vm5, %v2256_v0  ;;  %v2602_v15 = vadd.f32 %v5322_v13, %v2332_v54  ;;  %v2331_v48 = vld [vmem:[#allocation3 + $0x30] sm:$0xff] }
 0x196   : > { %2287 = vst.msk [vmem:[#allocation3 + $0x50] sm:$0xff] %vm510_vm5, %v2255_v32  ;;  %v2601_v53 = vadd.f32 %v2466_v12, %v2331_v48  ;;  %v5281_v27 = vpop.f32.mrb[60].mxu1  ;;  %v5331_v43 = vpop.f32.mrb[60].mxu0 }
 0x197   : > { %2634 = vst.msk [vmem:[#allocation3 + $0x38] sm:$0xff] %vm510_vm5, %v2602_v15  ;;  %v2258_v58 = vadd.f32 %v5281_v27, %v1984_v52  ;;  %v2146_v23 = vpop.f32.mrb[61].mxu1  ;;  %v2496_v8 = vpop.f32.mrb[61].mxu0  ;;  %v1994_v15 = vld [vmem:[#allocation3 + $0xb8] sm:$0xff] }
 0x198   : > { %2633 = vst.msk [vmem:[#allocation3 + $0x30] sm:$0xff] %vm510_vm5, %v2601_v53  ;;  %v2257_v59 = vadd.f32 %v2146_v23, %v1983_v62  ;;  %v2334_v30 = vld [vmem:[#allocation3 + $0x48] sm:$0xff]  ;;  %v1993_v53 = vld [vmem:[#allocation3 + $0xb0] sm:$0xff] }
 0x199   : > { %2290 = vst.msk [vmem:[#allocation3 + $0x68] sm:$0xff] %vm510_vm5, %v2258_v58  ;;  %v2604_v6 = vadd.f32 %v5325_v18, %v2334_v30  ;;  %v2333_v20 = vld [vmem:[#allocation3 + $0x40] sm:$0xff] }
 0x19a   : > { %2289 = vst.msk [vmem:[#allocation3 + $0x60] sm:$0xff] %vm510_vm5, %v2257_v59  ;;  %v2603_v26 = vadd.f32 %v2476_v16, %v2333_v20  ;;  %v5284_v41 = vpop.f32.mrb[62].mxu1  ;;  %v5334_v35 = vpop.f32.mrb[62].mxu0 }
 0x19b   : > { %2636 = vst.msk [vmem:[#allocation3 + $0x48] sm:$0xff] %vm510_vm5, %v2604_v6  ;;  %v2260_v45 = vadd.f32 %v5284_v41, %v1986_v44  ;;  %v2156_v28 = vpop.f32.mrb[63].mxu1  ;;  %v2506_v49 = vpop.f32.mrb[63].mxu0  ;;  %v1996_v6 = vld [vmem:[#allocation3 + $0xc8] sm:$0xff] }
 0x19c   : > { %2635 = vst.msk [vmem:[#allocation3 + $0x40] sm:$0xff] %vm510_vm5, %v2603_v26  ;;  %v2259_v24 = vadd.f32 %v2156_v28, %v1985_v21  ;;  %v2336_v1 = vld [vmem:[#allocation3 + $0x58] sm:$0xff]  ;;  %v1995_v26 = vld [vmem:[#allocation3 + $0xc0] sm:$0xff] }
 0x19d   : > { %2292 = vst.msk [vmem:[#allocation3 + $0x78] sm:$0xff] %vm510_vm5, %v2260_v45  ;;  %v2606_v31 = vadd.f32 %v5328_v22, %v2336_v1  ;;  %v2335_v7 = vld [vmem:[#allocation3 + $0x50] sm:$0xff] }
 0x19e   : > { %2291 = vst.msk [vmem:[#allocation3 + $0x70] sm:$0xff] %vm510_vm5, %v2259_v24  ;;  %v2605_v50 = vadd.f32 %v2486_v11, %v2335_v7  ;;  %v5287_v33 = vpop.f32.mrb[64].mxu1  ;;  %v5337_v14 = vpop.f32.mrb[64].mxu0 }
 0x19f   : > { %2638 = vst.msk [vmem:[#allocation3 + $0x58] sm:$0xff] %vm510_vm5, %v2606_v31  ;;  %v2262_v39 = vadd.f32 %v5287_v33, %v1988_v57  ;;  %v2166_v9 = vpop.f32.mrb[65].mxu1  ;;  %v2516_v55 = vpop.f32.mrb[65].mxu0  ;;  %v1998_v31 = vld [vmem:[#allocation3 + $0xd8] sm:$0xff] }
 0x1a0   : > { %2637 = vst.msk [vmem:[#allocation3 + $0x50] sm:$0xff] %vm510_vm5, %v2605_v50  ;;  %v2261_v4 = vadd.f32 %v2166_v9, %v1987_v63  ;;  %v2338_v42 = vld [vmem:[#allocation3 + $0x68] sm:$0xff]  ;;  %v1997_v50 = vld [vmem:[#allocation3 + $0xd0] sm:$0xff] }
 0x1a1   : > { %2294 = vst.msk [vmem:[#allocation3 + $0x88] sm:$0xff] %vm510_vm5, %v2262_v39  ;;  %v2608_v36 = vadd.f32 %v5331_v43, %v2338_v42  ;;  %v2337_v51 = vld [vmem:[#allocation3 + $0x60] sm:$0xff] }
 0x1a2   : > { %2293 = vst.msk [vmem:[#allocation3 + $0x80] sm:$0xff] %vm510_vm5, %v2261_v4  ;;  %v2607_v13 = vadd.f32 %v2496_v8, %v2337_v51  ;;  %v5290_v17 = vpop.f32.mrb[66].mxu1  ;;  %v5340_v37 = vpop.f32.mrb[66].mxu0 }
 0x1a3   : > { %2640 = vst.msk [vmem:[#allocation3 + $0x68] sm:$0xff] %vm510_vm5, %v2608_v36  ;;  %v2264_v12 = vadd.f32 %v5290_v17, %v1990_v10  ;;  %v2176_v34 = vpop.f32.mrb[67].mxu1  ;;  %v2526_v29 = vpop.f32.mrb[67].mxu0  ;;  %v2000_v36 = vld [vmem:[#allocation3 + $0xe8] sm:$0xff] }
 0x1a4   : > { %2639 = vst.msk [vmem:[#allocation3 + $0x60] sm:$0xff] %vm510_vm5, %v2607_v13  ;;  %v2263_v46 = vadd.f32 %v2176_v34, %v1989_v19  ;;  %v2340_v56 = vld [vmem:[#allocation3 + $0x78] sm:$0xff]  ;;  %v1999_v13 = vld [vmem:[#allocation3 + $0xe0] sm:$0xff] }
 0x1a5   : > { %2296 = vst.msk [vmem:[#allocation3 + $0x98] sm:$0xff] %vm510_vm5, %v2264_v12  ;;  %v2610_v47 = vadd.f32 %v5334_v35, %v2340_v56  ;;  %v2339_v61 = vld [vmem:[#allocation3 + $0x70] sm:$0xff] }
 0x1a6   : > { %2295 = vst.msk [vmem:[#allocation3 + $0x90] sm:$0xff] %vm510_vm5, %v2263_v46  ;;  %v2609_v18 = vadd.f32 %v2506_v49, %v2339_v61  ;;  %v5293_v5 = vpop.f32.mrb[68].mxu1  ;;  %v5343_v40 = vpop.f32.mrb[68].mxu0 }
 0x1a7   : > { %2642 = vst.msk [vmem:[#allocation3 + $0x78] sm:$0xff] %vm510_vm5, %v2610_v47  ;;  %v2266_v16 = vadd.f32 %v5293_v5, %v1992_v2  ;;  %v2186_v25 = vpop.f32.mrb[69].mxu1  ;;  %v2536_v54 = vpop.f32.mrb[69].mxu0  ;;  %v2002_v47 = vld [vmem:[#allocation3 + $0xf8] sm:$0xff] }
 0x1a8   : > { %2641 = vst.msk [vmem:[#allocation3 + $0x70] sm:$0xff] %vm510_vm5, %v2609_v18  ;;  %v2265_v60 = vadd.f32 %v2186_v25, %v1991_v3  ;;  %v2342_v0 = vld [vmem:[#allocation3 + $0x88] sm:$0xff]  ;;  %v2001_v18 = vld [vmem:[#allocation3 + $0xf0] sm:$0xff] }
 0x1a9   : > { %2298 = vst.msk [vmem:[#allocation3 + $0xa8] sm:$0xff] %vm510_vm5, %v2266_v16  ;;  %v2612_v38 = vadd.f32 %v5337_v14, %v2342_v0  ;;  %v2341_v32 = vld [vmem:[#allocation3 + $0x80] sm:$0xff] }
 0x1aa   : > { %2297 = vst.msk [vmem:[#allocation3 + $0xa0] sm:$0xff] %vm510_vm5, %v2265_v60  ;;  %v2611_v22 = vadd.f32 %v2516_v55, %v2341_v32  ;;  %v5296_v48 = vpop.f32.mrb[70].mxu1  ;;  %v5346_v62 = vpop.f32.mrb[70].mxu0 }
 0x1ab   : > { %2644 = vst.msk [vmem:[#allocation3 + $0x88] sm:$0xff] %vm510_vm5, %v2612_v38  ;;  %v2268_v11 = vadd.f32 %v5296_v48, %v1994_v15  ;;  %v2196_v52 = vpop.f32.mrb[71].mxu1  ;;  %v2546_v30 = vpop.f32.mrb[71].mxu0  ;;  %v2672_v38 = vld [vmem:[#allocation3 + $0x8] sm:$0xff] }
 0x1ac   : > { %2643 = vst.msk [vmem:[#allocation3 + $0x80] sm:$0xff] %vm510_vm5, %v2611_v22  ;;  %v2267_v27 = vadd.f32 %v2196_v52, %v1993_v53  ;;  %v2344_v58 = vld [vmem:[#allocation3 + $0x98] sm:$0xff]  ;;  %v2671_v22 = vld [vmem:[#allocation3] sm:$0xff] }
 0x1ad   : > { %2300 = vst.msk [vmem:[#allocation3 + $0xb8] sm:$0xff] %vm510_vm5, %v2268_v11  ;;  %v2614_v23 = vadd.f32 %v5340_v37, %v2344_v58  ;;  %v2343_v59 = vld [vmem:[#allocation3 + $0x90] sm:$0xff] }
 0x1ae   : > { %2299 = vst.msk [vmem:[#allocation3 + $0xb0] sm:$0xff] %vm510_vm5, %v2267_v27  ;;  %v2613_v43 = vadd.f32 %v2526_v29, %v2343_v59  ;;  %v5299_v20 = vpop.f32.mrb[72].mxu1  ;;  %v5349_v21 = vpop.f32.mrb[72].mxu0 }
 0x1af   : > { %2646 = vst.msk [vmem:[#allocation3 + $0x98] sm:$0xff] %vm510_vm5, %v2614_v23  ;;  %v2270_v8 = vadd.f32 %v5299_v20, %v1996_v6  ;;  %v2206_v44 = vpop.f32.mrb[73].mxu1  ;;  %v2556_v1 = vpop.f32.mrb[73].mxu0  ;;  %v2674_v23 = vld [vmem:[#allocation3 + $0x18] sm:$0xff] }
 0x1b0   : > { %2645 = vst.msk [vmem:[#allocation3 + $0x90] sm:$0xff] %vm510_vm5, %v2613_v43  ;;  %v2269_v41 = vadd.f32 %v2206_v44, %v1995_v26  ;;  %v2346_v45 = vld [vmem:[#allocation3 + $0xa8] sm:$0xff]  ;;  %v2673_v43 = vld [vmem:[#allocation3 + $0x10] sm:$0xff] }
 0x1b1   : > { %2302 = vst.msk [vmem:[#allocation3 + $0xc8] sm:$0xff] %vm510_vm5, %v2270_v8  ;;  %v2616_v28 = vadd.f32 %v5343_v40, %v2346_v45  ;;  %v2345_v24 = vld [vmem:[#allocation3 + $0xa0] sm:$0xff] }
 0x1b2   : > { %2301 = vst.msk [vmem:[#allocation3 + $0xc0] sm:$0xff] %vm510_vm5, %v2269_v41  ;;  %v2615_v35 = vadd.f32 %v2536_v54, %v2345_v24  ;;  %v5302_v7 = vpop.f32.mrb[74].mxu1  ;;  %v5352_v63 = vpop.f32.mrb[74].mxu0 }
 0x1b3   : > { %2648 = vst.msk [vmem:[#allocation3 + $0xa8] sm:$0xff] %vm510_vm5, %v2616_v28  ;;  %v2272_v49 = vadd.f32 %v5302_v7, %v1998_v31  ;;  %v2216_v57 = vpop.f32.mrb[75].mxu1  ;;  %v2566_v42 = vpop.f32.mrb[75].mxu0  ;;  %v2676_v28 = vld [vmem:[#allocation3 + $0x28] sm:$0xff] }
 0x1b4   : > { %2647 = vst.msk [vmem:[#allocation3 + $0xa0] sm:$0xff] %vm510_vm5, %v2615_v35  ;;  %v2271_v33 = vadd.f32 %v2216_v57, %v1997_v50  ;;  %v2348_v39 = vld [vmem:[#allocation3 + $0xb8] sm:$0xff]  ;;  %v2675_v35 = vld [vmem:[#allocation3 + $0x20] sm:$0xff] }
 0x1b5   : > { %2304 = vst.msk [vmem:[#allocation3 + $0xd8] sm:$0xff] %vm510_vm5, %v2272_v49  ;;  %v2618_v9 = vadd.f32 %v5346_v62, %v2348_v39  ;;  %v2347_v4 = vld [vmem:[#allocation3 + $0xb0] sm:$0xff] }
 0x1b6   : > { %2303 = vst.msk [vmem:[#allocation3 + $0xd0] sm:$0xff] %vm510_vm5, %v2271_v33  ;;  %v2617_v14 = vadd.f32 %v2546_v30, %v2347_v4  ;;  %v5305_v51 = vpop.f32.mrb[76].mxu1  ;;  %v5355_v19 = vpop.f32.mrb[76].mxu0 }
 0x1b7   : > { %2650 = vst.msk [vmem:[#allocation3 + $0xb8] sm:$0xff] %vm510_vm5, %v2618_v9  ;;  %v2274_v55 = vadd.f32 %v5305_v51, %v2000_v36  ;;  %v2226_v10 = vpop.f32.mrb[77].mxu1  ;;  %v2576_v56 = vpop.f32.mrb[77].mxu0  ;;  %v2678_v9 = vld [vmem:[#allocation3 + $0x38] sm:$0xff] }
 0x1b8   : > { %2649 = vst.msk [vmem:[#allocation3 + $0xb0] sm:$0xff] %vm510_vm5, %v2617_v14  ;;  %v2273_v17 = vadd.f32 %v2226_v10, %v1999_v13  ;;  %v2350_v12 = vld [vmem:[#allocation3 + $0xc8] sm:$0xff]  ;;  %v2677_v14 = vld [vmem:[#allocation3 + $0x30] sm:$0xff] }
 0x1b9   : > { %2306 = vst.msk [vmem:[#allocation3 + $0xe8] sm:$0xff] %vm510_vm5, %v2274_v55  ;;  %v2620_v34 = vadd.f32 %v5349_v21, %v2350_v12  ;;  %v2349_v46 = vld [vmem:[#allocation3 + $0xc0] sm:$0xff] }
 0x1ba   : > { %2305 = vst.msk [vmem:[#allocation3 + $0xe0] sm:$0xff] %vm510_vm5, %v2273_v17  ;;  %v2619_v37 = vadd.f32 %v2556_v1, %v2349_v46  ;;  %v5308_v61 = vpop.f32.mrb[78].mxu1  ;;  %v5358_v3 = vpop.f32.mrb[78].mxu0 }
 0x1bb   : > { %2652 = vst.msk [vmem:[#allocation3 + $0xc8] sm:$0xff] %vm510_vm5, %v2620_v34  ;;  %v2276_v29 = vadd.f32 %v5308_v61, %v2002_v47  ;;  %v2236_v2 = vpop.f32.mrb[79].mxu1  ;;  %v2586_v0 = vpop.f32.mrb[79].mxu0  ;;  %v2680_v34 = vld [vmem:[#allocation3 + $0x48] sm:$0xff] }
 0x1bc   : > { %2651 = vst.msk [vmem:[#allocation3 + $0xc0] sm:$0xff] %vm510_vm5, %v2619_v37  ;;  %v2275_v5 = vadd.f32 %v2236_v2, %v2001_v18  ;;  %v2352_v16 = vld [vmem:[#allocation3 + $0xd8] sm:$0xff]  ;;  %v2679_v37 = vld [vmem:[#allocation3 + $0x40] sm:$0xff] }
 0x1bd   : > { %2308 = vst.msk [vmem:[#allocation3 + $0xf8] sm:$0xff] %vm510_vm5, %v2276_v29  ;;  %v2622_v25 = vadd.f32 %v5352_v63, %v2352_v16  ;;  %v2351_v60 = vld [vmem:[#allocation3 + $0xd0] sm:$0xff] }
 0x1be   : > { %2307 = vst.msk [vmem:[#allocation3 + $0xf0] sm:$0xff] %vm510_vm5, %v2275_v5  ;;  %v2621_v40 = vadd.f32 %v2566_v42, %v2351_v60  ;;  %v5363_v32 = vpop.f32.mrb[80].mxu1  ;;  %v5413_v53 = vpop.f32.mrb[80].mxu0 }
 0x1bf   : > { %2654 = vst.msk [vmem:[#allocation3 + $0xd8] sm:$0xff] %vm510_vm5, %v2622_v25  ;;  %v2942_v54 = vadd.f32 %v5363_v32, %v2672_v38  ;;  %v2782_v15 = vpop.f32.mrb[81].mxu1  ;;  %v3120_v58 = vpop.f32.mrb[81].mxu0  ;;  %v2682_v25 = vld [vmem:[#allocation3 + $0x58] sm:$0xff] }
 0x1c0   : > { %2653 = vst.msk [vmem:[#allocation3 + $0xd0] sm:$0xff] %vm510_vm5, %v2621_v40  ;;  %v2354_v48 = vld [vmem:[#allocation3 + $0xe8] sm:$0xff]  ;;  %v2941_v11 = vadd.f32 %v2782_v15, %v2671_v22  ;;  %v2681_v40 = vld [vmem:[#allocation3 + $0x50] sm:$0xff] }
 0x1c1   : > { %2974 = vst.msk [vmem:[#allocation3 + $0x8] sm:$0xff] %vm510_vm5, %v2942_v54  ;;  %v2624_v52 = vadd.f32 %v5355_v19, %v2354_v48  ;;  %v2353_v27 = vld [vmem:[#allocation3 + $0xe0] sm:$0xff] }
 0x1c2   : > { %2973 = vst.msk [vmem:[#allocation3] sm:$0xff] %vm510_vm5, %v2941_v11  ;;  %v2623_v62 = vadd.f32 %v2576_v56, %v2353_v27  ;;  %v5366_v59 = vpop.f32.mrb[82].mxu1  ;;  %v5416_v26 = vpop.f32.mrb[82].mxu0 }
 0x1c3   : > { %2656 = vst.msk [vmem:[#allocation3 + $0xe8] sm:$0xff] %vm510_vm5, %v2624_v52  ;;  %v2944_v30 = vadd.f32 %v5366_v59, %v2674_v23  ;;  %v2792_v6 = vpop.f32.mrb[83].mxu1  ;;  %v3130_v45 = vpop.f32.mrb[83].mxu0  ;;  %v2684_v52 = vld [vmem:[#allocation3 + $0x68] sm:$0xff] }
 0x1c4   : > { %2655 = vst.msk [vmem:[#allocation3 + $0xe0] sm:$0xff] %vm510_vm5, %v2623_v62  ;;  %v2356_v20 = vld [vmem:[#allocation3 + $0xf8] sm:$0xff]  ;;  %v2943_v8 = vadd.f32 %v2792_v6, %v2673_v43  ;;  %v2683_v62 = vld [vmem:[#allocation3 + $0x60] sm:$0xff] }
 0x1c5   : > { %2976 = vst.msk [vmem:[#allocation3 + $0x18] sm:$0xff] %vm510_vm5, %v2944_v30  ;;  %v2626_v44 = vadd.f32 %v5358_v3, %v2356_v20  ;;  %v2355_v41 = vld [vmem:[#allocation3 + $0xf0] sm:$0xff] }
 0x1c6   : > { %2975 = vst.msk [vmem:[#allocation3 + $0x10] sm:$0xff] %vm510_vm5, %v2943_v8  ;;  %v2625_v21 = vadd.f32 %v2586_v0, %v2355_v41  ;;  %v5369_v24 = vpop.f32.mrb[84].mxu1  ;;  %v5419_v50 = vpop.f32.mrb[84].mxu0 }
 0x1c7   : > { %2658 = vst.msk [vmem:[#allocation3 + $0xf8] sm:$0xff] %vm510_vm5, %v2626_v44  ;;  %v2946_v1 = vadd.f32 %v5369_v24, %v2676_v28  ;;  %v2802_v31 = vpop.f32.mrb[85].mxu1  ;;  %v3140_v39 = vpop.f32.mrb[85].mxu0  ;;  %v2686_v44 = vld [vmem:[#allocation3 + $0x78] sm:$0xff] }
 0x1c8   : > { %2657 = vst.msk [vmem:[#allocation3 + $0xf0] sm:$0xff] %vm510_vm5, %v2625_v21  ;;  %v2945_v7 = vadd.f32 %v2802_v31, %v2675_v35  ;;  %v3006_v49 = vld [vmem:[#allocation3 + $0x8] sm:$0xff]  ;;  %v2685_v21 = vld [vmem:[#allocation3 + $0x70] sm:$0xff] }
 0x1c9   : > { %2978 = vst.msk [vmem:[#allocation3 + $0x28] sm:$0xff] %vm510_vm5, %v2946_v1  ;;  %v3280_v57 = vadd.f32 %v5413_v53, %v3006_v49  ;;  %v3005_v33 = vld [vmem:[#allocation3] sm:$0xff] }
 0x1ca   : > { %2977 = vst.msk [vmem:[#allocation3 + $0x20] sm:$0xff] %vm510_vm5, %v2945_v7  ;;  %v3279_v63 = vadd.f32 %v3120_v58, %v3005_v33  ;;  %v5372_v4 = vpop.f32.mrb[86].mxu1  ;;  %v5422_v13 = vpop.f32.mrb[86].mxu0 }
 0x1cb   : > { %3312 = vst.msk [vmem:[#allocation3 + $0x8] sm:$0xff] %vm510_vm5, %v3280_v57  ;;  %v2948_v42 = vadd.f32 %v5372_v4, %v2678_v9  ;;  %v2812_v36 = vpop.f32.mrb[87].mxu1  ;;  %v3150_v12 = vpop.f32.mrb[87].mxu0  ;;  %v2688_v57 = vld [vmem:[#allocation3 + $0x88] sm:$0xff] }
 0x1cc   : > { %3311 = vst.msk [vmem:[#allocation3] sm:$0xff] %vm510_vm5, %v3279_v63  ;;  %v2947_v51 = vadd.f32 %v2812_v36, %v2677_v14  ;;  %v3008_v55 = vld [vmem:[#allocation3 + $0x18] sm:$0xff]  ;;  %v2687_v63 = vld [vmem:[#allocation3 + $0x80] sm:$0xff] }
 0x1cd   : > { %2980 = vst.msk [vmem:[#allocation3 + $0x38] sm:$0xff] %vm510_vm5, %v2948_v42  ;;  %v3282_v10 = vadd.f32 %v5416_v26, %v3008_v55  ;;  %v3007_v17 = vld [vmem:[#allocation3 + $0x10] sm:$0xff] }
 0x1ce   : > { %2979 = vst.msk [vmem:[#allocation3 + $0x30] sm:$0xff] %vm510_vm5, %v2947_v51  ;;  %v3281_v19 = vadd.f32 %v3130_v45, %v3007_v17  ;;  %v5375_v46 = vpop.f32.mrb[88].mxu1  ;;  %v5425_v18 = vpop.f32.mrb[88].mxu0 }
 0x1cf   : > { %3314 = vst.msk [vmem:[#allocation3 + $0x18] sm:$0xff] %vm510_vm5, %v3282_v10  ;;  %v2950_v56 = vadd.f32 %v5375_v46, %v2680_v34  ;;  %v2822_v47 = vpop.f32.mrb[89].mxu1  ;;  %v3160_v16 = vpop.f32.mrb[89].mxu0  ;;  %v2690_v10 = vld [vmem:[#allocation3 + $0x98] sm:$0xff] }
 0x1d0   : > { %3313 = vst.msk [vmem:[#allocation3 + $0x10] sm:$0xff] %vm510_vm5, %v3281_v19  ;;  %v2949_v61 = vadd.f32 %v2822_v47, %v2679_v37  ;;  %v3010_v29 = vld [vmem:[#allocation3 + $0x28] sm:$0xff]  ;;  %v2689_v19 = vld [vmem:[#allocation3 + $0x90] sm:$0xff] }
 0x1d1   : > { %2982 = vst.msk [vmem:[#allocation3 + $0x48] sm:$0xff] %vm510_vm5, %v2950_v56  ;;  %v3284_v2 = vadd.f32 %v5419_v50, %v3010_v29  ;;  %v3009_v5 = vld [vmem:[#allocation3 + $0x20] sm:$0xff] }
 0x1d2   : > { %2981 = vst.msk [vmem:[#allocation3 + $0x40] sm:$0xff] %vm510_vm5, %v2949_v61  ;;  %v3283_v3 = vadd.f32 %v3140_v39, %v3009_v5  ;;  %v5378_v60 = vpop.f32.mrb[90].mxu1  ;;  %v5428_v22 = vpop.f32.mrb[90].mxu0 }
 0x1d3   : > { %3316 = vst.msk [vmem:[#allocation3 + $0x28] sm:$0xff] %vm510_vm5, %v3284_v2  ;;  %v2952_v0 = vadd.f32 %v5378_v60, %v2682_v25  ;;  %v2832_v38 = vpop.f32.mrb[91].mxu1  ;;  %v3170_v11 = vpop.f32.mrb[91].mxu0  ;;  %v2692_v2 = vld [vmem:[#allocation3 + $0xa8] sm:$0xff] }
 0x1d4   : > { %3315 = vst.msk [vmem:[#allocation3 + $0x20] sm:$0xff] %vm510_vm5, %v3283_v3  ;;  %v2951_v32 = vadd.f32 %v2832_v38, %v2681_v40  ;;  %v3012_v54 = vld [vmem:[#allocation3 + $0x38] sm:$0xff]  ;;  %v2691_v3 = vld [vmem:[#allocation3 + $0xa0] sm:$0xff] }
 0x1d5   : > { %2984 = vst.msk [vmem:[#allocation3 + $0x58] sm:$0xff] %vm510_vm5, %v2952_v0  ;;  %v3286_v15 = vadd.f32 %v5422_v13, %v3012_v54  ;;  %v3011_v48 = vld [vmem:[#allocation3 + $0x30] sm:$0xff] }
 0x1d6   : > { %2983 = vst.msk [vmem:[#allocation3 + $0x50] sm:$0xff] %vm510_vm5, %v2951_v32  ;;  %v3285_v53 = vadd.f32 %v3150_v12, %v3011_v48  ;;  %v5381_v27 = vpop.f32.mrb[92].mxu1  ;;  %v5431_v43 = vpop.f32.mrb[92].mxu0 }
 0x1d7   : > { %3318 = vst.msk [vmem:[#allocation3 + $0x38] sm:$0xff] %vm510_vm5, %v3286_v15  ;;  %v2954_v58 = vadd.f32 %v5381_v27, %v2684_v52  ;;  %v2842_v23 = vpop.f32.mrb[93].mxu1  ;;  %v3180_v8 = vpop.f32.mrb[93].mxu0  ;;  %v2694_v15 = vld [vmem:[#allocation3 + $0xb8] sm:$0xff] }
 0x1d8   : > { %3317 = vst.msk [vmem:[#allocation3 + $0x30] sm:$0xff] %vm510_vm5, %v3285_v53  ;;  %v2953_v59 = vadd.f32 %v2842_v23, %v2683_v62  ;;  %v3014_v30 = vld [vmem:[#allocation3 + $0x48] sm:$0xff]  ;;  %v2693_v53 = vld [vmem:[#allocation3 + $0xb0] sm:$0xff] }
 0x1d9   : > { %2986 = vst.msk [vmem:[#allocation3 + $0x68] sm:$0xff] %vm510_vm5, %v2954_v58  ;;  %v3288_v6 = vadd.f32 %v5425_v18, %v3014_v30  ;;  %v3013_v20 = vld [vmem:[#allocation3 + $0x40] sm:$0xff] }
 0x1da   : > { %2985 = vst.msk [vmem:[#allocation3 + $0x60] sm:$0xff] %vm510_vm5, %v2953_v59  ;;  %v3287_v26 = vadd.f32 %v3160_v16, %v3013_v20  ;;  %v5384_v41 = vpop.f32.mrb[94].mxu1  ;;  %v5434_v35 = vpop.f32.mrb[94].mxu0 }
 0x1db   : > { %3320 = vst.msk [vmem:[#allocation3 + $0x48] sm:$0xff] %vm510_vm5, %v3288_v6  ;;  %v2956_v45 = vadd.f32 %v5384_v41, %v2686_v44  ;;  %v2852_v28 = vpop.f32.mrb[95].mxu1  ;;  %v3190_v49 = vpop.f32.mrb[95].mxu0  ;;  %v2696_v6 = vld [vmem:[#allocation3 + $0xc8] sm:$0xff] }
 0x1dc   : > { %3319 = vst.msk [vmem:[#allocation3 + $0x40] sm:$0xff] %vm510_vm5, %v3287_v26  ;;  %v2955_v24 = vadd.f32 %v2852_v28, %v2685_v21  ;;  %v3016_v1 = vld [vmem:[#allocation3 + $0x58] sm:$0xff]  ;;  %v2695_v26 = vld [vmem:[#allocation3 + $0xc0] sm:$0xff] }
 0x1dd   : > { %2988 = vst.msk [vmem:[#allocation3 + $0x78] sm:$0xff] %vm510_vm5, %v2956_v45  ;;  %v3290_v31 = vadd.f32 %v5428_v22, %v3016_v1  ;;  %v3015_v7 = vld [vmem:[#allocation3 + $0x50] sm:$0xff] }
 0x1de   : > { %2987 = vst.msk [vmem:[#allocation3 + $0x70] sm:$0xff] %vm510_vm5, %v2955_v24  ;;  %v3289_v50 = vadd.f32 %v3170_v11, %v3015_v7  ;;  %v5387_v33 = vpop.f32.mrb[96].mxu1  ;;  %v5437_v14 = vpop.f32.mrb[96].mxu0 }
 0x1df   : > { %3322 = vst.msk [vmem:[#allocation3 + $0x58] sm:$0xff] %vm510_vm5, %v3290_v31  ;;  %v2958_v39 = vadd.f32 %v5387_v33, %v2688_v57  ;;  %v2862_v9 = vpop.f32.mrb[97].mxu1  ;;  %v3200_v55 = vpop.f32.mrb[97].mxu0  ;;  %v2698_v31 = vld [vmem:[#allocation3 + $0xd8] sm:$0xff] }
 0x1e0   : > { %3321 = vst.msk [vmem:[#allocation3 + $0x50] sm:$0xff] %vm510_vm5, %v3289_v50  ;;  %v2957_v4 = vadd.f32 %v2862_v9, %v2687_v63  ;;  %v3018_v42 = vld [vmem:[#allocation3 + $0x68] sm:$0xff]  ;;  %v2697_v50 = vld [vmem:[#allocation3 + $0xd0] sm:$0xff] }
 0x1e1   : > { %2990 = vst.msk [vmem:[#allocation3 + $0x88] sm:$0xff] %vm510_vm5, %v2958_v39  ;;  %v3292_v36 = vadd.f32 %v5431_v43, %v3018_v42  ;;  %v3017_v51 = vld [vmem:[#allocation3 + $0x60] sm:$0xff] }
 0x1e2   : > { %2989 = vst.msk [vmem:[#allocation3 + $0x80] sm:$0xff] %vm510_vm5, %v2957_v4  ;;  %v3291_v13 = vadd.f32 %v3180_v8, %v3017_v51  ;;  %v5390_v17 = vpop.f32.mrb[98].mxu1  ;;  %v5440_v37 = vpop.f32.mrb[98].mxu0 }
 0x1e3   : > { %3324 = vst.msk [vmem:[#allocation3 + $0x68] sm:$0xff] %vm510_vm5, %v3292_v36  ;;  %v2960_v12 = vadd.f32 %v5390_v17, %v2690_v10  ;;  %v2872_v34 = vpop.f32.mrb[99].mxu1  ;;  %v3210_v29 = vpop.f32.mrb[99].mxu0  ;;  %v2700_v36 = vld [vmem:[#allocation3 + $0xe8] sm:$0xff] }
 0x1e4   : > { %3323 = vst.msk [vmem:[#allocation3 + $0x60] sm:$0xff] %vm510_vm5, %v3291_v13  ;;  %v2959_v46 = vadd.f32 %v2872_v34, %v2689_v19  ;;  %v3020_v56 = vld [vmem:[#allocation3 + $0x78] sm:$0xff]  ;;  %v2699_v13 = vld [vmem:[#allocation3 + $0xe0] sm:$0xff] }
 0x1e5   : > { %2992 = vst.msk [vmem:[#allocation3 + $0x98] sm:$0xff] %vm510_vm5, %v2960_v12  ;;  %v3294_v47 = vadd.f32 %v5434_v35, %v3020_v56  ;;  %v3019_v61 = vld [vmem:[#allocation3 + $0x70] sm:$0xff] }
 0x1e6   : > { %2991 = vst.msk [vmem:[#allocation3 + $0x90] sm:$0xff] %vm510_vm5, %v2959_v46  ;;  %v3293_v18 = vadd.f32 %v3190_v49, %v3019_v61  ;;  %v5393_v5 = vpop.f32.mrb[100].mxu1  ;;  %v5443_v40 = vpop.f32.mrb[100].mxu0 }
 0x1e7   : > { %3326 = vst.msk [vmem:[#allocation3 + $0x78] sm:$0xff] %vm510_vm5, %v3294_v47  ;;  %v2962_v16 = vadd.f32 %v5393_v5, %v2692_v2  ;;  %v2882_v25 = vpop.f32.mrb[101].mxu1  ;;  %v3220_v54 = vpop.f32.mrb[101].mxu0  ;;  %v2702_v47 = vld [vmem:[#allocation3 + $0xf8] sm:$0xff] }
 0x1e8   : > { %3325 = vst.msk [vmem:[#allocation3 + $0x70] sm:$0xff] %vm510_vm5, %v3293_v18  ;;  %v2961_v60 = vadd.f32 %v2882_v25, %v2691_v3  ;;  %v3022_v0 = vld [vmem:[#allocation3 + $0x88] sm:$0xff]  ;;  %v2701_v18 = vld [vmem:[#allocation3 + $0xf0] sm:$0xff] }
 0x1e9   : > { %2994 = vst.msk [vmem:[#allocation3 + $0xa8] sm:$0xff] %vm510_vm5, %v2962_v16  ;;  %v3296_v38 = vadd.f32 %v5437_v14, %v3022_v0  ;;  %v3021_v32 = vld [vmem:[#allocation3 + $0x80] sm:$0xff] }
 0x1ea   : > { %2993 = vst.msk [vmem:[#allocation3 + $0xa0] sm:$0xff] %vm510_vm5, %v2961_v60  ;;  %v3295_v22 = vadd.f32 %v3200_v55, %v3021_v32  ;;  %v5396_v48 = vpop.f32.mrb[102].mxu1  ;;  %v5446_v62 = vpop.f32.mrb[102].mxu0 }
 0x1eb   : > { %3328 = vst.msk [vmem:[#allocation3 + $0x88] sm:$0xff] %vm510_vm5, %v3296_v38  ;;  %v2964_v11 = vadd.f32 %v5396_v48, %v2694_v15  ;;  %v2892_v52 = vpop.f32.mrb[103].mxu1  ;;  %v3230_v30 = vpop.f32.mrb[103].mxu0  ;;  %v3360_v38 = vld [vmem:[#allocation3 + $0x8] sm:$0xff] }
 0x1ec   : > { %3327 = vst.msk [vmem:[#allocation3 + $0x80] sm:$0xff] %vm510_vm5, %v3295_v22  ;;  %v2963_v27 = vadd.f32 %v2892_v52, %v2693_v53  ;;  %v3024_v58 = vld [vmem:[#allocation3 + $0x98] sm:$0xff]  ;;  %v3359_v22 = vld [vmem:[#allocation3] sm:$0xff] }
 0x1ed   : > { %2996 = vst.msk [vmem:[#allocation3 + $0xb8] sm:$0xff] %vm510_vm5, %v2964_v11  ;;  %v3298_v23 = vadd.f32 %v5440_v37, %v3024_v58  ;;  %v3023_v59 = vld [vmem:[#allocation3 + $0x90] sm:$0xff] }
 0x1ee   : > { %2995 = vst.msk [vmem:[#allocation3 + $0xb0] sm:$0xff] %vm510_vm5, %v2963_v27  ;;  %v3297_v43 = vadd.f32 %v3210_v29, %v3023_v59  ;;  %v5399_v20 = vpop.f32.mrb[104].mxu1  ;;  %v5449_v21 = vpop.f32.mrb[104].mxu0 }
 0x1ef   : > { %3330 = vst.msk [vmem:[#allocation3 + $0x98] sm:$0xff] %vm510_vm5, %v3298_v23  ;;  %v2966_v8 = vadd.f32 %v5399_v20, %v2696_v6  ;;  %v2902_v44 = vpop.f32.mrb[105].mxu1  ;;  %v3240_v1 = vpop.f32.mrb[105].mxu0  ;;  %v3362_v23 = vld [vmem:[#allocation3 + $0x18] sm:$0xff] }
 0x1f0   : > { %3329 = vst.msk [vmem:[#allocation3 + $0x90] sm:$0xff] %vm510_vm5, %v3297_v43  ;;  %v2965_v41 = vadd.f32 %v2902_v44, %v2695_v26  ;;  %v3026_v45 = vld [vmem:[#allocation3 + $0xa8] sm:$0xff]  ;;  %v3361_v43 = vld [vmem:[#allocation3 + $0x10] sm:$0xff] }
 0x1f1   : > { %2998 = vst.msk [vmem:[#allocation3 + $0xc8] sm:$0xff] %vm510_vm5, %v2966_v8  ;;  %v3300_v28 = vadd.f32 %v5443_v40, %v3026_v45  ;;  %v3025_v24 = vld [vmem:[#allocation3 + $0xa0] sm:$0xff] }
 0x1f2   : > { %2997 = vst.msk [vmem:[#allocation3 + $0xc0] sm:$0xff] %vm510_vm5, %v2965_v41  ;;  %v3299_v35 = vadd.f32 %v3220_v54, %v3025_v24  ;;  %v5402_v7 = vpop.f32.mrb[106].mxu1  ;;  %v5452_v63 = vpop.f32.mrb[106].mxu0 }
 0x1f3   : > { %3332 = vst.msk [vmem:[#allocation3 + $0xa8] sm:$0xff] %vm510_vm5, %v3300_v28  ;;  %v2968_v49 = vadd.f32 %v5402_v7, %v2698_v31  ;;  %v2912_v57 = vpop.f32.mrb[107].mxu1  ;;  %v3250_v42 = vpop.f32.mrb[107].mxu0  ;;  %v3364_v28 = vld [vmem:[#allocation3 + $0x28] sm:$0xff] }
 0x1f4   : > { %3331 = vst.msk [vmem:[#allocation3 + $0xa0] sm:$0xff] %vm510_vm5, %v3299_v35  ;;  %v2967_v33 = vadd.f32 %v2912_v57, %v2697_v50  ;;  %v3028_v39 = vld [vmem:[#allocation3 + $0xb8] sm:$0xff]  ;;  %v3363_v35 = vld [vmem:[#allocation3 + $0x20] sm:$0xff] }
 0x1f5   : > { %3000 = vst.msk [vmem:[#allocation3 + $0xd8] sm:$0xff] %vm510_vm5, %v2968_v49  ;;  %v3302_v9 = vadd.f32 %v5446_v62, %v3028_v39  ;;  %v3027_v4 = vld [vmem:[#allocation3 + $0xb0] sm:$0xff] }
 0x1f6   : > { %2999 = vst.msk [vmem:[#allocation3 + $0xd0] sm:$0xff] %vm510_vm5, %v2967_v33  ;;  %v3301_v14 = vadd.f32 %v3230_v30, %v3027_v4  ;;  %v5405_v51 = vpop.f32.mrb[108].mxu1  ;;  %v5455_v19 = vpop.f32.mrb[108].mxu0 }
 0x1f7   : > { %3334 = vst.msk [vmem:[#allocation3 + $0xb8] sm:$0xff] %vm510_vm5, %v3302_v9  ;;  %v2970_v55 = vadd.f32 %v5405_v51, %v2700_v36  ;;  %v2922_v10 = vpop.f32.mrb[109].mxu1  ;;  %v3260_v56 = vpop.f32.mrb[109].mxu0  ;;  %v3366_v9 = vld [vmem:[#allocation3 + $0x38] sm:$0xff] }
 0x1f8   : > { %3333 = vst.msk [vmem:[#allocation3 + $0xb0] sm:$0xff] %vm510_vm5, %v3301_v14  ;;  %v2969_v17 = vadd.f32 %v2922_v10, %v2699_v13  ;;  %v3030_v12 = vld [vmem:[#allocation3 + $0xc8] sm:$0xff]  ;;  %v3365_v14 = vld [vmem:[#allocation3 + $0x30] sm:$0xff] }
 0x1f9   : > { %3002 = vst.msk [vmem:[#allocation3 + $0xe8] sm:$0xff] %vm510_vm5, %v2970_v55  ;;  %v3304_v34 = vadd.f32 %v5449_v21, %v3030_v12  ;;  %v3029_v46 = vld [vmem:[#allocation3 + $0xc0] sm:$0xff] }
 0x1fa   : > { %3001 = vst.msk [vmem:[#allocation3 + $0xe0] sm:$0xff] %vm510_vm5, %v2969_v17  ;;  %v3303_v37 = vadd.f32 %v3240_v1, %v3029_v46  ;;  %v5408_v61 = vpop.f32.mrb[110].mxu1  ;;  %v5458_v3 = vpop.f32.mrb[110].mxu0 }
 0x1fb   : > { %3336 = vst.msk [vmem:[#allocation3 + $0xc8] sm:$0xff] %vm510_vm5, %v3304_v34  ;;  %v2972_v29 = vadd.f32 %v5408_v61, %v2702_v47  ;;  %v2932_v2 = vpop.f32.mrb[111].mxu1  ;;  %v3270_v0 = vpop.f32.mrb[111].mxu0  ;;  %v3368_v34 = vld [vmem:[#allocation3 + $0x48] sm:$0xff]  ;;  %v7414_v61 = vld [vmem:[%s7785_s2] ss:$0 sm:$0xff] }
 0x1fc   : > { %3335 = vst.msk [vmem:[#allocation3 + $0xc0] sm:$0xff] %vm510_vm5, %v3303_v37  ;;  %v2971_v5 = vadd.f32 %v2932_v2, %v2701_v18  ;;  %v3032_v16 = vld [vmem:[#allocation3 + $0xd8] sm:$0xff]  ;;  %v3367_v37 = vld [vmem:[#allocation3 + $0x40] sm:$0xff] }
 0x1fd   : > { %3004 = vst.msk [vmem:[#allocation3 + $0xf8] sm:$0xff] %vm510_vm5, %v2972_v29  ;;  %v3306_v25 = vadd.f32 %v5452_v63, %v3032_v16  ;;  %v3031_v60 = vld [vmem:[#allocation3 + $0xd0] sm:$0xff] }
 0x1fe   : > { %3003 = vst.msk [vmem:[#allocation3 + $0xf0] sm:$0xff] %vm510_vm5, %v2971_v5  ;;  %v3305_v40 = vadd.f32 %v3250_v42, %v3031_v60  ;;  %v5463_v32 = vpop.f32.mrb[112].mxu1  ;;  %v5513_v53 = vpop.f32.mrb[112].mxu0 }
 0x1ff   : > { %3338 = vst.msk [vmem:[#allocation3 + $0xd8] sm:$0xff] %vm510_vm5, %v3306_v25  ;;  %v3630_v54 = vadd.f32 %v5463_v32, %v3360_v38  ;;  %v3470_v15 = vpop.f32.mrb[113].mxu1  ;;  %v3816_v58 = vpop.f32.mrb[113].mxu0 }
 0x200   : > { %3337 = vst.msk [vmem:[#allocation3 + $0xd0] sm:$0xff] %vm510_vm5, %v3305_v40  ;;  %v3034_v48 = vld [vmem:[#allocation3 + $0xe8] sm:$0xff]  ;;  %v3629_v11 = vadd.f32 %v3470_v15, %v3359_v22  ;;  %v3369_v22 = vld [vmem:[#allocation3 + $0x50] sm:$0xff] }
 0x201   : > { %3662 = vst.msk [vmem:[#allocation3 + $0x8] sm:$0xff] %vm510_vm5, %v3630_v54  ;;  %v3308_v52 = vadd.f32 %v5455_v19, %v3034_v48  ;;  %v3033_v27 = vld [vmem:[#allocation3 + $0xe0] sm:$0xff] }
 0x202   : > { %3661 = vst.msk [vmem:[#allocation3] sm:$0xff] %vm510_vm5, %v3629_v11  ;;  %v3307_v62 = vadd.f32 %v3260_v56, %v3033_v27  ;;  %v5466_v59 = vpop.f32.mrb[114].mxu1  ;;  %v5516_v26 = vpop.f32.mrb[114].mxu0 }
 0x203   : > { %3340 = vst.msk [vmem:[#allocation3 + $0xe8] sm:$0xff] %vm510_vm5, %v3308_v52  ;;  %v3632_v30 = vadd.f32 %v5466_v59, %v3362_v23  ;;  %v3480_v6 = vpop.f32.mrb[115].mxu1  ;;  %v3826_v45 = vpop.f32.mrb[115].mxu0 }
 0x204   : > { %3339 = vst.msk [vmem:[#allocation3 + $0xe0] sm:$0xff] %vm510_vm5, %v3307_v62  ;;  %v3036_v20 = vld [vmem:[#allocation3 + $0xf8] sm:$0xff]  ;;  %v3631_v8 = vadd.f32 %v3480_v6, %v3361_v43 }
 0x205   : > { %3664 = vst.msk [vmem:[#allocation3 + $0x18] sm:$0xff] %vm510_vm5, %v3632_v30  ;;  %v3310_v44 = vadd.f32 %v5458_v3, %v3036_v20  ;;  %v3035_v41 = vld [vmem:[#allocation3 + $0xf0] sm:$0xff] }
 0x206   : > { %3663 = vst.msk [vmem:[#allocation3 + $0x10] sm:$0xff] %vm510_vm5, %v3631_v8  ;;  %v3309_v21 = vadd.f32 %v3270_v0, %v3035_v41  ;;  %v5469_v24 = vpop.f32.mrb[116].mxu1  ;;  %v5519_v50 = vpop.f32.mrb[116].mxu0  ;;  %v3370_v0 = vld [vmem:[#allocation3 + $0x58] sm:$0xff]  ;;  %v3372_v8 = vld [vmem:[#allocation3 + $0x68] sm:$0xff] }
 0x207   : > { %3342 = vst.msk [vmem:[#allocation3 + $0xf8] sm:$0xff] %vm510_vm5, %v3310_v44  ;;  %v3634_v1 = vadd.f32 %v5469_v24, %v3364_v28  ;;  %v3490_v31 = vpop.f32.mrb[117].mxu1  ;;  %v3836_v39 = vpop.f32.mrb[117].mxu0 }
 0x208   : > { %3341 = vst.msk [vmem:[#allocation3 + $0xf0] sm:$0xff] %vm510_vm5, %v3309_v21  ;;  %v3633_v7 = vadd.f32 %v3490_v31, %v3363_v35  ;;  %v3706_v49 = vld [vmem:[#allocation3 + $0x8] sm:$0xff]  ;;  %v3371_v21 = vld [vmem:[#allocation3 + $0x60] sm:$0xff] }
 0x209   : > { %3666 = vst.msk [vmem:[#allocation3 + $0x28] sm:$0xff] %vm510_vm5, %v3634_v1  ;;  %v3976_v57 = vadd.f32 %v5513_v53, %v3706_v49  ;;  %v3705_v33 = vld [vmem:[#allocation3] sm:$0xff] }
 0x20a   : > { %3665 = vst.msk [vmem:[#allocation3 + $0x20] sm:$0xff] %vm510_vm5, %v3633_v7  ;;  %v3975_v63 = vadd.f32 %v3816_v58, %v3705_v33  ;;  %v5472_v4 = vpop.f32.mrb[118].mxu1  ;;  %v5522_v13 = vpop.f32.mrb[118].mxu0 }
 0x20b   : > { %4008 = vst.msk [vmem:[#allocation3 + $0x8] sm:$0xff] %vm510_vm5, %v3976_v57  ;;  %v3636_v42 = vadd.f32 %v5472_v4, %v3366_v9  ;;  %v3500_v36 = vpop.f32.mrb[119].mxu1  ;;  %v3846_v12 = vpop.f32.mrb[119].mxu0 }
 0x20c   : > { %4007 = vst.msk [vmem:[#allocation3] sm:$0xff] %vm510_vm5, %v3975_v63  ;;  %v3635_v51 = vadd.f32 %v3500_v36, %v3365_v14  ;;  %v3708_v55 = vld [vmem:[#allocation3 + $0x18] sm:$0xff] }
 0x20d   : > { %3668 = vst.msk [vmem:[#allocation3 + $0x38] sm:$0xff] %vm510_vm5, %v3636_v42  ;;  %v3978_v10 = vadd.f32 %v5516_v26, %v3708_v55  ;;  %v3707_v17 = vld [vmem:[#allocation3 + $0x10] sm:$0xff]  ;;  %v3374_v36 = vld [vmem:[#allocation3 + $0x78] sm:$0xff] }
 0x20e   : > { %3667 = vst.msk [vmem:[#allocation3 + $0x30] sm:$0xff] %vm510_vm5, %v3635_v51  ;;  %v3977_v19 = vadd.f32 %v3826_v45, %v3707_v17  ;;  %v5475_v46 = vpop.f32.mrb[120].mxu1  ;;  %v5525_v2 = vpop.f32.mrb[120].mxu0 }
 0x20f   : > { %4010 = vst.msk [vmem:[#allocation3 + $0x18] sm:$0xff] %vm510_vm5, %v3978_v10  ;;  %v3638_v56 = vadd.f32 %v5475_v46, %v3368_v34  ;;  %v3510_v47 = vpop.f32.mrb[121].mxu1  ;;  %v3856_v3 = vpop.f32.mrb[121].mxu0 }
 0x210   : > { %4009 = vst.msk [vmem:[#allocation3 + $0x10] sm:$0xff] %vm510_vm5, %v3977_v19  ;;  %v3637_v29 = vadd.f32 %v3510_v47, %v3367_v37  ;;  %v3710_v18 = vld [vmem:[#allocation3 + $0x28] sm:$0xff]  ;;  %v3373_v19 = vld [vmem:[#allocation3 + $0x70] sm:$0xff] }
 0x211   : > { %3670 = vst.msk [vmem:[#allocation3 + $0x48] sm:$0xff] %vm510_vm5, %v3638_v56  ;;  %v3980_v5 = vadd.f32 %v5519_v50, %v3710_v18  ;;  %v3709_v16 = vld [vmem:[#allocation3 + $0x20] sm:$0xff] }
 0x212   : > { %v4040_v25 = vld [vmem:[#allocation3 + $0x8] sm:$0xff]  ;;  %3669 = vst.msk [vmem:[#allocation3 + $0x40] sm:$0xff] %vm510_vm5, %v3637_v29  ;;  %v3979_v60 = vadd.f32 %v3836_v39, %v3709_v16  ;;  %v5478_v40 = vpop.f32.mrb[122].mxu1  ;;  %v7428_v52 = vpop.f32.mrb[122].mxu0 }
 0x213   : > { %v4079_v38 = vadd.f32 %v7414_v61, %v4040_v25  ;;  %v4039_v32 = vld [vmem:[#allocation3] sm:$0xff]  ;;  %4012 = vst.msk [vmem:[#allocation3 + $0x28] sm:$0xff] %vm510_vm5, %v3980_v5  ;;  %v3640_v54 = vadd.f32 %v5478_v40, %v3370_v0  ;;  %v3520_v15 = vpop.f32.mrb[123].mxu1  ;;  %v7433_v23 = vpop.f32.mrb[123].mxu0 }
 0x214   : > { %v4078_v48 = vadd.f32 %v7414_v61, %v4039_v32  ;;  %4011 = vst.msk [vmem:[#allocation3 + $0x20] sm:$0xff] %vm510_vm5, %v3979_v60  ;;  %v3639_v11 = vadd.f32 %v3520_v15, %v3369_v22  ;;  %v3712_v53 = vld [vmem:[#allocation3 + $0x38] sm:$0xff] }
 0x215   : > { %4111 = vst.msk [vmem:[%s7421_s7 + $0x8] sm:$0xff] %vm510_vm5, %v4079_v38  ;;  %v4214_v27 = vmul.f32 %v4079_v38, %v4079_v38  ;;  %3672 = vst.msk [vmem:[#allocation3 + $0x58] sm:$0xff] %vm510_vm5, %v3640_v54  ;;  %v3982_v58 = vadd.f32 %v5522_v13, %v3712_v53  ;;  %v3711_v62 = vld [vmem:[#allocation3 + $0x30] sm:$0xff]  ;;  %v4143_v59 = vsel %vm510_vm5, %v4079_v38, 0.0 }
 0x216   : > { %4110 = vst.msk [vmem:[%s7421_s7] sm:$0xff] %vm510_vm5, %v4078_v48  ;;  %v4142_v30 = vsel %vm510_vm5, %v4078_v48, 0.0  ;;  %v4213_v43 = vmul.f32 %v4078_v48, %v4078_v48  ;;  %v4042_v6 = vld [vmem:[#allocation3 + $0x18] sm:$0xff]  ;;  %3671 = vst.msk [vmem:[#allocation3 + $0x50] sm:$0xff] %vm510_vm5, %v3639_v11  ;;  %v3981_v20 = vadd.f32 %v3846_v12, %v3711_v62  ;;  %v5481_v26 = vpop.f32.mrb[124].mxu1  ;;  %v7446_v49 = vpop.f32.mrb[124].mxu0 }
 0x217   : > { %v4081_v44 = vadd.f32 %v7414_v61, %v4042_v6  ;;  %v4041_v41 = vld [vmem:[#allocation3 + $0x10] sm:$0xff]  ;;  %4014 = vst.msk [vmem:[#allocation3 + $0x38] sm:$0xff] %vm510_vm5, %v3982_v58  ;;  %v3642_v45 = vadd.f32 %v5481_v26, %v3372_v8  ;;  %v3530_v28 = vpop.f32.mrb[125].mxu1  ;;  %v4246_v24 = vsel %vm510_vm5, %v4214_v27, 0.0  ;;  %v4144_v50 = vadd.f32 %v4143_v59, %v4142_v30  ;;  %v7451_v63 = vpop.f32.mrb[125].mxu0  ;;  %v3376_v58 = vld [vmem:[#allocation3 + $0x88] sm:$0xff] }
 0x218   : > { %v4245_v1 = vsel %vm510_vm5, %v4213_v43, 0.0  ;;  %v4080_v35 = vadd.f32 %v7414_v61, %v4041_v41  ;;  %4013 = vst.msk [vmem:[#allocation3 + $0x30] sm:$0xff] %vm510_vm5, %v3981_v20  ;;  %v3641_v31 = vadd.f32 %v3530_v28, %v3371_v21  ;;  %v3714_v7 = vld [vmem:[#allocation3 + $0x48] sm:$0xff]  ;;  %v3375_v62 = vld [vmem:[#allocation3 + $0x80] sm:$0xff] }
 0x219   : > { %4113 = vst.msk [vmem:[%s7421_s7 + $0x18] sm:$0xff] %vm510_vm5, %v4081_v44  ;;  %v4216_v57 = vmul.f32 %v4081_v44, %v4081_v44  ;;  %3674 = vst.msk [vmem:[#allocation3 + $0x68] sm:$0xff] %vm510_vm5, %v3642_v45  ;;  %v3984_v33 = vadd.f32 %v5525_v2, %v3714_v7  ;;  %v3713_v39 = vld [vmem:[#allocation3 + $0x40] sm:$0xff]  ;;  %v4247_v55 = vadd.f32 %v4246_v24, %v4245_v1  ;;  %v4147_v46 = vsel %vm510_vm5, %v4081_v44, 0.0 }
 0x21a   : > { %4112 = vst.msk [vmem:[%s7421_s7 + $0x10] sm:$0xff] %vm510_vm5, %v4080_v35  ;;  %v4145_v9 = vsel %vm510_vm5, %v4080_v35, 0.0  ;;  %v4215_v4 = vmul.f32 %v4080_v35, %v4080_v35  ;;  %v4044_v42 = vld [vmem:[#allocation3 + $0x28] sm:$0xff]  ;;  %3673 = vst.msk [vmem:[#allocation3 + $0x60] sm:$0xff] %vm510_vm5, %v3641_v31  ;;  %v3983_v14 = vadd.f32 %v3856_v3, %v3713_v39  ;;  %v5484_v51 = vpop.f32.mrb[126].mxu1  ;;  %v7463_v18 = vpop.f32.mrb[126].mxu0 }
 0x21b   : > { %v4146_v13 = vadd.f32 %v4145_v9, %v4144_v50  ;;  %v4083_v10 = vadd.f32 %v7414_v61, %v4044_v42  ;;  %v4043_v17 = vld [vmem:[#allocation3 + $0x20] sm:$0xff]  ;;  %4016 = vst.msk [vmem:[#allocation3 + $0x48] sm:$0xff] %vm510_vm5, %v3984_v33  ;;  %v3644_v12 = vadd.f32 %v5484_v51, %v3374_v36  ;;  %v3540_v34 = vpop.f32.mrb[127].mxu1  ;;  %v4250_v2 = vsel %vm510_vm5, %v4216_v57, 0.0  ;;  %v7469_v60 = vpop.f32.mrb[127].mxu0  ;;  %v3377_v42 = vld [vmem:[#allocation3 + $0x90] sm:$0xff] }
 0x21c   : > { %v4248_v56 = vsel %vm510_vm5, %v4215_v4, 0.0  ;;  %v4082_v37 = vadd.f32 %v7414_v61, %v4043_v17  ;;  %4015 = vst.msk [vmem:[#allocation3 + $0x40] sm:$0xff] %vm510_vm5, %v3983_v14  ;;  %v3643_v47 = vadd.f32 %v3540_v34, %v3373_v19  ;;  %v3716_v29 = vld [vmem:[#allocation3 + $0x58] sm:$0xff] }
 0x21d   : > { %v4249_v5 = vadd.f32 %v4248_v56, %v4247_v55  ;;  %4115 = vst.msk [vmem:[%s7421_s7 + $0x28] sm:$0xff] %vm510_vm5, %v4083_v10  ;;  %v4218_v16 = vmul.f32 %v4083_v10, %v4083_v10  ;;  %v4148_v3 = vadd.f32 %v4147_v46, %v4146_v13  ;;  %3676 = vst.msk [vmem:[#allocation3 + $0x78] sm:$0xff] %vm510_vm5, %v3644_v12  ;;  %v3715_v25 = vld [vmem:[#allocation3 + $0x50] sm:$0xff]  ;;  %v4151_v15 = vsel %vm510_vm5, %v4083_v10, 0.0  ;;  %v3378_v4 = vld [vmem:[#allocation3 + $0x98] sm:$0xff] }
 0x21e   : > { %4114 = vst.msk [vmem:[%s7421_s7 + $0x20] sm:$0xff] %vm510_vm5, %v4082_v37  ;;  %v4149_v0 = vsel %vm510_vm5, %v4082_v37, 0.0  ;;  %v4217_v40 = vmul.f32 %v4082_v37, %v4082_v37  ;;  %v4046_v38 = vld [vmem:[#allocation3 + $0x38] sm:$0xff]  ;;  %3675 = vst.msk [vmem:[#allocation3 + $0x70] sm:$0xff] %vm510_vm5, %v3643_v47  ;;  %v3986_v32 = vadd.f32 %v7428_v52, %v3716_v29  ;;  %v3985_v54 = vadd.f32 %v7433_v23, %v3715_v25  ;;  %v5487_v22 = vpop.f32.mrb[128].mxu1  ;;  %v7483_v20 = vpop.f32.mrb[128].mxu0 }
 0x21f   : > { %v4150_v48 = vadd.f32 %v4149_v0, %v4148_v3  ;;  %v4251_v11 = vadd.f32 %v4250_v2, %v4249_v5  ;;  %v4085_v53 = vadd.f32 %v7414_v61, %v4046_v38  ;;  %v4045_v27 = vld [vmem:[#allocation3 + $0x30] sm:$0xff]  ;;  %v3550_v59 = vpop.f32.mrb[129].mxu1  ;;  %v3646_v52 = vadd.f32 %v5487_v22, %v3376_v58  ;;  %v7488_v21 = vpop.f32.mrb[129].mxu0  ;;  %v3380_v2 = vld [vmem:[#allocation3 + $0xa8] sm:$0xff] }
 0x220   : > { %v4252_v30 = vsel %vm510_vm5, %v4217_v40, 0.0  ;;  %v4084_v43 = vadd.f32 %v7414_v61, %v4045_v27  ;;  %4018 = vst.msk [vmem:[#allocation3 + $0x58] sm:$0xff] %vm510_vm5, %v3986_v32  ;;  %4017 = vst.msk [vmem:[#allocation3 + $0x50] sm:$0xff] %vm510_vm5, %v3985_v54  ;;  %v3645_v23 = vadd.f32 %v3550_v59, %v3375_v62  ;;  %v3718_v6 = vld [vmem:[#allocation3 + $0x68] sm:$0xff]  ;;  %v4254_v8 = vsel %vm510_vm5, %v4218_v16, 0.0  ;;  %v3379_v32 = vld [vmem:[#allocation3 + $0xa0] sm:$0xff] }
 0x221   : > { %v4253_v26 = vadd.f32 %v4252_v30, %v4251_v11  ;;  %4117 = vst.msk [vmem:[%s7421_s7 + $0x38] sm:$0xff] %vm510_vm5, %v4085_v53  ;;  %v4220_v44 = vmul.f32 %v4085_v53, %v4085_v53  ;;  %v4152_v41 = vadd.f32 %v4151_v15, %v4150_v48  ;;  %v3717_v45 = vld [vmem:[#allocation3 + $0x60] sm:$0xff]  ;;  %3678 = vst.msk [vmem:[#allocation3 + $0x88] sm:$0xff] %vm510_vm5, %v3646_v52  ;;  %v4155_v50 = vsel %vm510_vm5, %v4085_v53, 0.0 }
 0x222   : > { %4116 = vst.msk [vmem:[%s7421_s7 + $0x30] sm:$0xff] %vm510_vm5, %v4084_v43  ;;  %v4153_v28 = vsel %vm510_vm5, %v4084_v43, 0.0  ;;  %v4219_v24 = vmul.f32 %v4084_v43, %v4084_v43  ;;  %v4048_v1 = vld [vmem:[#allocation3 + $0x48] sm:$0xff]  ;;  %3677 = vst.msk [vmem:[#allocation3 + $0x80] sm:$0xff] %vm510_vm5, %v3645_v23  ;;  %v3988_v35 = vadd.f32 %v7446_v49, %v3718_v6  ;;  %v3987_v31 = vadd.f32 %v7451_v63, %v3717_v45  ;;  %v5490_v7 = vpop.f32.mrb[130].mxu1  ;;  %v7503_v13 = vpop.f32.mrb[130].mxu0 }
 0x223   : > { %v4154_v57 = vadd.f32 %v4153_v28, %v4152_v41  ;;  %v4255_v33 = vadd.f32 %v4254_v8, %v4253_v26  ;;  %v4087_v39 = vadd.f32 %v7414_v61, %v4048_v1  ;;  %v4047_v9 = vld [vmem:[#allocation3 + $0x40] sm:$0xff]  ;;  %v3560_v14 = vpop.f32.mrb[131].mxu1  ;;  %v3648_v49 = vadd.f32 %v5490_v7, %v3378_v4  ;;  %v7508_v46 = vpop.f32.mrb[131].mxu0  ;;  %v3382_v7 = vld [vmem:[#allocation3 + $0xb8] sm:$0xff] }
 0x224   : > { %v4256_v36 = vsel %vm510_vm5, %v4219_v24, 0.0  ;;  %v4086_v51 = vadd.f32 %v7414_v61, %v4047_v9  ;;  %4020 = vst.msk [vmem:[#allocation3 + $0x68] sm:$0xff] %vm510_vm5, %v3988_v35  ;;  %4019 = vst.msk [vmem:[#allocation3 + $0x60] sm:$0xff] %vm510_vm5, %v3987_v31  ;;  %v3647_v63 = vadd.f32 %v3560_v14, %v3377_v42  ;;  %v3720_v55 = vld [vmem:[#allocation3 + $0x78] sm:$0xff]  ;;  %v4258_v10 = vsel %vm510_vm5, %v4220_v44, 0.0 }
 0x225   : > { %v4257_v17 = vadd.f32 %v4256_v36, %v4255_v33  ;;  %4119 = vst.msk [vmem:[%s7421_s7 + $0x48] sm:$0xff] %vm510_vm5, %v4087_v39  ;;  %v4222_v12 = vmul.f32 %v4087_v39, %v4087_v39  ;;  %v4156_v19 = vadd.f32 %v4155_v50, %v4154_v57  ;;  %v3719_v34 = vld [vmem:[#allocation3 + $0x70] sm:$0xff]  ;;  %3680 = vst.msk [vmem:[#allocation3 + $0x98] sm:$0xff] %vm510_vm5, %v3648_v49  ;;  %v4159_v16 = vsel %vm510_vm5, %v4087_v39, 0.0 }
 0x226   : > { %4118 = vst.msk [vmem:[%s7421_s7 + $0x40] sm:$0xff] %vm510_vm5, %v4086_v51  ;;  %v4157_v56 = vsel %vm510_vm5, %v4086_v51, 0.0  ;;  %v4221_v37 = vmul.f32 %v4086_v51, %v4086_v51  ;;  %3679 = vst.msk [vmem:[#allocation3 + $0x90] sm:$0xff] %vm510_vm5, %v3647_v63  ;;  %v3990_v47 = vadd.f32 %v7463_v18, %v3720_v55  ;;  %v3989_v29 = vadd.f32 %v7469_v60, %v3719_v34  ;;  %v5493_v5 = vpop.f32.mrb[132].mxu1  ;;  %v7523_v48 = vpop.f32.mrb[132].mxu0  ;;  %v3381_v50 = vld [vmem:[#allocation3 + $0xb0] sm:$0xff] }
 0x227   : > { %v4158_v3 = vadd.f32 %v4157_v56, %v4156_v19  ;;  %v4259_v25 = vadd.f32 %v4258_v10, %v4257_v17  ;;  %v4050_v0 = vld [vmem:[#allocation3 + $0x58] sm:$0xff]  ;;  %v4049_v40 = vld [vmem:[#allocation3 + $0x50] sm:$0xff]  ;;  %v3650_v38 = vadd.f32 %v5493_v5, %v3380_v2  ;;  %v3570_v54 = vpop.f32.mrb[133].mxu1  ;;  %v7526_v62 = vpop.f32.mrb[133].mxu0  ;;  %v4262_v59 = vsel %vm510_vm5, %v4222_v12, 0.0  ;;  %v3384_v5 = vld [vmem:[#allocation3 + $0xc8] sm:$0xff] }
 0x228   : > { %v4260_v22 = vsel %vm510_vm5, %v4221_v37, 0.0  ;;  %v4089_v15 = vadd.f32 %v7414_v61, %v4050_v0  ;;  %v4088_v18 = vadd.f32 %v7414_v61, %v4049_v40  ;;  %4022 = vst.msk [vmem:[#allocation3 + $0x78] sm:$0xff] %vm510_vm5, %v3990_v47  ;;  %4021 = vst.msk [vmem:[#allocation3 + $0x70] sm:$0xff] %vm510_vm5, %v3989_v29  ;;  %v3649_v60 = vadd.f32 %v3570_v54, %v3379_v32  ;;  %v3722_v27 = vld [vmem:[#allocation3 + $0x88] sm:$0xff] }
 0x229   : > { %v4261_v11 = vadd.f32 %v4260_v22, %v4259_v25  ;;  %v4160_v53 = vadd.f32 %v4159_v16, %v4158_v3  ;;  %3682 = vst.msk [vmem:[#allocation3 + $0xa8] sm:$0xff] %vm510_vm5, %v3650_v38  ;;  %v3721_v58 = vld [vmem:[#allocation3 + $0x80] sm:$0xff]  ;;  %v3992_v41 = vadd.f32 %v7483_v20, %v3722_v27 }
 0x22a   : > { %4121 = vst.msk [vmem:[%s7421_s7 + $0x58] sm:$0xff] %vm510_vm5, %v4089_v15  ;;  %v4224_v30 = vmul.f32 %v4089_v15, %v4089_v15  ;;  %4120 = vst.msk [vmem:[%s7421_s7 + $0x50] sm:$0xff] %vm510_vm5, %v4088_v18  ;;  %v4161_v43 = vsel %vm510_vm5, %v4088_v18, 0.0  ;;  %v4223_v52 = vmul.f32 %v4088_v18, %v4088_v18  ;;  %v5496_v23 = vpop.f32.mrb[134].mxu1  ;;  %v3991_v45 = vadd.f32 %v7488_v21, %v3721_v58  ;;  %v7541_v57 = vpop.f32.mrb[134].mxu0  ;;  %v3383_v16 = vld [vmem:[#allocation3 + $0xc0] sm:$0xff] }
 0x22b   : > { %3681 = vst.msk [vmem:[#allocation3 + $0xa0] sm:$0xff] %vm510_vm5, %v3649_v60  ;;  %v4162_v6 = vadd.f32 %v4161_v43, %v4160_v53  ;;  %v4263_v8 = vadd.f32 %v4262_v59, %v4261_v11  ;;  %v4052_v26 = vld [vmem:[#allocation3 + $0x68] sm:$0xff]  ;;  %v4051_v44 = vld [vmem:[#allocation3 + $0x60] sm:$0xff]  ;;  %v3580_v28 = vpop.f32.mrb[135].mxu1  ;;  %v4163_v24 = vsel %vm510_vm5, %v4089_v15, 0.0  ;;  %4024 = vst.msk [vmem:[#allocation3 + $0x88] sm:$0xff] %vm510_vm5, %v3992_v41  ;;  %v3652_v20 = vadd.f32 %v5496_v23, %v3382_v7 }
 0x22c   : > { %v4264_v1 = vsel %vm510_vm5, %v4223_v52, 0.0  ;;  %v4091_v35 = vadd.f32 %v7414_v61, %v4052_v26  ;;  %v4090_v31 = vadd.f32 %v7414_v61, %v4051_v44  ;;  %4023 = vst.msk [vmem:[#allocation3 + $0x80] sm:$0xff] %vm510_vm5, %v3991_v45  ;;  %v3651_v21 = vadd.f32 %v3580_v28, %v3381_v50  ;;  %v3724_v9 = vld [vmem:[#allocation3 + $0x98] sm:$0xff]  ;;  %v7545_v42 = vpop.f32.mrb[135].mxu0 }
 0x22d   : > { %v4265_v33 = vadd.f32 %v4264_v1, %v4263_v8  ;;  %v4164_v39 = vadd.f32 %v4163_v24, %v4162_v6  ;;  %v3723_v4 = vld [vmem:[#allocation3 + $0x90] sm:$0xff]  ;;  %v4266_v14 = vsel %vm510_vm5, %v4224_v30, 0.0  ;;  %3684 = vst.msk [vmem:[#allocation3 + $0xb8] sm:$0xff] %vm510_vm5, %v3652_v20  ;;  %v3994_v19 = vadd.f32 %v7503_v13, %v3724_v9  ;;  %v3386_v59 = vld [vmem:[#allocation3 + $0xd8] sm:$0xff]  ;;  %v3388_v20 = vld [vmem:[#allocation3 + $0xe8] sm:$0xff] }
 0x22e   : > { %4123 = vst.msk [vmem:[%s7421_s7 + $0x68] sm:$0xff] %vm510_vm5, %v4091_v35  ;;  %v4226_v36 = vmul.f32 %v4091_v35, %v4091_v35  ;;  %4122 = vst.msk [vmem:[%s7421_s7 + $0x60] sm:$0xff] %vm510_vm5, %v4090_v31  ;;  %v4165_v51 = vsel %vm510_vm5, %v4090_v31, 0.0  ;;  %v4225_v49 = vmul.f32 %v4090_v31, %v4090_v31  ;;  %v5499_v63 = vpop.f32.mrb[136].mxu1  ;;  %v3993_v34 = vadd.f32 %v7508_v46, %v3723_v4  ;;  %v7561_v25 = vpop.f32.mrb[136].mxu0  ;;  %v3385_v30 = vld [vmem:[#allocation3 + $0xd0] sm:$0xff] }
 0x22f   : > { %v4166_v55 = vadd.f32 %v4165_v51, %v4164_v39  ;;  %v4267_v10 = vadd.f32 %v4266_v14, %v4265_v33  ;;  %v4054_v17 = vld [vmem:[#allocation3 + $0x78] sm:$0xff]  ;;  %v4053_v12 = vld [vmem:[#allocation3 + $0x70] sm:$0xff]  ;;  %3683 = vst.msk [vmem:[#allocation3 + $0xb0] sm:$0xff] %vm510_vm5, %v3651_v21  ;;  %v3590_v56 = vpop.f32.mrb[137].mxu1  ;;  %v4167_v37 = vsel %vm510_vm5, %v4091_v35, 0.0  ;;  %4026 = vst.msk [vmem:[#allocation3 + $0x98] sm:$0xff] %vm510_vm5, %v3994_v19  ;;  %v3654_v46 = vadd.f32 %v5499_v63, %v3384_v5 }
 0x230   : > { %v4268_v47 = vsel %vm510_vm5, %v4225_v49, 0.0  ;;  %v4093_v29 = vadd.f32 %v7414_v61, %v4054_v17  ;;  %v4092_v2 = vadd.f32 %v7414_v61, %v4053_v12  ;;  %v3726_v3 = vld [vmem:[#allocation3 + $0xa8] sm:$0xff]  ;;  %4025 = vst.msk [vmem:[#allocation3 + $0x90] sm:$0xff] %vm510_vm5, %v3993_v34  ;;  %v3653_v40 = vadd.f32 %v3590_v56, %v3383_v16  ;;  %v7565_v32 = vpop.f32.mrb[137].mxu0  ;;  %v3387_v21 = vld [vmem:[#allocation3 + $0xe0] sm:$0xff] }
 0x231   : > { %v4269_v0 = vadd.f32 %v4268_v47, %v4267_v10  ;;  %v4168_v13 = vadd.f32 %v4167_v37, %v4166_v55  ;;  %v4270_v54 = vsel %vm510_vm5, %v4226_v36, 0.0  ;;  %3686 = vst.msk [vmem:[#allocation3 + $0xc8] sm:$0xff] %vm510_vm5, %v3654_v46  ;;  %v3996_v27 = vadd.f32 %v7523_v48, %v3726_v3  ;;  %v3390_v37 = vld [vmem:[#allocation3 + $0xf8] sm:$0xff] }
 0x232   : > { %v3725_v38 = vld [vmem:[#allocation3 + $0xa0] sm:$0xff]  ;;  %4125 = vst.msk [vmem:[%s7421_s7 + $0x78] sm:$0xff] %vm510_vm5, %v4093_v29  ;;  %v4228_v22 = vmul.f32 %v4093_v29, %v4093_v29  ;;  %4124 = vst.msk [vmem:[%s7421_s7 + $0x70] sm:$0xff] %vm510_vm5, %v4092_v2  ;;  %v4169_v15 = vsel %vm510_vm5, %v4092_v2, 0.0  ;;  %v4227_v18 = vmul.f32 %v4092_v2, %v4092_v2  ;;  %v5502_v60 = vpop.f32.mrb[138].mxu1  ;;  %v4171_v52 = vsel %vm510_vm5, %v4093_v29, 0.0 }
 0x233   : > { %v4170_v11 = vadd.f32 %v4169_v15, %v4168_v13  ;;  %v4271_v53 = vadd.f32 %v4270_v54, %v4269_v0  ;;  %3685 = vst.msk [vmem:[#allocation3 + $0xc0] sm:$0xff] %vm510_vm5, %v3653_v40  ;;  %v3995_v58 = vadd.f32 %v7526_v62, %v3725_v38  ;;  %v3600_v43 = vpop.f32.mrb[139].mxu1  ;;  %v4056_v6 = vld [vmem:[#allocation3 + $0x88] sm:$0xff]  ;;  %v4055_v8 = vld [vmem:[#allocation3 + $0x80] sm:$0xff]  ;;  %v3656_v26 = vadd.f32 %v5502_v60, %v3386_v59  ;;  %v7579_v41 = vpop.f32.mrb[138].mxu0  ;;  %v3389_v0 = vld [vmem:[#allocation3 + $0xf0] sm:$0xff] }
 0x234   : > { %v4272_v23 = vsel %vm510_vm5, %v4227_v18, 0.0  ;;  %v3655_v44 = vadd.f32 %v3600_v43, %v3385_v30  ;;  %v4095_v48 = vadd.f32 %v7414_v61, %v4056_v6  ;;  %v4094_v62 = vadd.f32 %v7414_v61, %v4055_v8  ;;  %4028 = vst.msk [vmem:[#allocation3 + $0xa8] sm:$0xff] %vm510_vm5, %v3996_v27  ;;  %v7585_v28 = vpop.f32.mrb[139].mxu0  ;;  %v3728_v1 = vld [vmem:[#allocation3 + $0xb8] sm:$0xff] }
 0x235   : > { %v4273_v45 = vadd.f32 %v4272_v23, %v4271_v53  ;;  %4027 = vst.msk [vmem:[#allocation3 + $0xa0] sm:$0xff] %vm510_vm5, %v3995_v58  ;;  %v4172_v24 = vadd.f32 %v4171_v52, %v4170_v11  ;;  %3688 = vst.msk [vmem:[#allocation3 + $0xd8] sm:$0xff] %vm510_vm5, %v3656_v26  ;;  %v4274_v7 = vsel %vm510_vm5, %v4228_v22, 0.0  ;;  %v3998_v39 = vadd.f32 %v7541_v57, %v3728_v1 }
 0x236   : > { %3687 = vst.msk [vmem:[#allocation3 + $0xd0] sm:$0xff] %vm510_vm5, %v3655_v44  ;;  %v3727_v35 = vld [vmem:[#allocation3 + $0xb0] sm:$0xff]  ;;  %v5505_v31 = vpop.f32.mrb[140].mxu1  ;;  %4127 = vst.msk [vmem:[%s7421_s7 + $0x88] sm:$0xff] %vm510_vm5, %v4095_v48  ;;  %v4173_v50 = vsel %vm510_vm5, %v4094_v62, 0.0  ;;  %v4229_v33 = vmul.f32 %v4094_v62, %v4094_v62  ;;  %v4058_v4 = vld [vmem:[#allocation3 + $0x98] sm:$0xff]  ;;  %v4230_v34 = vmul.f32 %v4095_v48, %v4095_v48 }
 0x237   : > { %4126 = vst.msk [vmem:[%s7421_s7 + $0x80] sm:$0xff] %vm510_vm5, %v4094_v62  ;;  %v3610_v9 = vpop.f32.mrb[141].mxu1  ;;  %v4057_v14 = vld [vmem:[#allocation3 + $0x90] sm:$0xff]  ;;  %v3997_v36 = vadd.f32 %v7545_v42, %v3727_v35  ;;  %v3658_v51 = vadd.f32 %v5505_v31, %v3388_v20  ;;  %v7597_v63 = vpop.f32.mrb[140].mxu0  ;;  %v4174_v55 = vadd.f32 %v4173_v50, %v4172_v24  ;;  %v4097_v10 = vadd.f32 %v7414_v61, %v4058_v4 }
 0x238   : > { %v3657_v49 = vadd.f32 %v3610_v9, %v3387_v21  ;;  %v4096_v17 = vadd.f32 %v7414_v61, %v4057_v14  ;;  %4030 = vst.msk [vmem:[#allocation3 + $0xb8] sm:$0xff] %vm510_vm5, %v3998_v39  ;;  %v3956_v57 = vpop.f32.mrb[141].mxu0  ;;  %v4175_v12 = vsel %vm510_vm5, %v4095_v48, 0.0  ;;  %v4275_v19 = vadd.f32 %v4274_v7, %v4273_v45  ;;  %v3730_v42 = vld [vmem:[#allocation3 + $0xc8] sm:$0xff] }
 0x239   : > { %4029 = vst.msk [vmem:[#allocation3 + $0xb0] sm:$0xff] %vm510_vm5, %v3997_v36  ;;  %3690 = vst.msk [vmem:[#allocation3 + $0xe8] sm:$0xff] %vm510_vm5, %v3658_v51  ;;  %v4176_v29 = vadd.f32 %v4175_v12, %v4174_v55  ;;  %v4276_v2 = vsel %vm510_vm5, %v4229_v33, 0.0  ;;  %v4000_v5 = vadd.f32 %v7561_v25, %v3730_v42  ;;  %v4179_v27 = vsel %vm510_vm5, %v4097_v10, 0.0 }
 0x23a   : > { %3689 = vst.msk [vmem:[#allocation3 + $0xe0] sm:$0xff] %vm510_vm5, %v3657_v49  ;;  %v3729_v56 = vld [vmem:[#allocation3 + $0xc0] sm:$0xff]  ;;  %v5508_v47 = vpop.f32.mrb[142].mxu1  ;;  %4129 = vst.msk [vmem:[%s7421_s7 + $0x98] sm:$0xff] %vm510_vm5, %v4097_v10  ;;  %v4177_v46 = vsel %vm510_vm5, %v4096_v17, 0.0  ;;  %v5558_v22 = vpop.f32.mrb[142].mxu0  ;;  %v4231_v18 = vmul.f32 %v4096_v17, %v4096_v17  ;;  %v4277_v58 = vadd.f32 %v4276_v2, %v4275_v19  ;;  %v4232_v23 = vmul.f32 %v4097_v10, %v4097_v10 }
 0x23b   : > { %4128 = vst.msk [vmem:[%s7421_s7 + $0x90] sm:$0xff] %vm510_vm5, %v4096_v17  ;;  %v3999_v16 = vadd.f32 %v7565_v32, %v3729_v56  ;;  %v3660_v3 = vadd.f32 %v5508_v47, %v3390_v37  ;;  %v3620_v13 = vpop.f32.mrb[143].mxu1  ;;  %v4060_v40 = vld [vmem:[#allocation3 + $0xa8] sm:$0xff]  ;;  %v4178_v15 = vadd.f32 %v4177_v46, %v4176_v29  ;;  %4032 = vst.msk [vmem:[#allocation3 + $0xc8] sm:$0xff] %vm510_vm5, %v4000_v5  ;;  %v3966_v53 = vpop.f32.mrb[143].mxu0  ;;  %v4278_v6 = vsel %vm510_vm5, %v4230_v34, 0.0 }
 0x23c   : > { %v4059_v38 = vld [vmem:[#allocation3 + $0xa0] sm:$0xff]  ;;  %v3659_v54 = vadd.f32 %v3620_v13, %v3389_v0  ;;  %v4099_v60 = vadd.f32 %v7414_v61, %v4060_v40  ;;  %v3732_v25 = vld [vmem:[#allocation3 + $0xd8] sm:$0xff]  ;;  %v4280_v45 = vsel %vm510_vm5, %v4231_v18, 0.0  ;;  %v4282_v14 = vsel %vm510_vm5, %v4232_v23, 0.0 }
 0x23d   : > { %v4098_v11 = vadd.f32 %v7414_v61, %v4059_v38  ;;  %4031 = vst.msk [vmem:[#allocation3 + $0xc0] sm:$0xff] %vm510_vm5, %v3999_v16  ;;  %3692 = vst.msk [vmem:[#allocation3 + $0xf8] sm:$0xff] %vm510_vm5, %v3660_v3  ;;  %v3731_v32 = vld [vmem:[#allocation3 + $0xd0] sm:$0xff]  ;;  %v4002_v59 = vadd.f32 %v7579_v41, %v3732_v25  ;;  %v4180_v43 = vadd.f32 %v4179_v27, %v4178_v15 }
 0x23e   : > { %3691 = vst.msk [vmem:[#allocation3 + $0xf0] sm:$0xff] %vm510_vm5, %v3659_v54  ;;  %v4001_v30 = vadd.f32 %v7585_v28, %v3731_v32  ;;  %4131 = vst.msk [vmem:[%s7421_s7 + $0xa8] sm:$0xff] %vm510_vm5, %v4099_v60  ;;  %v4279_v41 = vadd.f32 %v4278_v6, %v4277_v58  ;;  %v4183_v1 = vsel %vm510_vm5, %v4099_v60, 0.0  ;;  %v4234_v4 = vmul.f32 %v4099_v60, %v4099_v60 }
 0x23f   : > { %4130 = vst.msk [vmem:[%s7421_s7 + $0xa0] sm:$0xff] %vm510_vm5, %v4098_v11  ;;  %v4181_v52 = vsel %vm510_vm5, %v4098_v11, 0.0  ;;  %4034 = vst.msk [vmem:[#allocation3 + $0xd8] sm:$0xff] %vm510_vm5, %v4002_v59  ;;  %v4062_v8 = vld [vmem:[#allocation3 + $0xb8] sm:$0xff]  ;;  %v4233_v44 = vmul.f32 %v4098_v11, %v4098_v11 }
 0x240   : > { %4033 = vst.msk [vmem:[#allocation3 + $0xd0] sm:$0xff] %vm510_vm5, %v4001_v30  ;;  %v4182_v26 = vadd.f32 %v4181_v52, %v4180_v43  ;;  %v4061_v48 = vld [vmem:[#allocation3 + $0xb0] sm:$0xff]  ;;  %v3734_v62 = vld [vmem:[#allocation3 + $0xe8] sm:$0xff]  ;;  %v4101_v24 = vadd.f32 %v7414_v61, %v4062_v8  ;;  %v4281_v33 = vadd.f32 %v4280_v45, %v4279_v41  ;;  %v4286_v3 = vsel %vm510_vm5, %v4234_v4, 0.0 }
 0x241   : > { %v3733_v28 = vld [vmem:[#allocation3 + $0xe0] sm:$0xff]  ;;  %v4004_v35 = vadd.f32 %v7597_v63, %v3734_v62  ;;  %v4100_v7 = vadd.f32 %v7414_v61, %v4061_v48  ;;  %v4284_v36 = vsel %vm510_vm5, %v4233_v44, 0.0 }
 0x242   : > { %v4003_v31 = vadd.f32 %v3956_v57, %v3733_v28  ;;  %v4184_v50 = vadd.f32 %v4183_v1, %v4182_v26  ;;  %4133 = vst.msk [vmem:[%s7421_s7 + $0xb8] sm:$0xff] %vm510_vm5, %v4101_v24  ;;  %v4064_v21 = vld [vmem:[#allocation3 + $0xc8] sm:$0xff]  ;;  %v4187_v57 = vsel %vm510_vm5, %v4101_v24, 0.0  ;;  %v4283_v19 = vadd.f32 %v4282_v14, %v4281_v33 }
 0x243   : > { %4036 = vst.msk [vmem:[#allocation3 + $0xe8] sm:$0xff] %vm510_vm5, %v4004_v35  ;;  %4132 = vst.msk [vmem:[%s7421_s7 + $0xb0] sm:$0xff] %vm510_vm5, %v4100_v7  ;;  %v4185_v9 = vsel %vm510_vm5, %v4100_v7, 0.0  ;;  %v4103_v55 = vadd.f32 %v7414_v61, %v4064_v21  ;;  %v4235_v12 = vmul.f32 %v4100_v7, %v4100_v7  ;;  %v4236_v16 = vmul.f32 %v4101_v24, %v4101_v24 }
 0x244   : > { %4035 = vst.msk [vmem:[#allocation3 + $0xe0] sm:$0xff] %vm510_vm5, %v4003_v31  ;;  %v3736_v39 = vld [vmem:[#allocation3 + $0xf8] sm:$0xff]  ;;  %v4063_v20 = vld [vmem:[#allocation3 + $0xc0] sm:$0xff]  ;;  %v4186_v10 = vadd.f32 %v4185_v9, %v4184_v50  ;;  %v4285_v2 = vadd.f32 %v4284_v36, %v4283_v19 }
 0x245   : > { %v4006_v51 = vadd.f32 %v5558_v22, %v3736_v39  ;;  %v3735_v49 = vld [vmem:[#allocation3 + $0xf0] sm:$0xff]  ;;  %v4102_v63 = vadd.f32 %v7414_v61, %v4063_v20  ;;  %4135 = vst.msk [vmem:[%s7421_s7 + $0xc8] sm:$0xff] %vm510_vm5, %v4103_v55  ;;  %v4191_v0 = vsel %vm510_vm5, %v4103_v55, 0.0  ;;  %v4288_v40 = vsel %vm510_vm5, %v4235_v12, 0.0 }
 0x246   : > { %v4005_v17 = vadd.f32 %v3966_v53, %v3735_v49  ;;  %v4066_v42 = vld [vmem:[#allocation3 + $0xd8] sm:$0xff]  ;;  %v4188_v56 = vadd.f32 %v4187_v57, %v4186_v10  ;;  %v4287_v15 = vadd.f32 %v4286_v3, %v4285_v2  ;;  %v4238_v25 = vmul.f32 %v4103_v55, %v4103_v55 }
 0x247   : > { %4038 = vst.msk [vmem:[#allocation3 + $0xf8] sm:$0xff] %vm510_vm5, %v4006_v51  ;;  %v4065_v34 = vld [vmem:[#allocation3 + $0xd0] sm:$0xff]  ;;  %4134 = vst.msk [vmem:[%s7421_s7 + $0xc0] sm:$0xff] %vm510_vm5, %v4102_v63  ;;  %v4189_v37 = vsel %vm510_vm5, %v4102_v63, 0.0  ;;  %v4105_v29 = vadd.f32 %v7414_v61, %v4066_v42  ;;  %v4237_v46 = vmul.f32 %v4102_v63, %v4102_v63  ;;  %v4290_v53 = vsel %vm510_vm5, %v4236_v16, 0.0 }
 0x248   : > { %4037 = vst.msk [vmem:[#allocation3 + $0xf0] sm:$0xff] %vm510_vm5, %v4005_v17  ;;  %v4104_v47 = vadd.f32 %v7414_v61, %v4065_v34  ;;  %v4190_v5 = vadd.f32 %v4189_v37, %v4188_v56  ;;  %v4289_v32 = vadd.f32 %v4288_v40, %v4287_v15  ;;  %v4294_v48 = vsel %vm510_vm5, %v4238_v25, 0.0 }
 0x249   : > { %4137 = vst.msk [vmem:[%s7421_s7 + $0xd8] sm:$0xff] %vm510_vm5, %v4105_v29  ;;  %v4195_v58 = vsel %vm510_vm5, %v4105_v29, 0.0  ;;  %v4292_v43 = vsel %vm510_vm5, %v4237_v46, 0.0  ;;  %v4240_v41 = vmul.f32 %v4105_v29, %v4105_v29 }
 0x24a   : > { %4136 = vst.msk [vmem:[%s7421_s7 + $0xd0] sm:$0xff] %vm510_vm5, %v4104_v47  ;;  %v4193_v13 = vsel %vm510_vm5, %v4104_v47, 0.0  ;;  %v4068_v54 = vld [vmem:[#allocation3 + $0xe8] sm:$0xff]  ;;  %v4192_v22 = vadd.f32 %v4191_v0, %v4190_v5  ;;  %v4239_v30 = vmul.f32 %v4104_v47, %v4104_v47  ;;  %v4291_v8 = vadd.f32 %v4290_v53, %v4289_v32 }
 0x24b   : > { %v4067_v38 = vld [vmem:[#allocation3 + $0xe0] sm:$0xff]  ;;  %v4107_v60 = vadd.f32 %v7414_v61, %v4068_v54  ;;  %v4298_v50 = vsel %vm510_vm5, %v4240_v41, 0.0 }
 0x24c   : > { %v4106_v18 = vadd.f32 %v7414_v61, %v4067_v38  ;;  %v4194_v11 = vadd.f32 %v4193_v13, %v4192_v22  ;;  %v4293_v45 = vadd.f32 %v4292_v43, %v4291_v8  ;;  %v4296_v1 = vsel %vm510_vm5, %v4239_v30, 0.0 }
 0x24d   : > { %4139 = vst.msk [vmem:[%s7421_s7 + $0xe8] sm:$0xff] %vm510_vm5, %v4107_v60  ;;  %v4199_v62 = vsel %vm510_vm5, %v4107_v60, 0.0  ;;  %v4242_v39 = vmul.f32 %v4107_v60, %v4107_v60 }
 0x24e   : > { %v4070_v27 = vld [vmem:[#allocation3 + $0xf8] sm:$0xff]  ;;  %4138 = vst.msk [vmem:[%s7421_s7 + $0xe0] sm:$0xff] %vm510_vm5, %v4106_v18  ;;  %v4197_v59 = vsel %vm510_vm5, %v4106_v18, 0.0  ;;  %v4196_v6 = vadd.f32 %v4195_v58, %v4194_v11  ;;  %v4241_v24 = vmul.f32 %v4106_v18, %v4106_v18  ;;  %v4295_v31 = vadd.f32 %v4294_v48, %v4293_v45 }
 0x24f   : > { %v4069_v52 = vld [vmem:[#allocation3 + $0xf0] sm:$0xff]  ;;  %v4109_v23 = vadd.f32 %v7414_v61, %v4070_v27  ;;  %v4302_v49 = vsel %vm510_vm5, %v4242_v39, 0.0 }
 0x250   : > { %v4108_v26 = vadd.f32 %v7414_v61, %v4069_v52  ;;  %v4198_v44 = vadd.f32 %v4197_v59, %v4196_v6  ;;  %v4297_v7 = vadd.f32 %v4296_v1, %v4295_v31  ;;  %v4300_v21 = vsel %vm510_vm5, %v4241_v24, 0.0 }
 0x251   : > { %4141 = vst.msk [vmem:[%s7421_s7 + $0xf8] sm:$0xff] %vm510_vm5, %v4109_v23  ;;  %v4203_v33 = vsel %vm510_vm5, %v4109_v23, 0.0  ;;  %v4244_v51 = vmul.f32 %v4109_v23, %v4109_v23 }
 0x252   : > { %4140 = vst.msk [vmem:[%s7421_s7 + $0xf0] sm:$0xff] %vm510_vm5, %v4108_v26  ;;  %v4201_v28 = vsel %vm510_vm5, %v4108_v26, 0.0  ;;  %v4200_v35 = vadd.f32 %v4199_v62, %v4198_v44  ;;  %v4243_v20 = vmul.f32 %v4108_v26, %v4108_v26  ;;  %v4299_v4 = vadd.f32 %v4298_v50, %v4297_v7 }
 0x253   : > { %v4306_v12 = vsel %vm510_vm5, %v4244_v51, 0.0 }
 0x254   : > { %v4202_v61 = vadd.f32 %v4201_v28, %v4200_v35  ;;  %v4301_v36 = vadd.f32 %v4300_v21, %v4299_v4  ;;  %v4304_v63 = vsel %vm510_vm5, %v4243_v20, 0.0 }
 0x256   : > { %v4204_v9 = vadd.f32 %v4203_v33, %v4202_v61  ;;  %v4303_v10 = vadd.f32 %v4302_v49, %v4301_v36 }
 0x258   : > { %v4205_v14 = vrot.slane %v4204_v9, 4  ;;  %v4305_v57 = vadd.f32 %v4304_v63, %v4303_v10 }
 0x25a   : > { %v4206_v55 = vadd.f32 %v4205_v14, %v4204_v9  ;;  %v4307_v34 = vadd.f32 %v4306_v12, %v4305_v57 }
 0x25c   : > { %v4207_v17 = vrot.slane %v4206_v55, 2  ;;  %v4308_v56 = vrot.slane %v4307_v34, 4 }
 0x25e   : > { %v4208_v19 = vadd.f32 %v4207_v17, %v4206_v55  ;;  %v4309_v47 = vadd.f32 %v4308_v56, %v4307_v34 }
 0x260   : > { %v4209_v42 = vrot.slane %v4208_v19, 1  ;;  %v4310_v29 = vrot.slane %v4309_v47, 2 }
 0x262   : > { %v4210_v37 = vadd.f32 %v4209_v42, %v4208_v19 }
 0x264   : > { %4212 = vst.msk [vmem:[%s257_s10] sm:$0x1] %vm4211_vm6, %v4210_v37 }
 0x265   : > { %5647 = shalt.err (!%p5644_p6)
}
 0x266   : > { %s5648_s27 = scalar_lea.hbm %s7701_s14, 16  ;;  %s5652_s10 = scalar_lea.hbm %s7787_s4, 32 }
 0x267   : > { %p5649_p7 = scmp.ne.s32.totalorder %s7701_s14, %s5648_s27  ;;  %p5653_p11 = scmp.lt.u32.totalorder %s7701_s14, %s7787_s4 }
 0x268   : > { %p5654_p12 = scmp.lt.u32.totalorder %s5652_s10, %s5648_s27  ;;  %p5656_p0 = scmp.lt.u32.totalorder %s5648_s27, %s7701_s14 }
 0x269   : > { %p5650_p9 = pnand %p5649_p7, %p5819_p4 }
 0x26a   : > { %p5655_p13 = por %p5654_p12, %p5653_p11 }
 0x26b   : > { %p5651_p10 = pneg %p5650_p9 }
 0x26c   : > { %p5657_p1 = por %p5656_p0, %p5655_p13 }
 0x26e   : > { %p5658_p2 = pnand %p5657_p1, %p5651_p10 }
 0x270   : > { %5661 = shalt.err (!%p5658_p2)
}
 0x271   : > { %5561 = dma.vmem_to_hbm [thread:$0]  (%p5819_p4), %s7703_s11, 16, %s7701_s14, %s4325_s15   ;;  %v4311_v2 = vadd.f32 %v4310_v29, %v4309_v47 }
 0x272   : > { %s263_s16 = scalar_lea.vmem [#allocation6], %s7689_s8  ;;  %s7734_s27 = scalar_lea.hbm %s7788_s5, %s4806_s9 }
 0x273   : > { %s4360_s17 = sshll.u32 %s263_s16, 4  ;;  %v4312_v5 = vrot.slane %v4311_v2, 1  ;;  %s4329_s29 = scalar_lea.sflag [#allocation7], %s7689_s8  ;;  %s7736_s17 = int_to_ptr.vmem [resolvable:$true] %s4360_s17 }
 0x274   : > { %s5662_s11 = scalar_lea.vmem %s7736_s17, 16  ;;  %s5748_s14 = smov [#allocation6]  }
 0x275   : > { %v4313_v16 = vadd.f32 %v4312_v5, %v4311_v2  ;;  %p5663_p3 = scmp.ne.s32.totalorder %s7736_s17, %s5662_s11  ;;  %s5666_s21 = sshll.u32 %s5748_s14, 4  ;;  %s5667_s21 = int_to_ptr.vmem [resolvable:$false] %s5666_s21 }
 0x276   : > { %s5668_s15 = scalar_lea.vmem %s5667_s21, 32  ;;  %p5669_p7 = scmp.lt.s32.totalorder %s7736_s17, %s5667_s21 }
 0x277   : > { %4314 = vst.msk [vmem:[%s263_s16] sm:$0x1] %vm4211_vm6, %v4313_v16  ;;  %p5664_p5 = pnand %p5663_p3, %p5819_p4  ;;  %p5670_p9 = scmp.lt.s32.totalorder %s5668_s15, %s5662_s11 }
 0x279   : > { %p5665_p6 = pneg %p5664_p5  ;;  %p5671_p10 = por %p5670_p9, %p5669_p7 }
 0x27b   : > { %p5672_p11 = pnand %p5671_p10, %p5665_p6 }
 0x27d   : > { %5675 = shalt.err (!%p5672_p11)
}
 0x27e   : > { %s5676_s8 = scalar_lea.hbm %s7734_s27, 16  ;;  %s5680_s10 = scalar_lea.hbm %s7788_s5, 32 }
 0x27f   : > { %p5677_p12 = scmp.ne.s32.totalorder %s7734_s27, %s5676_s8  ;;  %p5681_p1 = scmp.lt.u32.totalorder %s7734_s27, %s7788_s5 }
 0x280   : > { %p5682_p2 = scmp.lt.u32.totalorder %s5680_s10, %s5676_s8  ;;  %p5684_p5 = scmp.lt.u32.totalorder %s5676_s8, %s7734_s27 }
 0x281   : > { %p5678_p13 = pnand %p5677_p12, %p5819_p4 }
 0x282   : > { %p5683_p3 = por %p5682_p2, %p5681_p1 }
 0x283   : > { %p5679_p0 = pneg %p5678_p13 }
 0x284   : > { %p5685_p6 = por %p5684_p5, %p5683_p3 }
 0x286   : > { %p5686_p7 = pnand %p5685_p6, %p5679_p0 }
 0x288   : > { %5689 = shalt.err (!%p5686_p7)
}
 0x289   : > { %5562 = dma.vmem_to_hbm [thread:$0]  (%p5819_p4), %s7736_s17, 16, %s7734_s27, %s4329_s29  }
 0x28a PF: > { %p5572_p9 = scmp.ge.s32.totalorder %s5744_s23, 2  ;;  %s4384_s16 = sand.u32 1, %s5724_s18  }
 0x28b   : > { %s4385_s24 = scalar_lea.sflag [#allocation5], %s4384_s16 }
 0x28c   : > { %p5566_p10 = pnand %p5572_p9, %p5826_p8 }
 0x28e   : > { %5715 = dma.done.wait (!%p5566_p10), %s4385_s24, 16  }
 0x28f   : > { %5717 = vsyncadd (!%p5566_p10), %s4385_s24, 4294967280  ;;  %s4393_s25 = scalar_lea.sflag [#allocation7], %s4384_s16 }
 0x290   : > { %5719 = dma.done.wait (!%p5566_p10), %s4393_s25, 16  }
 0x291   : > { %5721 = vsyncadd (!%p5566_p10), %s4393_s25, 4294967280  ;;  %s22_s23 = sadd.s32 1, %s5744_s23   ;;  %s7951_s18 = smov %s5728_s19 }
 0x292   : > { %p19_p11 = scmp.ge.s32.totalorder %s22_s23, 4   ;;  %s7952_s19 = smov %s5732_s20 }
 0x293   : > { %s7953_s20 = smov %s5832_s6  ;;  %s7954_s21 = smov %s5740_s22 }
 0x294   : > { %s7955_s22 = smov %s7957_s26  ;;  %21 = sbr.rel (!%p19_p11) target bundleno = 6 (0x6), region = 105 }
 0x29b   :  { %4397 = vsyncpa [#allocation5], 1 }
 0x29c   :  { %4399 = vsyncpa [#allocation5 + $0x1], 1 }
 0x29d   :  { %4400 = vsyncpa [#allocation7], 1 }
 0x29e   :  { %4402 = vsyncpa [#allocation7 + $0x1], 1 }

</bundles_post_ra>
